<compile_context>
chip_gen: v7x
topology: tpu7x:2x2x1
jax: 0.10.0
libtpu: 0.0.40
codegen_flags: <defaults>
</compile_context>

<pallas_src>
import functools
import math

import jax
import jax.numpy as jnp
from jax.experimental import pallas as pl
from jax.experimental.pallas import tpu as pltpu

EPS = 1e-5          # torch.nn.LayerNorm default eps
LANE = 128          # TPU lane width (logits padded to this)


# ------------------------------------------------------------------ helpers
def _layernorm(x, g, b):
    x = x.astype(jnp.float32)
    mu = jnp.mean(x, axis=-1, keepdims=True)
    var = jnp.mean((x - mu) ** 2, axis=-1, keepdims=True)
    return (x - mu) * jax.lax.rsqrt(var + EPS) * g + b


def _gelu(x):
    # exact (erf-based) GELU, matching torch.nn.GELU() default
    return 0.5 * x * (1.0 + jax.lax.erf(x * (1.0 / math.sqrt(2.0))))


def _bf16(x):
    return x.astype(jnp.bfloat16)


def posemb_sincos_2d(h, w, dim, temperature=10000):
    assert dim % 4 == 0
    y, x = jnp.meshgrid(jnp.arange(h), jnp.arange(w), indexing="ij")
    omega = jnp.arange(dim // 4, dtype=jnp.float32) / (dim // 4 - 1)
    omega = 1.0 / (temperature ** omega)
    y = y.reshape(-1)[:, None].astype(jnp.float32) * omega[None, :]
    x = x.reshape(-1)[:, None].astype(jnp.float32) * omega[None, :]
    return jnp.concatenate([jnp.sin(x), jnp.cos(x), jnp.sin(y), jnp.cos(y)], axis=1)


# ------------------------------------------------------------------ in-kernel blocks
def _split_heads(m, heads, dim_head):
    # (N, heads*dim_head) -> (heads, N, dim_head).
    # TODO(synk): becomes a pure reshape once dim_head is a multiple of 128.
    return jnp.stack(
        [m[:, i * dim_head:(i + 1) * dim_head] for i in range(heads)], axis=0)


def _merge_heads(o, heads):
    # (heads, N, dim_head) -> (N, heads*dim_head)
    return jnp.concatenate([o[i] for i in range(heads)], axis=-1)


def _mha(q2d, k2d, v2d, wout, heads, dim_head):
    """Batched multi-head attention core + output projection (no residual)."""
    q = _split_heads(_bf16(q2d), heads, dim_head)
    k = _split_heads(_bf16(k2d), heads, dim_head)
    v = _split_heads(_bf16(v2d), heads, dim_head)
    s = jnp.einsum('hqd,hkd->hqk', q, k, preferred_element_type=jnp.float32)
    s = s - jnp.max(s, axis=-1, keepdims=True)
    e = jnp.exp(s)
    attn = e * pl.reciprocal(jnp.sum(e, axis=-1, keepdims=True), approx=True)
    o = jnp.einsum('hqk,hkd->hqd', _bf16(attn), v,
                   preferred_element_type=jnp.float32)
    o = _merge_heads(o, heads)                                  # (N, inner)
    return jnp.dot(_bf16(o), wout, preferred_element_type=jnp.float32)


def _attn_full(x, g, b, wqkv, wout, *, heads, dim_head):
    """Pre-LN MHSA + residual for all rows (mid layers)."""
    inner = heads * dim_head
    h = _bf16(_layernorm(x, g, b))
    qkv = jnp.dot(h, wqkv, preferred_element_type=jnp.float32)  # (N, 3*inner)
    return x + _mha(qkv[:, :inner], qkv[:, inner:2 * inner], qkv[:, 2 * inner:],
                    wout, heads, dim_head)


def _attn_jumbo_q(x, g, b, wqkv, wout, *, heads, dim_head, n_cls):
    """Last layer: Q only for the n_cls jumbo rows, K/V for all rows."""
    inner = heads * dim_head
    h = _bf16(_layernorm(x, g, b))
    q = jnp.dot(h[:n_cls, :], wqkv[:, :inner], preferred_element_type=jnp.float32)
    kv = jnp.dot(h, wqkv[:, inner:], preferred_element_type=jnp.float32)
    return x[:n_cls, :] + _mha(q, kv[:, :inner], kv[:, inner:],
                               wout, heads, dim_head)


def _ff(x, g, b, w1, b1, w2, b2):
    """LN -> Linear -> GELU -> Linear (no residual)."""
    h = _layernorm(x, g, b)
    h = jnp.dot(_bf16(h), w1, preferred_element_type=jnp.float32) + b1
    h = _gelu(h)
    return jnp.dot(_bf16(h), w2, preferred_element_type=jnp.float32) + b2


def _jumbo_ff(jumbo, jvec, jw1, jb1, jw2, *, nj, k):
    """einops 'b (n k) d -> b n (k d)' -> FeedForward -> back, with residual."""
    d = jumbo.shape[-1]
    # TODO(synk): replace with a contiguous reshape once d is lane-aligned.
    rows = [jnp.concatenate(
                [jumbo[n * k + i:n * k + i + 1, :] for i in range(k)], axis=-1)
            for n in range(nj)]
    jflat = rows[0] if nj == 1 else jnp.concatenate(rows, axis=0)   # (nj, k*d)
    jflat = jflat + _ff(jflat, jvec[0:1, :], jvec[1:2, :], jw1, jb1, jw2,
                        jvec[2:3, :])                               # residual
    pieces = [jflat[n:n + 1, i * d:(i + 1) * d]
              for n in range(nj) for i in range(k)]
    return jnp.concatenate(pieces, axis=0)                          # (nj*k, d)


# ------------------------------------------------------------------ fused model kernel
def _jumbo_vit_kernel(
        # per-batch input
        patches_ref,                                    # (1, Np, patch_dim)
        # invariant embedding params
        cls_ref,                                        # (n_cls, dim)
        epd_ref,                                        # (2, patch_dim)  [ln1 g; b]
        ew_ref,                                         # (patch_dim, dim) bf16
        ed_ref,                                         # (3, dim)  [lin bias; ln2 g; b]
        pos_ref,                                        # (Np, dim)
        # per-layer (depth-stacked) params, block index = layer l
        wqkv_ref,                                       # (1, dim, 3*inner) bf16
        wout_ref,                                       # (1, inner, dim)   bf16
        lvec_ref,                                       # (1, 5, dim)  [ag;ab;fg;fb;fb2]
        w1_ref,                                         # (1, dim, hidden)  bf16
        b1_ref,                                         # (1, 1, hidden)
        w2_ref,                                         # (1, hidden, dim)  bf16
        # invariant shared jumbo FF params
        jvec_ref,                                       # (3, jcd)  [g; b; b2]
        jw1_ref,                                        # (jcd, jhid) bf16
        jb1_ref,                                        # (1, jhid)
        jw2_ref,                                        # (jhid, jcd) bf16
        # invariant head params
        hvec_ref,                                       # (2, dim)  [g; b]
        hw_ref,                                         # (dim, nc_pad) bf16
        hbw_ref,                                        # (1, nc_pad)
        # output + scratch
        out_ref,                                        # (1, 1, nc_pad)
        x_scr,                                          # VMEM (Ntot, dim) f32
        *, heads, dim_head, n_cls, jumbo_k, depth):
    l = pl.program_id(1)
    last = depth - 1
    nj = n_cls // jumbo_k

    # ---- step 0 of each batch element: patch embedding into the VMEM scratch
    @pl.when(l == 0)
    def _embed():
        p = patches_ref[0]                                          # (Np, patch_dim)
        h = _layernorm(p, epd_ref[0:1, :], epd_ref[1:2, :])
        h = jnp.dot(_bf16(h), ew_ref[...],
                    preferred_element_type=jnp.float32) + ed_ref[0:1, :]
        h = _layernorm(h, ed_ref[1:2, :], ed_ref[2:3, :])
        x_scr[:n_cls, :] = cls_ref[...]                 # jumbo cls tokens first
        x_scr[n_cls:, :] = h + pos_ref[...]             # then patch tokens

    # current layer's parameters (BlockSpec already selected block l)
    ga, ba = lvec_ref[0, 0:1, :], lvec_ref[0, 1:2, :]
    gf, bff = lvec_ref[0, 2:3, :], lvec_ref[0, 3:4, :]
    fb2 = lvec_ref[0, 4:5, :]
    wqkv, wout = wqkv_ref[0], wout_ref[0]

    # ---- mid layers: full attention + patch FF + shared jumbo FF, repack
    @pl.when(l != last)
    def _mid():
        x = x_scr[...]
        x = _attn_full(x, ga, ba, wqkv, wout, heads=heads, dim_head=dim_head)
        patch_tok = x[n_cls:, :]
        patch_tok = patch_tok + _ff(patch_tok, gf, bff,
                                    w1_ref[0], b1_ref[0], w2_ref[0], fb2)
        jumbo = _jumbo_ff(x[:n_cls, :], jvec_ref[...], jw1_ref[...],
                          jb1_ref[...], jw2_ref[...], nj=nj, k=jumbo_k)
        x_scr[:n_cls, :] = jumbo
        x_scr[n_cls:, :] = patch_tok

    # ---- last layer: jumbo-query-only attention, jumbo FF, fused head.
    # The patch-token FF of the last layer is dead compute in the reference.
    @pl.when(l == last)
    def _last():
        x = x_scr[...]
        jumbo = _attn_jumbo_q(x, ga, ba, wqkv, wout,
                              heads=heads, dim_head=dim_head, n_cls=n_cls)
        jumbo = _jumbo_ff(jumbo, jvec_ref[...], jw1_ref[...],
                          jb1_ref[...], jw2_ref[...], nj=nj, k=jumbo_k)
        pooled = jnp.mean(jumbo, axis=0, keepdims=True)             # (1, dim)
        e = _layernorm(pooled, hvec_ref[0:1, :], hvec_ref[1:2, :])
        out_ref[0] = (jnp.dot(_bf16(e), hw_ref[...],
                              preferred_element_type=jnp.float32) + hbw_ref[...])


# ------------------------------------------------------------------ wrapper
def _compiler_params():
    # Generation-aware VMEM budget: ~96 MiB on v5e/v6e (128 MiB physical),
    # ~48 MiB on v7x (64 MiB physical), with headroom for Mosaic internals.
    try:
        cap = int(pltpu.get_tpu_info().vmem_capacity_bytes)
    except Exception:                                   # pragma: no cover
        cap = 64 * 1024 * 1024
    limit = min(max(cap - 16 * 1024 * 1024, cap // 2), 96 * 1024 * 1024)
    return pltpu.CompilerParams(
        dimension_semantics=("parallel", "arbitrary"),
        vmem_limit_bytes=int(limit))


def jumbo_vit_forward(img, params, cfg):
    B, C, H, W = img.shape
    ps = cfg["patch_size"]
    gh, gw = H // ps, W // ps
    dim, k, nj = cfg["dim"], cfg["jumbo_cls_k"], cfg["num_jumbo_cls"]
    n_cls = nj * k
    Np = gh * gw
    Ntot = n_cls + Np
    heads, dim_head = cfg["heads"], cfg["dim_head"]
    depth = cfg["depth"]
    nc = cfg["num_classes"]

    # einops 'b c (h p1) (w p2) -> b (h w) (p1 p2 c)'  (host-side index shuffle)
    x = img.reshape(B, C, gh, ps, gw, ps)
    x = jnp.transpose(x, (0, 2, 4, 3, 5, 1))
    patches = x.reshape(B, Np, ps * ps * C)

    # jumbo cls param 'nj (k d) -> (nj k) d'; the batch broadcast happens
    # inside the kernel (written straight into the VMEM-resident token buffer).
    cls_tokens = params["jumbo_cls_token"].reshape(n_cls, dim)

    e, lyr, j, hd = params["embed"], params["layers"], params["jumbo"], params["head"]
    nc_pad = hd["w"].shape[1]

    kernel = functools.partial(_jumbo_vit_kernel, heads=heads, dim_head=dim_head,
                               n_cls=n_cls, jumbo_k=k, depth=depth)

    def const(arr):
        n = arr.ndim
        return pl.BlockSpec(arr.shape, lambda b, l, _n=n: (0,) * _n)

    def per_layer(arr):
        n = arr.ndim
        return pl.BlockSpec((1,) + tuple(arr.shape[1:]),
                            lambda b, l, _n=n: (l,) + (0,) * (_n - 1))

    def per_batch(arr):
        n = arr.ndim
        return pl.BlockSpec((1,) + tuple(arr.shape[1:]),
                            lambda b, l, _n=n: (b,) + (0,) * (_n - 1))

    args = (patches, cls_tokens,
            e["pd"], e["w"], e["d"], e["pos"],
            lyr["wqkv"], lyr["wout"], lyr["vec"], lyr["w1"], lyr["b1"], lyr["w2"],
            j["vec"], j["w1"], j["b1"], j["w2"],
            hd["vec"], hd["w"], hd["bw"])
    in_specs = [per_batch(patches), const(cls_tokens),
                const(e["pd"]), const(e["w"]), const(e["d"]), const(e["pos"]),
                per_layer(lyr["wqkv"]), per_layer(lyr["wout"]),
                per_layer(lyr["vec"]), per_layer(lyr["w1"]),
                per_layer(lyr["b1"]), per_layer(lyr["w2"]),
                const(j["vec"]), const(j["w1"]), const(j["b1"]), const(j["w2"]),
                const(hd["vec"]), const(hd["w"]), const(hd["bw"])]

    out = pl.pallas_call(
        kernel,
        out_shape=jax.ShapeDtypeStruct((B, 1, nc_pad), jnp.float32),
        grid=(B, depth),
        in_specs=in_specs,
        out_specs=pl.BlockSpec((1, 1, nc_pad), lambda b, l: (b, 0, 0)),
        scratch_shapes=[pltpu.VMEM((Ntot, dim), jnp.float32)],
        compiler_params=_compiler_params(),
    )(*args)
    return out[:, 0, :nc]                 # drop the lane padding


# ------------------------------------------------------------------ params
def init_params(key, cfg):
    dim = cfg["dim"]
    heads, dim_head = cfg["heads"], cfg["dim_head"]
    inner = heads * dim_head
    hidden = int(dim * cfg["mlp_dim"])
    ps, C = cfg["patch_size"], cfg["channels"]
    patch_dim = C * ps * ps
    g_side = cfg["image_size"] // ps
    depth = cfg["depth"]
    k, nj = cfg["jumbo_cls_k"], cfg["num_jumbo_cls"]
    jcd = dim * k
    # Faithful to the reference: FeedForward(jcd, mult=int(jcd * jumbo_ff_mult))
    #   -> hidden = int(jcd * mult)  (quadratic in jcd).
    jhid = int(jcd * int(jcd * cfg["jumbo_ff_mult"]))
    nc = cfg["num_classes"]
    nc_pad = ((nc + LANE - 1) // LANE) * LANE

    keys = iter(jax.random.split(key, 6 * depth + 16))

    def nrm(shape, scale=0.05):
        return jax.random.normal(next(keys), shape, jnp.float32) * scale

    ones = lambda n: jnp.ones((n,), jnp.float32)
    zeros = lambda n: jnp.zeros((n,), jnp.float32)

    embed = dict(
        pd=jnp.stack([ones(patch_dim), zeros(patch_dim)], axis=0),   # [ln1 g; b]
        w=nrm((patch_dim, dim)).astype(jnp.bfloat16),
        d=jnp.stack([zeros(dim), ones(dim), zeros(dim)], axis=0),    # [bias; ln2 g; b]
        pos=posemb_sincos_2d(g_side, g_side, dim))

    scale = dim_head ** -0.5
    wqkv_l, wout_l, w1_l, b1_l, w2_l, vec_l = [], [], [], [], [], []
    for _ in range(depth):
        wqkv = nrm((dim, 3 * inner))
        # fold the attention scale into the Q columns so the kernel never
        # scales the score matrix
        wqkv = wqkv.at[:, :inner].multiply(scale)
        wqkv_l.append(wqkv.astype(jnp.bfloat16))
        wout_l.append(nrm((inner, dim)).astype(jnp.bfloat16))
        w1_l.append(nrm((dim, hidden)).astype(jnp.bfloat16))
        b1_l.append(jnp.zeros((1, hidden), jnp.float32))
        w2_l.append(nrm((hidden, dim)).astype(jnp.bfloat16))
        vec_l.append(jnp.stack([ones(dim), zeros(dim),     # attn LN g / b
                                ones(dim), zeros(dim),     # ff   LN g / b
                                zeros(dim)], axis=0))      # ff second-linear bias
    layers = dict(wqkv=jnp.stack(wqkv_l), wout=jnp.stack(wout_l),
                  vec=jnp.stack(vec_l), w1=jnp.stack(w1_l),
                  b1=jnp.stack(b1_l), w2=jnp.stack(w2_l))

    jumbo = dict(
        vec=jnp.stack([ones(jcd), zeros(jcd), zeros(jcd)], axis=0),  # [g; b; b2]
        w1=nrm((jcd, jhid)).astype(jnp.bfloat16),
        b1=jnp.zeros((1, jhid), jnp.float32),
        w2=nrm((jhid, jcd)).astype(jnp.bfloat16))

    head_w = jnp.pad(nrm((dim, nc)), ((0, 0), (0, nc_pad - nc))).astype(jnp.bfloat16)
    head = dict(vec=jnp.stack([ones(dim), zeros(dim)], axis=0),
                w=head_w, bw=jnp.zeros((1, nc_pad), jnp.float32))

    return dict(embed=embed,
                # matches nn.Parameter(torch.zeros(num_jumbo_cls, jumbo_cls_dim))
                jumbo_cls_token=jnp.zeros((nj, jcd), jnp.float32),
                layers=layers, jumbo=jumbo, head=head)


# ------------------------------------------------------------------ main
if __name__ == "__main__":
    cfg = dict(image_size=16, patch_size=8, num_classes=10, dim=16, depth=2,
               heads=4, dim_head=8, mlp_dim=4.0, num_jumbo_cls=1,
               jumbo_cls_k=6, jumbo_ff_mult=0.25, channels=3)

    key = jax.random.PRNGKey(0)
    k_img, k_par = jax.random.split(key)
    img = jax.random.normal(k_img, (2, cfg["channels"], cfg["image_size"],
                                    cfg["image_size"]), jnp.float32)
    params = init_params(k_par, cfg)

    fwd = jax.jit(lambda im, pa: jumbo_vit_forward(im, pa, cfg))
    logits = jax.block_until_ready(fwd(img, params))
    assert logits.shape == (2, cfg["num_classes"])
    assert bool(jnp.all(jnp.isfinite(logits)))
    print("KERNEL_OK")
</pallas_src>

<mosaic_0001>
module attributes {stable_mosaic.version = 11 : i64} {
  func.func @_jumbo_vit_kernel(%arg0: i32, %arg1: i32, %arg2: memref<1x4x192xf32, #tpu.memory_space<vmem>>, %arg3: memref<6x16xf32, #tpu.memory_space<vmem>>, %arg4: memref<2x192xf32, #tpu.memory_space<vmem>>, %arg5: memref<192x16xbf16, #tpu.memory_space<vmem>>, %arg6: memref<3x16xf32, #tpu.memory_space<vmem>>, %arg7: memref<4x16xf32, #tpu.memory_space<vmem>>, %arg8: memref<1x16x96xbf16, #tpu.memory_space<vmem>>, %arg9: memref<1x32x16xbf16, #tpu.memory_space<vmem>>, %arg10: memref<1x5x16xf32, #tpu.memory_space<vmem>>, %arg11: memref<1x16x64xbf16, #tpu.memory_space<vmem>>, %arg12: memref<1x1x64xf32, #tpu.memory_space<vmem>>, %arg13: memref<1x64x16xbf16, #tpu.memory_space<vmem>>, %arg14: memref<3x96xf32, #tpu.memory_space<vmem>>, %arg15: memref<96x2304xbf16, #tpu.memory_space<vmem>>, %arg16: memref<1x2304xf32, #tpu.memory_space<vmem>>, %arg17: memref<2304x96xbf16, #tpu.memory_space<vmem>>, %arg18: memref<2x16xf32, #tpu.memory_space<vmem>>, %arg19: memref<16x128xbf16, #tpu.memory_space<vmem>>, %arg20: memref<1x128xf32, #tpu.memory_space<vmem>>, %arg21: memref<1x1x128xf32, #tpu.memory_space<vmem>>, %arg22: memref<10x16xf32, #tpu.memory_space<vmem>>) attributes {dimension_semantics = [#tpu.dimension_semantics<parallel>, #tpu.dimension_semantics<arbitrary>], iteration_bounds = array<i64: 2, 2>, scalar_prefetch = 0 : i64, scratch_operands = 1 : i64, tpu.core_type = #tpu.core_type<tc>, window_params = [{transform_indices = @transform_0, window_bounds = array<i64: 1, 4, 192>}, {pipeline_mode = #tpu.pipeline_mode<synchronous>, transform_indices = @transform_1, window_bounds = array<i64: 6, 16>}, {pipeline_mode = #tpu.pipeline_mode<synchronous>, transform_indices = @transform_2, window_bounds = array<i64: 2, 192>}, {pipeline_mode = #tpu.pipeline_mode<synchronous>, transform_indices = @transform_3, window_bounds = array<i64: 192, 16>}, {pipeline_mode = #tpu.pipeline_mode<synchronous>, transform_indices = @transform_4, window_bounds = array<i64: 3, 16>}, {pipeline_mode = #tpu.pipeline_mode<synchronous>, transform_indices = @transform_5, window_bounds = array<i64: 4, 16>}, {transform_indices = @transform_6, window_bounds = array<i64: 1, 16, 96>}, {transform_indices = @transform_7, window_bounds = array<i64: 1, 32, 16>}, {transform_indices = @transform_8, window_bounds = array<i64: 1, 5, 16>}, {transform_indices = @transform_9, window_bounds = array<i64: 1, 16, 64>}, {transform_indices = @transform_10, window_bounds = array<i64: 1, 1, 64>}, {transform_indices = @transform_11, window_bounds = array<i64: 1, 64, 16>}, {pipeline_mode = #tpu.pipeline_mode<synchronous>, transform_indices = @transform_12, window_bounds = array<i64: 3, 96>}, {pipeline_mode = #tpu.pipeline_mode<synchronous>, transform_indices = @transform_13, window_bounds = array<i64: 96, 2304>}, {pipeline_mode = #tpu.pipeline_mode<synchronous>, transform_indices = @transform_14, window_bounds = array<i64: 1, 2304>}, {pipeline_mode = #tpu.pipeline_mode<synchronous>, transform_indices = @transform_15, window_bounds = array<i64: 2304, 96>}, {pipeline_mode = #tpu.pipeline_mode<synchronous>, transform_indices = @transform_16, window_bounds = array<i64: 2, 16>}, {pipeline_mode = #tpu.pipeline_mode<synchronous>, transform_indices = @transform_17, window_bounds = array<i64: 16, 128>}, {pipeline_mode = #tpu.pipeline_mode<synchronous>, transform_indices = @transform_18, window_bounds = array<i64: 1, 128>}, {transform_indices = @transform_19, window_bounds = array<i64: 1, 1, 128>}]} {
    %c0_i32 = arith.constant 0 : i32
    %0 = arith.cmpi eq, %arg1, %c0_i32 : i32
    %1 = arith.extui %0 : i1 to i32
    %c0_i32_0 = arith.constant 0 : i32
    %2 = arith.cmpi ne, %1, %c0_i32_0 : i32
    scf.if %2 {
      %c0_20 = arith.constant 0 : index
      %c0_21 = arith.constant 0 : index
      %c0_22 = arith.constant 0 : index
      %23 = vector.load %arg2[%c0_20, %c0_21, %c0_22] : memref<1x4x192xf32, #tpu.memory_space<vmem>>, vector<1x4x192xf32>
      %24 = vector.shape_cast %23 : vector<1x4x192xf32> to vector<4x192xf32>
      %c0_23 = arith.constant 0 : index
      %c0_24 = arith.constant 0 : index
      %25 = vector.load %arg4[%c0_23, %c0_24] : memref<2x192xf32, #tpu.memory_space<vmem>>, vector<1x192xf32>
      %c1_25 = arith.constant 1 : index
      %c0_26 = arith.constant 0 : index
      %26 = vector.load %arg4[%c1_25, %c0_26] : memref<2x192xf32, #tpu.memory_space<vmem>>, vector<1x192xf32>
      %cst = arith.constant dense<0.000000e+00> : vector<4xf32>
      %27 = vector.multi_reduction <add>, %24, %cst [1] : vector<4x192xf32> to vector<4xf32>
      %28 = vector.shape_cast %27 : vector<4xf32> to vector<4x1xf32>
      %cst_27 = arith.constant 1.920000e+02 : f32
      %29 = vector.broadcast %cst_27 : f32 to vector<4x1xf32>
      %30 = arith.divf %28, %29 : vector<4x1xf32>
      %31 = vector.broadcast %30 : vector<4x1xf32> to vector<4x192xf32>
      %32 = arith.subf %24, %31 : vector<4x192xf32>
      %33 = arith.mulf %32, %32 : vector<4x192xf32>
      %cst_28 = arith.constant dense<0.000000e+00> : vector<4xf32>
      %34 = vector.multi_reduction <add>, %33, %cst_28 [1] : vector<4x192xf32> to vector<4xf32>
      %35 = vector.shape_cast %34 : vector<4xf32> to vector<4x1xf32>
      %cst_29 = arith.constant 1.920000e+02 : f32
      %36 = vector.broadcast %cst_29 : f32 to vector<4x1xf32>
      %37 = arith.divf %35, %36 : vector<4x1xf32>
      %38 = vector.broadcast %30 : vector<4x1xf32> to vector<4x192xf32>
      %39 = arith.subf %24, %38 : vector<4x192xf32>
      %cst_30 = arith.constant 9.99999974E-6 : f32
      %40 = vector.broadcast %cst_30 : f32 to vector<4x1xf32>
      %41 = arith.addf %37, %40 : vector<4x1xf32>
      %42 = math.rsqrt %41 : vector<4x1xf32>
      %43 = vector.broadcast %42 : vector<4x1xf32> to vector<4x192xf32>
      %44 = arith.mulf %39, %43 : vector<4x192xf32>
      %45 = vector.broadcast %25 : vector<1x192xf32> to vector<4x192xf32>
      %46 = arith.mulf %44, %45 : vector<4x192xf32>
      %47 = vector.broadcast %26 : vector<1x192xf32> to vector<4x192xf32>
      %48 = arith.addf %46, %47 : vector<4x192xf32>
      %49 = arith.truncf %48 : vector<4x192xf32> to vector<4x192xbf16>
      %c0_31 = arith.constant 0 : index
      %c0_32 = arith.constant 0 : index
      %50 = vector.load %arg5[%c0_31, %c0_32] : memref<192x16xbf16, #tpu.memory_space<vmem>>, vector<192x16xbf16>
      %cst_33 = arith.constant dense<0.000000e+00> : vector<4x16xf32>
      %51 = tpu.matmul %49, %50, %cst_33 {dimension_numbers = #tpu.dot_dimension_numbers<[1], [0], [0], [1], [0, 0, 1, 1], [], []>} : vector<4x192xbf16>, vector<192x16xbf16>, vector<4x16xf32> -> vector<4x16xf32>
      %c0_34 = arith.constant 0 : index
      %c0_35 = arith.constant 0 : index
      %52 = vector.load %arg6[%c0_34, %c0_35] : memref<3x16xf32, #tpu.memory_space<vmem>>, vector<1x16xf32>
      %53 = vector.broadcast %52 : vector<1x16xf32> to vector<4x16xf32>
      %54 = arith.addf %51, %53 : vector<4x16xf32>
      %c1_36 = arith.constant 1 : index
      %c0_37 = arith.constant 0 : index
      %55 = vector.load %arg6[%c1_36, %c0_37] : memref<3x16xf32, #tpu.memory_space<vmem>>, vector<1x16xf32>
      %c2_38 = arith.constant 2 : index
      %c0_39 = arith.constant 0 : index
      %56 = vector.load %arg6[%c2_38, %c0_39] : memref<3x16xf32, #tpu.memory_space<vmem>>, vector<1x16xf32>
      %cst_40 = arith.constant dense<0.000000e+00> : vector<4xf32>
      %57 = vector.multi_reduction <add>, %54, %cst_40 [1] : vector<4x16xf32> to vector<4xf32>
      %58 = vector.shape_cast %57 : vector<4xf32> to vector<4x1xf32>
      %cst_41 = arith.constant 1.600000e+01 : f32
      %59 = vector.broadcast %cst_41 : f32 to vector<4x1xf32>
      %60 = arith.divf %58, %59 : vector<4x1xf32>
      %61 = vector.broadcast %60 : vector<4x1xf32> to vector<4x16xf32>
      %62 = arith.subf %54, %61 : vector<4x16xf32>
      %63 = arith.mulf %62, %62 : vector<4x16xf32>
      %cst_42 = arith.constant dense<0.000000e+00> : vector<4xf32>
      %64 = vector.multi_reduction <add>, %63, %cst_42 [1] : vector<4x16xf32> to vector<4xf32>
      %65 = vector.shape_cast %64 : vector<4xf32> to vector<4x1xf32>
      %cst_43 = arith.constant 1.600000e+01 : f32
      %66 = vector.broadcast %cst_43 : f32 to vector<4x1xf32>
      %67 = arith.divf %65, %66 : vector<4x1xf32>
      %68 = vector.broadcast %60 : vector<4x1xf32> to vector<4x16xf32>
      %69 = arith.subf %54, %68 : vector<4x16xf32>
      %cst_44 = arith.constant 9.99999974E-6 : f32
      %70 = vector.broadcast %cst_44 : f32 to vector<4x1xf32>
      %71 = arith.addf %67, %70 : vector<4x1xf32>
      %72 = math.rsqrt %71 : vector<4x1xf32>
      %73 = vector.broadcast %72 : vector<4x1xf32> to vector<4x16xf32>
      %74 = arith.mulf %69, %73 : vector<4x16xf32>
      %75 = vector.broadcast %55 : vector<1x16xf32> to vector<4x16xf32>
      %76 = arith.mulf %74, %75 : vector<4x16xf32>
      %77 = vector.broadcast %56 : vector<1x16xf32> to vector<4x16xf32>
      %78 = arith.addf %76, %77 : vector<4x16xf32>
      %c0_45 = arith.constant 0 : index
      %c0_46 = arith.constant 0 : index
      %79 = vector.load %arg3[%c0_45, %c0_46] : memref<6x16xf32, #tpu.memory_space<vmem>>, vector<6x16xf32>
      %c0_47 = arith.constant 0 : index
      %c0_48 = arith.constant 0 : index
      %80 = vector.load %arg22[%c0_47, %c0_48] : memref<10x16xf32, #tpu.memory_space<vmem>>, vector<6x16xf32>
      tpu.vector_store %arg22[%c0_47, %c0_48], %79 {strides = array<i32>} : memref<10x16xf32, #tpu.memory_space<vmem>>, vector<6x16xf32>,
      %c0_49 = arith.constant 0 : index
      %c0_50 = arith.constant 0 : index
      %81 = vector.load %arg7[%c0_49, %c0_50] : memref<4x16xf32, #tpu.memory_space<vmem>>, vector<4x16xf32>
      %82 = arith.addf %78, %81 : vector<4x16xf32>
      %c6 = arith.constant 6 : index
      %c0_51 = arith.constant 0 : index
      %83 = vector.load %arg22[%c6, %c0_51] : memref<10x16xf32, #tpu.memory_space<vmem>>, vector<4x16xf32>
      tpu.vector_store %arg22[%c6, %c0_51], %82 {strides = array<i32>} : memref<10x16xf32, #tpu.memory_space<vmem>>, vector<4x16xf32>,
    } else {
    }
    %c0 = arith.constant 0 : index
    %c0_1 = arith.constant 0 : index
    %c0_2 = arith.constant 0 : index
    %3 = vector.load %arg10[%c0, %c0_1, %c0_2] : memref<1x5x16xf32, #tpu.memory_space<vmem>>, vector<1x1x16xf32>
    %4 = vector.shape_cast %3 : vector<1x1x16xf32> to vector<1x16xf32>
    %c0_3 = arith.constant 0 : index
    %c1 = arith.constant 1 : index
    %c0_4 = arith.constant 0 : index
    %5 = vector.load %arg10[%c0_3, %c1, %c0_4] : memref<1x5x16xf32, #tpu.memory_space<vmem>>, vector<1x1x16xf32>
    %6 = vector.shape_cast %5 : vector<1x1x16xf32> to vector<1x16xf32>
    %c0_5 = arith.constant 0 : index
    %c2 = arith.constant 2 : index
    %c0_6 = arith.constant 0 : index
    %7 = vector.load %arg10[%c0_5, %c2, %c0_6] : memref<1x5x16xf32, #tpu.memory_space<vmem>>, vector<1x1x16xf32>
    %8 = vector.shape_cast %7 : vector<1x1x16xf32> to vector<1x16xf32>
    %c0_7 = arith.constant 0 : index
    %c3 = arith.constant 3 : index
    %c0_8 = arith.constant 0 : index
    %9 = vector.load %arg10[%c0_7, %c3, %c0_8] : memref<1x5x16xf32, #tpu.memory_space<vmem>>, vector<1x1x16xf32>
    %10 = vector.shape_cast %9 : vector<1x1x16xf32> to vector<1x16xf32>
    %c0_9 = arith.constant 0 : index
    %c4 = arith.constant 4 : index
    %c0_10 = arith.constant 0 : index
    %11 = vector.load %arg10[%c0_9, %c4, %c0_10] : memref<1x5x16xf32, #tpu.memory_space<vmem>>, vector<1x1x16xf32>
    %12 = vector.shape_cast %11 : vector<1x1x16xf32> to vector<1x16xf32>
    %c0_11 = arith.constant 0 : index
    %c0_12 = arith.constant 0 : index
    %c0_13 = arith.constant 0 : index
    %13 = vector.load %arg8[%c0_11, %c0_12, %c0_13] : memref<1x16x96xbf16, #tpu.memory_space<vmem>>, vector<1x16x96xbf16>
    %14 = vector.shape_cast %13 : vector<1x16x96xbf16> to vector<16x96xbf16>
    %c0_14 = arith.constant 0 : index
    %c0_15 = arith.constant 0 : index
    %c0_16 = arith.constant 0 : index
    %15 = vector.load %arg9[%c0_14, %c0_15, %c0_16] : memref<1x32x16xbf16, #tpu.memory_space<vmem>>, vector<1x32x16xbf16>
    %16 = vector.shape_cast %15 : vector<1x32x16xbf16> to vector<32x16xbf16>
    %c1_i32 = arith.constant 1 : i32
    %17 = arith.cmpi ne, %arg1, %c1_i32 : i32
    %18 = arith.extui %17 : i1 to i32
    %c0_i32_17 = arith.constant 0 : i32
    %19 = arith.cmpi ne, %18, %c0_i32_17 : i32
    scf.if %19 {
      %c0_20 = arith.constant 0 : index
      %c0_21 = arith.constant 0 : index
      %23 = vector.load %arg22[%c0_20, %c0_21] : memref<10x16xf32, #tpu.memory_space<vmem>>, vector<10x16xf32>
      %cst = arith.constant dense<0.000000e+00> : vector<10xf32>
      %24 = vector.multi_reduction <add>, %23, %cst [1] : vector<10x16xf32> to vector<10xf32>
      %25 = vector.shape_cast %24 : vector<10xf32> to vector<10x1xf32>
      %cst_22 = arith.constant 1.600000e+01 : f32
      %26 = vector.broadcast %cst_22 : f32 to vector<10x1xf32>
      %27 = arith.divf %25, %26 : vector<10x1xf32>
      %28 = vector.broadcast %27 : vector<10x1xf32> to vector<10x16xf32>
      %29 = arith.subf %23, %28 : vector<10x16xf32>
      %30 = arith.mulf %29, %29 : vector<10x16xf32>
      %cst_23 = arith.constant dense<0.000000e+00> : vector<10xf32>
      %31 = vector.multi_reduction <add>, %30, %cst_23 [1] : vector<10x16xf32> to vector<10xf32>
      %32 = vector.shape_cast %31 : vector<10xf32> to vector<10x1xf32>
      %cst_24 = arith.constant 1.600000e+01 : f32
      %33 = vector.broadcast %cst_24 : f32 to vector<10x1xf32>
      %34 = arith.divf %32, %33 : vector<10x1xf32>
      %35 = vector.broadcast %27 : vector<10x1xf32> to vector<10x16xf32>
      %36 = arith.subf %23, %35 : vector<10x16xf32>
      %cst_25 = arith.constant 9.99999974E-6 : f32
      %37 = vector.broadcast %cst_25 : f32 to vector<10x1xf32>
      %38 = arith.addf %34, %37 : vector<10x1xf32>
      %39 = math.rsqrt %38 : vector<10x1xf32>
      %40 = vector.broadcast %39 : vector<10x1xf32> to vector<10x16xf32>
      %41 = arith.mulf %36, %40 : vector<10x16xf32>
      %42 = vector.broadcast %4 : vector<1x16xf32> to vector<10x16xf32>
      %43 = arith.mulf %41, %42 : vector<10x16xf32>
      %44 = vector.broadcast %6 : vector<1x16xf32> to vector<10x16xf32>
      %45 = arith.addf %43, %44 : vector<10x16xf32>
      %46 = arith.truncf %45 : vector<10x16xf32> to vector<10x16xbf16>
      %cst_26 = arith.constant dense<0.000000e+00> : vector<10x96xf32>
      %47 = tpu.matmul %46, %14, %cst_26 {dimension_numbers = #tpu.dot_dimension_numbers<[1], [0], [0], [1], [0, 0, 1, 1], [], []>} : vector<10x16xbf16>, vector<16x96xbf16>, vector<10x96xf32> -> vector<10x96xf32>
      %48 = vector.extract_strided_slice %47 {offsets = [0, 0], sizes = [10, 32], strides = [1, 1]} : vector<10x96xf32> to vector<10x32xf32>
      %49 = vector.extract_strided_slice %47 {offsets = [0, 32], sizes = [10, 32], strides = [1, 1]} : vector<10x96xf32> to vector<10x32xf32>
      %50 = vector.extract_strided_slice %47 {offsets = [0, 64], sizes = [10, 32], strides = [1, 1]} : vector<10x96xf32> to vector<10x32xf32>
      %51 = arith.truncf %48 : vector<10x32xf32> to vector<10x32xbf16>
      %52 = vector.extract_strided_slice %51 {offsets = [0, 0], sizes = [10, 8], strides = [1, 1]} : vector<10x32xbf16> to vector<10x8xbf16>
      %53 = vector.extract_strided_slice %51 {offsets = [0, 8], sizes = [10, 8], strides = [1, 1]} : vector<10x32xbf16> to vector<10x8xbf16>
      %54 = vector.extract_strided_slice %51 {offsets = [0, 16], sizes = [10, 8], strides = [1, 1]} : vector<10x32xbf16> to vector<10x8xbf16>
      %55 = vector.extract_strided_slice %51 {offsets = [0, 24], sizes = [10, 8], strides = [1, 1]} : vector<10x32xbf16> to vector<10x8xbf16>
      %56 = vector.shape_cast %52 : vector<10x8xbf16> to vector<1x10x8xbf16>
      %57 = vector.shape_cast %53 : vector<10x8xbf16> to vector<1x10x8xbf16>
      %58 = vector.shape_cast %54 : vector<10x8xbf16> to vector<1x10x8xbf16>
      %59 = vector.shape_cast %55 : vector<10x8xbf16> to vector<1x10x8xbf16>
      %60 = tpu.concatenate %56, %57, %58, %59 in 0 : vector<1x10x8xbf16>, vector<1x10x8xbf16>, vector<1x10x8xbf16>, vector<1x10x8xbf16> -> vector<4x10x8xbf16>
      %61 = arith.truncf %49 : vector<10x32xf32> to vector<10x32xbf16>
      %62 = vector.extract_strided_slice %61 {offsets = [0, 0], sizes = [10, 8], strides = [1, 1]} : vector<10x32xbf16> to vector<10x8xbf16>
      %63 = vector.extract_strided_slice %61 {offsets = [0, 8], sizes = [10, 8], strides = [1, 1]} : vector<10x32xbf16> to vector<10x8xbf16>
      %64 = vector.extract_strided_slice %61 {offsets = [0, 16], sizes = [10, 8], strides = [1, 1]} : vector<10x32xbf16> to vector<10x8xbf16>
      %65 = vector.extract_strided_slice %61 {offsets = [0, 24], sizes = [10, 8], strides = [1, 1]} : vector<10x32xbf16> to vector<10x8xbf16>
      %66 = vector.shape_cast %62 : vector<10x8xbf16> to vector<1x10x8xbf16>
      %67 = vector.shape_cast %63 : vector<10x8xbf16> to vector<1x10x8xbf16>
      %68 = vector.shape_cast %64 : vector<10x8xbf16> to vector<1x10x8xbf16>
      %69 = vector.shape_cast %65 : vector<10x8xbf16> to vector<1x10x8xbf16>
      %70 = tpu.concatenate %66, %67, %68, %69 in 0 : vector<1x10x8xbf16>, vector<1x10x8xbf16>, vector<1x10x8xbf16>, vector<1x10x8xbf16> -> vector<4x10x8xbf16>
      %71 = arith.truncf %50 : vector<10x32xf32> to vector<10x32xbf16>
      %72 = vector.extract_strided_slice %71 {offsets = [0, 0], sizes = [10, 8], strides = [1, 1]} : vector<10x32xbf16> to vector<10x8xbf16>
      %73 = vector.extract_strided_slice %71 {offsets = [0, 8], sizes = [10, 8], strides = [1, 1]} : vector<10x32xbf16> to vector<10x8xbf16>
      %74 = vector.extract_strided_slice %71 {offsets = [0, 16], sizes = [10, 8], strides = [1, 1]} : vector<10x32xbf16> to vector<10x8xbf16>
      %75 = vector.extract_strided_slice %71 {offsets = [0, 24], sizes = [10, 8], strides = [1, 1]} : vector<10x32xbf16> to vector<10x8xbf16>
      %76 = vector.shape_cast %72 : vector<10x8xbf16> to vector<1x10x8xbf16>
      %77 = vector.shape_cast %73 : vector<10x8xbf16> to vector<1x10x8xbf16>
      %78 = vector.shape_cast %74 : vector<10x8xbf16> to vector<1x10x8xbf16>
      %79 = vector.shape_cast %75 : vector<10x8xbf16> to vector<1x10x8xbf16>
      %80 = tpu.concatenate %76, %77, %78, %79 in 0 : vector<1x10x8xbf16>, vector<1x10x8xbf16>, vector<1x10x8xbf16>, vector<1x10x8xbf16> -> vector<4x10x8xbf16>
      "tpu.trace_start"() <{level = 10 : i32, message = "hqd,hkd->hqk"}> : () -> ()
      %cst_27 = arith.constant dense<0.000000e+00> : vector<4x10x10xf32>
      %81 = tpu.matmul %60, %70, %cst_27 {dimension_numbers = #tpu.dot_dimension_numbers<[2], [2], [1], [1], [0, 0, 0, 1, 1, 1], [0], [0]>} : vector<4x10x8xbf16>, vector<4x10x8xbf16>, vector<4x10x10xf32> -> vector<4x10x10xf32>
      "tpu.trace_stop"() : () -> ()
      %cst_28 = arith.constant dense<0xFF800000> : vector<4x10xf32>
      %82 = vector.multi_reduction <maximumf>, %81, %cst_28 [2] : vector<4x10x10xf32> to vector<4x10xf32>
      %83 = vector.shape_cast %82 : vector<4x10xf32> to vector<4x10x1xf32>
      %84 = vector.broadcast %83 : vector<4x10x1xf32> to vector<4x10x10xf32>
      %85 = arith.subf %81, %84 : vector<4x10x10xf32>
      %86 = math.exp %85 : vector<4x10x10xf32>
      %cst_29 = arith.constant dense<0.000000e+00> : vector<4x10xf32>
      %87 = vector.multi_reduction <add>, %86, %cst_29 [2] : vector<4x10x10xf32> to vector<4x10xf32>
      %88 = vector.shape_cast %87 : vector<4x10xf32> to vector<4x10x1xf32>
      %89 = tpu.reciprocal %88 {approx = true} : vector<4x10x1xf32> -> vector<4x10x1xf32>
      %90 = vector.broadcast %89 : vector<4x10x1xf32> to vector<4x10x10xf32>
      %91 = arith.mulf %86, %90 : vector<4x10x10xf32>
      %92 = arith.truncf %91 : vector<4x10x10xf32> to vector<4x10x10xbf16>
      "tpu.trace_start"() <{level = 10 : i32, message = "hqk,hkd->hqd"}> : () -> ()
      %cst_30 = arith.constant dense<0.000000e+00> : vector<4x10x8xf32>
      %93 = tpu.matmul %92, %80, %cst_30 {dimension_numbers = #tpu.dot_dimension_numbers<[2], [1], [1], [2], [0, 0, 0, 1, 1, 2], [0], [0]>} : vector<4x10x10xbf16>, vector<4x10x8xbf16>, vector<4x10x8xf32> -> vector<4x10x8xf32>
      "tpu.trace_stop"() : () -> ()
      %94 = vector.extract_strided_slice %93 {offsets = [0, 0, 0], sizes = [1, 10, 8], strides = [1, 1, 1]} : vector<4x10x8xf32> to vector<1x10x8xf32>
      %95 = vector.shape_cast %94 : vector<1x10x8xf32> to vector<10x8xf32>
      %96 = vector.extract_strided_slice %93 {offsets = [1, 0, 0], sizes = [1, 10, 8], strides = [1, 1, 1]} : vector<4x10x8xf32> to vector<1x10x8xf32>
      %97 = vector.shape_cast %96 : vector<1x10x8xf32> to vector<10x8xf32>
      %98 = vector.extract_strided_slice %93 {offsets = [2, 0, 0], sizes = [1, 10, 8], strides = [1, 1, 1]} : vector<4x10x8xf32> to vector<1x10x8xf32>
      %99 = vector.shape_cast %98 : vector<1x10x8xf32> to vector<10x8xf32>
      %100 = vector.extract_strided_slice %93 {offsets = [3, 0, 0], sizes = [1, 10, 8], strides = [1, 1, 1]} : vector<4x10x8xf32> to vector<1x10x8xf32>
      %101 = vector.shape_cast %100 : vector<1x10x8xf32> to vector<10x8xf32>
      %102 = tpu.concatenate %95, %97, %99, %101 in 1 : vector<10x8xf32>, vector<10x8xf32>, vector<10x8xf32>, vector<10x8xf32> -> vector<10x32xf32>
      %103 = arith.truncf %102 : vector<10x32xf32> to vector<10x32xbf16>
      %cst_31 = arith.constant dense<0.000000e+00> : vector<10x16xf32>
      %104 = tpu.matmul %103, %16, %cst_31 {dimension_numbers = #tpu.dot_dimension_numbers<[1], [0], [0], [1], [0, 0, 1, 1], [], []>} : vector<10x32xbf16>, vector<32x16xbf16>, vector<10x16xf32> -> vector<10x16xf32>
      %105 = arith.addf %23, %104 : vector<10x16xf32>
      %106 = vector.extract_strided_slice %105 {offsets = [6, 0], sizes = [4, 16], strides = [1, 1]} : vector<10x16xf32> to vector<4x16xf32>
      %c0_32 = arith.constant 0 : index
      %c0_33 = arith.constant 0 : index
      %c0_34 = arith.constant 0 : index
      %107 = vector.load %arg11[%c0_32, %c0_33, %c0_34] : memref<1x16x64xbf16, #tpu.memory_space<vmem>>, vector<1x16x64xbf16>
      %108 = vector.shape_cast %107 : vector<1x16x64xbf16> to vector<16x64xbf16>
      %c0_35 = arith.constant 0 : index
      %c0_36 = arith.constant 0 : index
      %c0_37 = arith.constant 0 : index
      %109 = vector.load %arg12[%c0_35, %c0_36, %c0_37] : memref<1x1x64xf32, #tpu.memory_space<vmem>>, vector<1x1x64xf32>
      %110 = vector.shape_cast %109 : vector<1x1x64xf32> to vector<1x64xf32>
      %c0_38 = arith.constant 0 : index
      %c0_39 = arith.constant 0 : index
      %c0_40 = arith.constant 0 : index
      %111 = vector.load %arg13[%c0_38, %c0_39, %c0_40] : memref<1x64x16xbf16, #tpu.memory_space<vmem>>, vector<1x64x16xbf16>
      %112 = vector.shape_cast %111 : vector<1x64x16xbf16> to vector<64x16xbf16>
      %cst_41 = arith.constant dense<0.000000e+00> : vector<4xf32>
      %113 = vector.multi_reduction <add>, %106, %cst_41 [1] : vector<4x16xf32> to vector<4xf32>
      %114 = vector.shape_cast %113 : vector<4xf32> to vector<4x1xf32>
      %cst_42 = arith.constant 1.600000e+01 : f32
      %115 = vector.broadcast %cst_42 : f32 to vector<4x1xf32>
      %116 = arith.divf %114, %115 : vector<4x1xf32>
      %117 = vector.broadcast %116 : vector<4x1xf32> to vector<4x16xf32>
      %118 = arith.subf %106, %117 : vector<4x16xf32>
      %119 = arith.mulf %118, %118 : vector<4x16xf32>
      %cst_43 = arith.constant dense<0.000000e+00> : vector<4xf32>
      %120 = vector.multi_reduction <add>, %119, %cst_43 [1] : vector<4x16xf32> to vector<4xf32>
      %121 = vector.shape_cast %120 : vector<4xf32> to vector<4x1xf32>
      %cst_44 = arith.constant 1.600000e+01 : f32
      %122 = vector.broadcast %cst_44 : f32 to vector<4x1xf32>
      %123 = arith.divf %121, %122 : vector<4x1xf32>
      %124 = vector.broadcast %116 : vector<4x1xf32> to vector<4x16xf32>
      %125 = arith.subf %106, %124 : vector<4x16xf32>
      %cst_45 = arith.constant 9.99999974E-6 : f32
      %126 = vector.broadcast %cst_45 : f32 to vector<4x1xf32>
      %127 = arith.addf %123, %126 : vector<4x1xf32>
      %128 = math.rsqrt %127 : vector<4x1xf32>
      %129 = vector.broadcast %128 : vector<4x1xf32> to vector<4x16xf32>
      %130 = arith.mulf %125, %129 : vector<4x16xf32>
      %131 = vector.broadcast %8 : vector<1x16xf32> to vector<4x16xf32>
      %132 = arith.mulf %130, %131 : vector<4x16xf32>
      %133 = vector.broadcast %10 : vector<1x16xf32> to vector<4x16xf32>
      %134 = arith.addf %132, %133 : vector<4x16xf32>
      %135 = arith.truncf %134 : vector<4x16xf32> to vector<4x16xbf16>
      %cst_46 = arith.constant dense<0.000000e+00> : vector<4x64xf32>
      %136 = tpu.matmul %135, %108, %cst_46 {dimension_numbers = #tpu.dot_dimension_numbers<[1], [0], [0], [1], [0, 0, 1, 1], [], []>} : vector<4x16xbf16>, vector<16x64xbf16>, vector<4x64xf32> -> vector<4x64xf32>
      %137 = vector.broadcast %110 : vector<1x64xf32> to vector<4x64xf32>
      %138 = arith.addf %136, %137 : vector<4x64xf32>
      %cst_47 = arith.constant 5.000000e-01 : f32
      %139 = vector.broadcast %cst_47 : f32 to vector<4x64xf32>
      %140 = arith.mulf %139, %138 : vector<4x64xf32>
      %cst_48 = arith.constant 0.707106769 : f32
      %141 = vector.broadcast %cst_48 : f32 to vector<4x64xf32>
      %142 = arith.mulf %138, %141 : vector<4x64xf32>
      %143 = math.erf %142 : vector<4x64xf32>
      %cst_49 = arith.constant 1.000000e+00 : f32
      %144 = vector.broadcast %cst_49 : f32 to vector<4x64xf32>
      %145 = arith.addf %144, %143 : vector<4x64xf32>
      %146 = arith.mulf %140, %145 : vector<4x64xf32>
      %147 = arith.truncf %146 : vector<4x64xf32> to vector<4x64xbf16>
      %cst_50 = arith.constant dense<0.000000e+00> : vector<4x16xf32>
      %148 = tpu.matmul %147, %112, %cst_50 {dimension_numbers = #tpu.dot_dimension_numbers<[1], [0], [0], [1], [0, 0, 1, 1], [], []>} : vector<4x64xbf16>, vector<64x16xbf16>, vector<4x16xf32> -> vector<4x16xf32>
      %149 = vector.broadcast %12 : vector<1x16xf32> to vector<4x16xf32>
      %150 = arith.addf %148, %149 : vector<4x16xf32>
      %151 = arith.addf %106, %150 : vector<4x16xf32>
      %152 = vector.extract_strided_slice %105 {offsets = [0, 0], sizes = [6, 16], strides = [1, 1]} : vector<10x16xf32> to vector<6x16xf32>
      %c0_51 = arith.constant 0 : index
      %c0_52 = arith.constant 0 : index
      %153 = vector.load %arg14[%c0_51, %c0_52] : memref<3x96xf32, #tpu.memory_space<vmem>>, vector<3x96xf32>
      %c0_53 = arith.constant 0 : index
      %c0_54 = arith.constant 0 : index
      %154 = vector.load %arg15[%c0_53, %c0_54] : memref<96x2304xbf16, #tpu.memory_space<vmem>>, vector<96x2304xbf16>
      %c0_55 = arith.constant 0 : index
      %c0_56 = arith.constant 0 : index
      %155 = vector.load %arg16[%c0_55, %c0_56] : memref<1x2304xf32, #tpu.memory_space<vmem>>, vector<1x2304xf32>
      %c0_57 = arith.constant 0 : index
      %c0_58 = arith.constant 0 : index
      %156 = vector.load %arg17[%c0_57, %c0_58] : memref<2304x96xbf16, #tpu.memory_space<vmem>>, vector<2304x96xbf16>
      %157 = vector.extract_strided_slice %152 {offsets = [0, 0], sizes = [1, 16], strides = [1, 1]} : vector<6x16xf32> to vector<1x16xf32>
      %158 = vector.extract_strided_slice %152 {offsets = [1, 0], sizes = [1, 16], strides = [1, 1]} : vector<6x16xf32> to vector<1x16xf32>
      %159 = vector.extract_strided_slice %152 {offsets = [2, 0], sizes = [1, 16], strides = [1, 1]} : vector<6x16xf32> to vector<1x16xf32>
      %160 = vector.extract_strided_slice %152 {offsets = [3, 0], sizes = [1, 16], strides = [1, 1]} : vector<6x16xf32> to vector<1x16xf32>
      %161 = vector.extract_strided_slice %152 {offsets = [4, 0], sizes = [1, 16], strides = [1, 1]} : vector<6x16xf32> to vector<1x16xf32>
      %162 = vector.extract_strided_slice %152 {offsets = [5, 0], sizes = [1, 16], strides = [1, 1]} : vector<6x16xf32> to vector<1x16xf32>
      %163 = tpu.concatenate %157, %158, %159, %160, %161, %162 in 1 : vector<1x16xf32>, vector<1x16xf32>, vector<1x16xf32>, vector<1x16xf32>, vector<1x16xf32>, vector<1x16xf32> -> vector<1x96xf32>
      %164 = vector.extract_strided_slice %153 {offsets = [0, 0], sizes = [1, 96], strides = [1, 1]} : vector<3x96xf32> to vector<1x96xf32>
      %165 = vector.extract_strided_slice %153 {offsets = [1, 0], sizes = [1, 96], strides = [1, 1]} : vector<3x96xf32> to vector<1x96xf32>
      %166 = vector.extract_strided_slice %153 {offsets = [2, 0], sizes = [1, 96], strides = [1, 1]} : vector<3x96xf32> to vector<1x96xf32>
      %cst_59 = arith.constant dense<0.000000e+00> : vector<1xf32>
      %167 = vector.multi_reduction <add>, %163, %cst_59 [1] : vector<1x96xf32> to vector<1xf32>
      %168 = vector.shape_cast %167 : vector<1xf32> to vector<1x1xf32>
      %cst_60 = arith.constant 9.600000e+01 : f32
      %169 = vector.broadcast %cst_60 : f32 to vector<1x1xf32>
      %170 = arith.divf %168, %169 : vector<1x1xf32>
      %171 = vector.broadcast %170 : vector<1x1xf32> to vector<1x96xf32>
      %172 = arith.subf %163, %171 : vector<1x96xf32>
      %173 = arith.mulf %172, %172 : vector<1x96xf32>
      %cst_61 = arith.constant dense<0.000000e+00> : vector<1xf32>
      %174 = vector.multi_reduction <add>, %173, %cst_61 [1] : vector<1x96xf32> to vector<1xf32>
      %175 = vector.shape_cast %174 : vector<1xf32> to vector<1x1xf32>
      %cst_62 = arith.constant 9.600000e+01 : f32
      %176 = vector.broadcast %cst_62 : f32 to vector<1x1xf32>
      %177 = arith.divf %175, %176 : vector<1x1xf32>
      %178 = vector.broadcast %170 : vector<1x1xf32> to vector<1x96xf32>
      %179 = arith.subf %163, %178 : vector<1x96xf32>
      %cst_63 = arith.constant 9.99999974E-6 : f32
      %180 = vector.broadcast %cst_63 : f32 to vector<1x1xf32>
      %181 = arith.addf %177, %180 : vector<1x1xf32>
      %182 = math.rsqrt %181 : vector<1x1xf32>
      %183 = vector.broadcast %182 : vector<1x1xf32> to vector<1x96xf32>
      %184 = arith.mulf %179, %183 : vector<1x96xf32>
      %185 = arith.mulf %184, %164 : vector<1x96xf32>
      %186 = arith.addf %185, %165 : vector<1x96xf32>
      %187 = arith.truncf %186 : vector<1x96xf32> to vector<1x96xbf16>
      %cst_64 = arith.constant dense<0.000000e+00> : vector<1x2304xf32>
      %188 = tpu.matmul %187, %154, %cst_64 {dimension_numbers = #tpu.dot_dimension_numbers<[1], [0], [0], [1], [0, 0, 1, 1], [], []>} : vector<1x96xbf16>, vector<96x2304xbf16>, vector<1x2304xf32> -> vector<1x2304xf32>
      %189 = arith.addf %188, %155 : vector<1x2304xf32>
      %cst_65 = arith.constant 5.000000e-01 : f32
      %190 = vector.broadcast %cst_65 : f32 to vector<1x2304xf32>
      %191 = arith.mulf %190, %189 : vector<1x2304xf32>
      %cst_66 = arith.constant 0.707106769 : f32
      %192 = vector.broadcast %cst_66 : f32 to vector<1x2304xf32>
      %193 = arith.mulf %189, %192 : vector<1x2304xf32>
      %194 = math.erf %193 : vector<1x2304xf32>
      %cst_67 = arith.constant 1.000000e+00 : f32
      %195 = vector.broadcast %cst_67 : f32 to vector<1x2304xf32>
      %196 = arith.addf %195, %194 : vector<1x2304xf32>
      %197 = arith.mulf %191, %196 : vector<1x2304xf32>
      %198 = arith.truncf %197 : vector<1x2304xf32> to vector<1x2304xbf16>
      %cst_68 = arith.constant dense<0.000000e+00> : vector<1x96xf32>
      %199 = tpu.matmul %198, %156, %cst_68 {dimension_numbers = #tpu.dot_dimension_numbers<[1], [0], [0], [1], [0, 0, 1, 1], [], []>} : vector<1x2304xbf16>, vector<2304x96xbf16>, vector<1x96xf32> -> vector<1x96xf32>
      %200 = arith.addf %199, %166 : vector<1x96xf32>
      %201 = arith.addf %163, %200 : vector<1x96xf32>
      %202 = vector.extract_strided_slice %201 {offsets = [0, 0], sizes = [1, 16], strides = [1, 1]} : vector<1x96xf32> to vector<1x16xf32>
      %203 = vector.extract_strided_slice %201 {offsets = [0, 16], sizes = [1, 16], strides = [1, 1]} : vector<1x96xf32> to vector<1x16xf32>
      %204 = vector.extract_strided_slice %201 {offsets = [0, 32], sizes = [1, 16], strides = [1, 1]} : vector<1x96xf32> to vector<1x16xf32>
      %205 = vector.extract_strided_slice %201 {offsets = [0, 48], sizes = [1, 16], strides = [1, 1]} : vector<1x96xf32> to vector<1x16xf32>
      %206 = vector.extract_strided_slice %201 {offsets = [0, 64], sizes = [1, 16], strides = [1, 1]} : vector<1x96xf32> to vector<1x16xf32>
      %207 = vector.extract_strided_slice %201 {offsets = [0, 80], sizes = [1, 16], strides = [1, 1]} : vector<1x96xf32> to vector<1x16xf32>
      %208 = tpu.concatenate %202, %203, %204, %205, %206, %207 in 0 : vector<1x16xf32>, vector<1x16xf32>, vector<1x16xf32>, vector<1x16xf32>, vector<1x16xf32>, vector<1x16xf32> -> vector<6x16xf32>
      %c0_69 = arith.constant 0 : index
      %c0_70 = arith.constant 0 : index
      %209 = vector.load %arg22[%c0_69, %c0_70] : memref<10x16xf32, #tpu.memory_space<vmem>>, vector<6x16xf32>
      tpu.vector_store %arg22[%c0_69, %c0_70], %208 {strides = array<i32>} : memref<10x16xf32, #tpu.memory_space<vmem>>, vector<6x16xf32>,
      %c6 = arith.constant 6 : index
      %c0_71 = arith.constant 0 : index
      %210 = vector.load %arg22[%c6, %c0_71] : memref<10x16xf32, #tpu.memory_space<vmem>>, vector<4x16xf32>
      tpu.vector_store %arg22[%c6, %c0_71], %151 {strides = array<i32>} : memref<10x16xf32, #tpu.memory_space<vmem>>, vector<4x16xf32>,
    } else {
    }
    %c1_i32_18 = arith.constant 1 : i32
    %20 = arith.cmpi eq, %arg1, %c1_i32_18 : i32
    %21 = arith.extui %20 : i1 to i32
    %c0_i32_19 = arith.constant 0 : i32
    %22 = arith.cmpi ne, %21, %c0_i32_19 : i32
    scf.if %22 {
      %c0_20 = arith.constant 0 : index
      %c0_21 = arith.constant 0 : index
      %23 = vector.load %arg22[%c0_20, %c0_21] : memref<10x16xf32, #tpu.memory_space<vmem>>, vector<10x16xf32>
      %cst = arith.constant dense<0.000000e+00> : vector<10xf32>
      %24 = vector.multi_reduction <add>, %23, %cst [1] : vector<10x16xf32> to vector<10xf32>
      %25 = vector.shape_cast %24 : vector<10xf32> to vector<10x1xf32>
      %cst_22 = arith.constant 1.600000e+01 : f32
      %26 = vector.broadcast %cst_22 : f32 to vector<10x1xf32>
      %27 = arith.divf %25, %26 : vector<10x1xf32>
      %28 = vector.broadcast %27 : vector<10x1xf32> to vector<10x16xf32>
      %29 = arith.subf %23, %28 : vector<10x16xf32>
      %30 = arith.mulf %29, %29 : vector<10x16xf32>
      %cst_23 = arith.constant dense<0.000000e+00> : vector<10xf32>
      %31 = vector.multi_reduction <add>, %30, %cst_23 [1] : vector<10x16xf32> to vector<10xf32>
      %32 = vector.shape_cast %31 : vector<10xf32> to vector<10x1xf32>
      %cst_24 = arith.constant 1.600000e+01 : f32
      %33 = vector.broadcast %cst_24 : f32 to vector<10x1xf32>
      %34 = arith.divf %32, %33 : vector<10x1xf32>
      %35 = vector.broadcast %27 : vector<10x1xf32> to vector<10x16xf32>
      %36 = arith.subf %23, %35 : vector<10x16xf32>
      %cst_25 = arith.constant 9.99999974E-6 : f32
      %37 = vector.broadcast %cst_25 : f32 to vector<10x1xf32>
      %38 = arith.addf %34, %37 : vector<10x1xf32>
      %39 = math.rsqrt %38 : vector<10x1xf32>
      %40 = vector.broadcast %39 : vector<10x1xf32> to vector<10x16xf32>
      %41 = arith.mulf %36, %40 : vector<10x16xf32>
      %42 = vector.broadcast %4 : vector<1x16xf32> to vector<10x16xf32>
      %43 = arith.mulf %41, %42 : vector<10x16xf32>
      %44 = vector.broadcast %6 : vector<1x16xf32> to vector<10x16xf32>
      %45 = arith.addf %43, %44 : vector<10x16xf32>
      %46 = arith.truncf %45 : vector<10x16xf32> to vector<10x16xbf16>
      %47 = vector.extract_strided_slice %46 {offsets = [0, 0], sizes = [6, 16], strides = [1, 1]} : vector<10x16xbf16> to vector<6x16xbf16>
      %48 = vector.extract_strided_slice %14 {offsets = [0, 0], sizes = [16, 32], strides = [1, 1]} : vector<16x96xbf16> to vector<16x32xbf16>
      %cst_26 = arith.constant dense<0.000000e+00> : vector<6x32xf32>
      %49 = tpu.matmul %47, %48, %cst_26 {dimension_numbers = #tpu.dot_dimension_numbers<[1], [0], [0], [1], [0, 0, 1, 1], [], []>} : vector<6x16xbf16>, vector<16x32xbf16>, vector<6x32xf32> -> vector<6x32xf32>
      %50 = vector.extract_strided_slice %14 {offsets = [0, 32], sizes = [16, 64], strides = [1, 1]} : vector<16x96xbf16> to vector<16x64xbf16>
      %cst_27 = arith.constant dense<0.000000e+00> : vector<10x64xf32>
      %51 = tpu.matmul %46, %50, %cst_27 {dimension_numbers = #tpu.dot_dimension_numbers<[1], [0], [0], [1], [0, 0, 1, 1], [], []>} : vector<10x16xbf16>, vector<16x64xbf16>, vector<10x64xf32> -> vector<10x64xf32>
      %52 = vector.extract_strided_slice %23 {offsets = [0, 0], sizes = [6, 16], strides = [1, 1]} : vector<10x16xf32> to vector<6x16xf32>
      %53 = vector.extract_strided_slice %51 {offsets = [0, 0], sizes = [10, 32], strides = [1, 1]} : vector<10x64xf32> to vector<10x32xf32>
      %54 = vector.extract_strided_slice %51 {offsets = [0, 32], sizes = [10, 32], strides = [1, 1]} : vector<10x64xf32> to vector<10x32xf32>
      %55 = arith.truncf %49 : vector<6x32xf32> to vector<6x32xbf16>
      %56 = vector.extract_strided_slice %55 {offsets = [0, 0], sizes = [6, 8], strides = [1, 1]} : vector<6x32xbf16> to vector<6x8xbf16>
      %57 = vector.extract_strided_slice %55 {offsets = [0, 8], sizes = [6, 8], strides = [1, 1]} : vector<6x32xbf16> to vector<6x8xbf16>
      %58 = vector.extract_strided_slice %55 {offsets = [0, 16], sizes = [6, 8], strides = [1, 1]} : vector<6x32xbf16> to vector<6x8xbf16>
      %59 = vector.extract_strided_slice %55 {offsets = [0, 24], sizes = [6, 8], strides = [1, 1]} : vector<6x32xbf16> to vector<6x8xbf16>
      %60 = vector.shape_cast %56 : vector<6x8xbf16> to vector<1x6x8xbf16>
      %61 = vector.shape_cast %57 : vector<6x8xbf16> to vector<1x6x8xbf16>
      %62 = vector.shape_cast %58 : vector<6x8xbf16> to vector<1x6x8xbf16>
      %63 = vector.shape_cast %59 : vector<6x8xbf16> to vector<1x6x8xbf16>
      %64 = tpu.concatenate %60, %61, %62, %63 in 0 : vector<1x6x8xbf16>, vector<1x6x8xbf16>, vector<1x6x8xbf16>, vector<1x6x8xbf16> -> vector<4x6x8xbf16>
      %65 = arith.truncf %53 : vector<10x32xf32> to vector<10x32xbf16>
      %66 = vector.extract_strided_slice %65 {offsets = [0, 0], sizes = [10, 8], strides = [1, 1]} : vector<10x32xbf16> to vector<10x8xbf16>
      %67 = vector.extract_strided_slice %65 {offsets = [0, 8], sizes = [10, 8], strides = [1, 1]} : vector<10x32xbf16> to vector<10x8xbf16>
      %68 = vector.extract_strided_slice %65 {offsets = [0, 16], sizes = [10, 8], strides = [1, 1]} : vector<10x32xbf16> to vector<10x8xbf16>
      %69 = vector.extract_strided_slice %65 {offsets = [0, 24], sizes = [10, 8], strides = [1, 1]} : vector<10x32xbf16> to vector<10x8xbf16>
      %70 = vector.shape_cast %66 : vector<10x8xbf16> to vector<1x10x8xbf16>
      %71 = vector.shape_cast %67 : vector<10x8xbf16> to vector<1x10x8xbf16>
      %72 = vector.shape_cast %68 : vector<10x8xbf16> to vector<1x10x8xbf16>
      %73 = vector.shape_cast %69 : vector<10x8xbf16> to vector<1x10x8xbf16>
      %74 = tpu.concatenate %70, %71, %72, %73 in 0 : vector<1x10x8xbf16>, vector<1x10x8xbf16>, vector<1x10x8xbf16>, vector<1x10x8xbf16> -> vector<4x10x8xbf16>
      %75 = arith.truncf %54 : vector<10x32xf32> to vector<10x32xbf16>
      %76 = vector.extract_strided_slice %75 {offsets = [0, 0], sizes = [10, 8], strides = [1, 1]} : vector<10x32xbf16> to vector<10x8xbf16>
      %77 = vector.extract_strided_slice %75 {offsets = [0, 8], sizes = [10, 8], strides = [1, 1]} : vector<10x32xbf16> to vector<10x8xbf16>
      %78 = vector.extract_strided_slice %75 {offsets = [0, 16], sizes = [10, 8], strides = [1, 1]} : vector<10x32xbf16> to vector<10x8xbf16>
      %79 = vector.extract_strided_slice %75 {offsets = [0, 24], sizes = [10, 8], strides = [1, 1]} : vector<10x32xbf16> to vector<10x8xbf16>
      %80 = vector.shape_cast %76 : vector<10x8xbf16> to vector<1x10x8xbf16>
      %81 = vector.shape_cast %77 : vector<10x8xbf16> to vector<1x10x8xbf16>
      %82 = vector.shape_cast %78 : vector<10x8xbf16> to vector<1x10x8xbf16>
      %83 = vector.shape_cast %79 : vector<10x8xbf16> to vector<1x10x8xbf16>
      %84 = tpu.concatenate %80, %81, %82, %83 in 0 : vector<1x10x8xbf16>, vector<1x10x8xbf16>, vector<1x10x8xbf16>, vector<1x10x8xbf16> -> vector<4x10x8xbf16>
      "tpu.trace_start"() <{level = 10 : i32, message = "hqd,hkd->hqk"}> : () -> ()
      %cst_28 = arith.constant dense<0.000000e+00> : vector<4x6x10xf32>
      %85 = tpu.matmul %64, %74, %cst_28 {dimension_numbers = #tpu.dot_dimension_numbers<[2], [2], [1], [1], [0, 0, 0, 1, 1, 1], [0], [0]>} : vector<4x6x8xbf16>, vector<4x10x8xbf16>, vector<4x6x10xf32> -> vector<4x6x10xf32>
      "tpu.trace_stop"() : () -> ()
      %cst_29 = arith.constant dense<0xFF800000> : vector<4x6xf32>
      %86 = vector.multi_reduction <maximumf>, %85, %cst_29 [2] : vector<4x6x10xf32> to vector<4x6xf32>
      %87 = vector.shape_cast %86 : vector<4x6xf32> to vector<4x6x1xf32>
      %88 = vector.broadcast %87 : vector<4x6x1xf32> to vector<4x6x10xf32>
      %89 = arith.subf %85, %88 : vector<4x6x10xf32>
      %90 = math.exp %89 : vector<4x6x10xf32>
      %cst_30 = arith.constant dense<0.000000e+00> : vector<4x6xf32>
      %91 = vector.multi_reduction <add>, %90, %cst_30 [2] : vector<4x6x10xf32> to vector<4x6xf32>
      %92 = vector.shape_cast %91 : vector<4x6xf32> to vector<4x6x1xf32>
      %93 = tpu.reciprocal %92 {approx = true} : vector<4x6x1xf32> -> vector<4x6x1xf32>
      %94 = vector.broadcast %93 : vector<4x6x1xf32> to vector<4x6x10xf32>
      %95 = arith.mulf %90, %94 : vector<4x6x10xf32>
      %96 = arith.truncf %95 : vector<4x6x10xf32> to vector<4x6x10xbf16>
      "tpu.trace_start"() <{level = 10 : i32, message = "hqk,hkd->hqd"}> : () -> ()
      %cst_31 = arith.constant dense<0.000000e+00> : vector<4x6x8xf32>
      %97 = tpu.matmul %96, %84, %cst_31 {dimension_numbers = #tpu.dot_dimension_numbers<[2], [1], [1], [2], [0, 0, 0, 1, 1, 2], [0], [0]>} : vector<4x6x10xbf16>, vector<4x10x8xbf16>, vector<4x6x8xf32> -> vector<4x6x8xf32>
      "tpu.trace_stop"() : () -> ()
      %98 = vector.extract_strided_slice %97 {offsets = [0, 0, 0], sizes = [1, 6, 8], strides = [1, 1, 1]} : vector<4x6x8xf32> to vector<1x6x8xf32>
      %99 = vector.shape_cast %98 : vector<1x6x8xf32> to vector<6x8xf32>
      %100 = vector.extract_strided_slice %97 {offsets = [1, 0, 0], sizes = [1, 6, 8], strides = [1, 1, 1]} : vector<4x6x8xf32> to vector<1x6x8xf32>
      %101 = vector.shape_cast %100 : vector<1x6x8xf32> to vector<6x8xf32>
      %102 = vector.extract_strided_slice %97 {offsets = [2, 0, 0], sizes = [1, 6, 8], strides = [1, 1, 1]} : vector<4x6x8xf32> to vector<1x6x8xf32>
      %103 = vector.shape_cast %102 : vector<1x6x8xf32> to vector<6x8xf32>
      %104 = vector.extract_strided_slice %97 {offsets = [3, 0, 0], sizes = [1, 6, 8], strides = [1, 1, 1]} : vector<4x6x8xf32> to vector<1x6x8xf32>
      %105 = vector.shape_cast %104 : vector<1x6x8xf32> to vector<6x8xf32>
      %106 = tpu.concatenate %99, %101, %103, %105 in 1 : vector<6x8xf32>, vector<6x8xf32>, vector<6x8xf32>, vector<6x8xf32> -> vector<6x32xf32>
      %107 = arith.truncf %106 : vector<6x32xf32> to vector<6x32xbf16>
      %cst_32 = arith.constant dense<0.000000e+00> : vector<6x16xf32>
      %108 = tpu.matmul %107, %16, %cst_32 {dimension_numbers = #tpu.dot_dimension_numbers<[1], [0], [0], [1], [0, 0, 1, 1], [], []>} : vector<6x32xbf16>, vector<32x16xbf16>, vector<6x16xf32> -> vector<6x16xf32>
      %109 = arith.addf %52, %108 : vector<6x16xf32>
      %c0_33 = arith.constant 0 : index
      %c0_34 = arith.constant 0 : index
      %110 = vector.load %arg14[%c0_33, %c0_34] : memref<3x96xf32, #tpu.memory_space<vmem>>, vector<3x96xf32>
      %c0_35 = arith.constant 0 : index
      %c0_36 = arith.constant 0 : index
      %111 = vector.load %arg15[%c0_35, %c0_36] : memref<96x2304xbf16, #tpu.memory_space<vmem>>, vector<96x2304xbf16>
      %c0_37 = arith.constant 0 : index
      %c0_38 = arith.constant 0 : index
      %112 = vector.load %arg16[%c0_37, %c0_38] : memref<1x2304xf32, #tpu.memory_space<vmem>>, vector<1x2304xf32>
      %c0_39 = arith.constant 0 : index
      %c0_40 = arith.constant 0 : index
      %113 = vector.load %arg17[%c0_39, %c0_40] : memref<2304x96xbf16, #tpu.memory_space<vmem>>, vector<2304x96xbf16>
      %114 = vector.extract_strided_slice %109 {offsets = [0, 0], sizes = [1, 16], strides = [1, 1]} : vector<6x16xf32> to vector<1x16xf32>
      %115 = vector.extract_strided_slice %109 {offsets = [1, 0], sizes = [1, 16], strides = [1, 1]} : vector<6x16xf32> to vector<1x16xf32>
      %116 = vector.extract_strided_slice %109 {offsets = [2, 0], sizes = [1, 16], strides = [1, 1]} : vector<6x16xf32> to vector<1x16xf32>
      %117 = vector.extract_strided_slice %109 {offsets = [3, 0], sizes = [1, 16], strides = [1, 1]} : vector<6x16xf32> to vector<1x16xf32>
      %118 = vector.extract_strided_slice %109 {offsets = [4, 0], sizes = [1, 16], strides = [1, 1]} : vector<6x16xf32> to vector<1x16xf32>
      %119 = vector.extract_strided_slice %109 {offsets = [5, 0], sizes = [1, 16], strides = [1, 1]} : vector<6x16xf32> to vector<1x16xf32>
      %120 = tpu.concatenate %114, %115, %116, %117, %118, %119 in 1 : vector<1x16xf32>, vector<1x16xf32>, vector<1x16xf32>, vector<1x16xf32>, vector<1x16xf32>, vector<1x16xf32> -> vector<1x96xf32>
      %121 = vector.extract_strided_slice %110 {offsets = [0, 0], sizes = [1, 96], strides = [1, 1]} : vector<3x96xf32> to vector<1x96xf32>
      %122 = vector.extract_strided_slice %110 {offsets = [1, 0], sizes = [1, 96], strides = [1, 1]} : vector<3x96xf32> to vector<1x96xf32>
      %123 = vector.extract_strided_slice %110 {offsets = [2, 0], sizes = [1, 96], strides = [1, 1]} : vector<3x96xf32> to vector<1x96xf32>
      %cst_41 = arith.constant dense<0.000000e+00> : vector<1xf32>
      %124 = vector.multi_reduction <add>, %120, %cst_41 [1] : vector<1x96xf32> to vector<1xf32>
      %125 = vector.shape_cast %124 : vector<1xf32> to vector<1x1xf32>
      %cst_42 = arith.constant 9.600000e+01 : f32
      %126 = vector.broadcast %cst_42 : f32 to vector<1x1xf32>
      %127 = arith.divf %125, %126 : vector<1x1xf32>
      %128 = vector.broadcast %127 : vector<1x1xf32> to vector<1x96xf32>
      %129 = arith.subf %120, %128 : vector<1x96xf32>
      %130 = arith.mulf %129, %129 : vector<1x96xf32>
      %cst_43 = arith.constant dense<0.000000e+00> : vector<1xf32>
      %131 = vector.multi_reduction <add>, %130, %cst_43 [1] : vector<1x96xf32> to vector<1xf32>
      %132 = vector.shape_cast %131 : vector<1xf32> to vector<1x1xf32>
      %cst_44 = arith.constant 9.600000e+01 : f32
      %133 = vector.broadcast %cst_44 : f32 to vector<1x1xf32>
      %134 = arith.divf %132, %133 : vector<1x1xf32>
      %135 = vector.broadcast %127 : vector<1x1xf32> to vector<1x96xf32>
      %136 = arith.subf %120, %135 : vector<1x96xf32>
      %cst_45 = arith.constant 9.99999974E-6 : f32
      %137 = vector.broadcast %cst_45 : f32 to vector<1x1xf32>
      %138 = arith.addf %134, %137 : vector<1x1xf32>
      %139 = math.rsqrt %138 : vector<1x1xf32>
      %140 = vector.broadcast %139 : vector<1x1xf32> to vector<1x96xf32>
      %141 = arith.mulf %136, %140 : vector<1x96xf32>
      %142 = arith.mulf %141, %121 : vector<1x96xf32>
      %143 = arith.addf %142, %122 : vector<1x96xf32>
      %144 = arith.truncf %143 : vector<1x96xf32> to vector<1x96xbf16>
      %cst_46 = arith.constant dense<0.000000e+00> : vector<1x2304xf32>
      %145 = tpu.matmul %144, %111, %cst_46 {dimension_numbers = #tpu.dot_dimension_numbers<[1], [0], [0], [1], [0, 0, 1, 1], [], []>} : vector<1x96xbf16>, vector<96x2304xbf16>, vector<1x2304xf32> -> vector<1x2304xf32>
      %146 = arith.addf %145, %112 : vector<1x2304xf32>
      %cst_47 = arith.constant 5.000000e-01 : f32
      %147 = vector.broadcast %cst_47 : f32 to vector<1x2304xf32>
      %148 = arith.mulf %147, %146 : vector<1x2304xf32>
      %cst_48 = arith.constant 0.707106769 : f32
      %149 = vector.broadcast %cst_48 : f32 to vector<1x2304xf32>
      %150 = arith.mulf %146, %149 : vector<1x2304xf32>
      %151 = math.erf %150 : vector<1x2304xf32>
      %cst_49 = arith.constant 1.000000e+00 : f32
      %152 = vector.broadcast %cst_49 : f32 to vector<1x2304xf32>
      %153 = arith.addf %152, %151 : vector<1x2304xf32>
      %154 = arith.mulf %148, %153 : vector<1x2304xf32>
      %155 = arith.truncf %154 : vector<1x2304xf32> to vector<1x2304xbf16>
      %cst_50 = arith.constant dense<0.000000e+00> : vector<1x96xf32>
      %156 = tpu.matmul %155, %113, %cst_50 {dimension_numbers = #tpu.dot_dimension_numbers<[1], [0], [0], [1], [0, 0, 1, 1], [], []>} : vector<1x2304xbf16>, vector<2304x96xbf16>, vector<1x96xf32> -> vector<1x96xf32>
      %157 = arith.addf %156, %123 : vector<1x96xf32>
      %158 = arith.addf %120, %157 : vector<1x96xf32>
      %159 = vector.extract_strided_slice %158 {offsets = [0, 0], sizes = [1, 16], strides = [1, 1]} : vector<1x96xf32> to vector<1x16xf32>
      %160 = vector.extract_strided_slice %158 {offsets = [0, 16], sizes = [1, 16], strides = [1, 1]} : vector<1x96xf32> to vector<1x16xf32>
      %161 = vector.extract_strided_slice %158 {offsets = [0, 32], sizes = [1, 16], strides = [1, 1]} : vector<1x96xf32> to vector<1x16xf32>
      %162 = vector.extract_strided_slice %158 {offsets = [0, 48], sizes = [1, 16], strides = [1, 1]} : vector<1x96xf32> to vector<1x16xf32>
      %163 = vector.extract_strided_slice %158 {offsets = [0, 64], sizes = [1, 16], strides = [1, 1]} : vector<1x96xf32> to vector<1x16xf32>
      %164 = vector.extract_strided_slice %158 {offsets = [0, 80], sizes = [1, 16], strides = [1, 1]} : vector<1x96xf32> to vector<1x16xf32>
      %165 = tpu.concatenate %159, %160, %161, %162, %163, %164 in 0 : vector<1x16xf32>, vector<1x16xf32>, vector<1x16xf32>, vector<1x16xf32>, vector<1x16xf32>, vector<1x16xf32> -> vector<6x16xf32>
      %cst_51 = arith.constant dense<0.000000e+00> : vector<16xf32>
      %166 = vector.multi_reduction <add>, %165, %cst_51 [0] : vector<6x16xf32> to vector<16xf32>
      %167 = vector.shape_cast %166 : vector<16xf32> to vector<1x16xf32>
      %cst_52 = arith.constant 6.000000e+00 : f32
      %168 = vector.broadcast %cst_52 : f32 to vector<1x16xf32>
      %169 = arith.divf %167, %168 : vector<1x16xf32>
      %c0_53 = arith.constant 0 : index
      %c0_54 = arith.constant 0 : index
      %170 = vector.load %arg18[%c0_53, %c0_54] : memref<2x16xf32, #tpu.memory_space<vmem>>, vector<1x16xf32>
      %c1_55 = arith.constant 1 : index
      %c0_56 = arith.constant 0 : index
      %171 = vector.load %arg18[%c1_55, %c0_56] : memref<2x16xf32, #tpu.memory_space<vmem>>, vector<1x16xf32>
      %cst_57 = arith.constant dense<0.000000e+00> : vector<1xf32>
      %172 = vector.multi_reduction <add>, %169, %cst_57 [1] : vector<1x16xf32> to vector<1xf32>
      %173 = vector.shape_cast %172 : vector<1xf32> to vector<1x1xf32>
      %cst_58 = arith.constant 1.600000e+01 : f32
      %174 = vector.broadcast %cst_58 : f32 to vector<1x1xf32>
      %175 = arith.divf %173, %174 : vector<1x1xf32>
      %176 = vector.broadcast %175 : vector<1x1xf32> to vector<1x16xf32>
      %177 = arith.subf %169, %176 : vector<1x16xf32>
      %178 = arith.mulf %177, %177 : vector<1x16xf32>
      %cst_59 = arith.constant dense<0.000000e+00> : vector<1xf32>
      %179 = vector.multi_reduction <add>, %178, %cst_59 [1] : vector<1x16xf32> to vector<1xf32>
      %180 = vector.shape_cast %179 : vector<1xf32> to vector<1x1xf32>
      %cst_60 = arith.constant 1.600000e+01 : f32
      %181 = vector.broadcast %cst_60 : f32 to vector<1x1xf32>
      %182 = arith.divf %180, %181 : vector<1x1xf32>
      %183 = vector.broadcast %175 : vector<1x1xf32> to vector<1x16xf32>
      %184 = arith.subf %169, %183 : vector<1x16xf32>
      %cst_61 = arith.constant 9.99999974E-6 : f32
      %185 = vector.broadcast %cst_61 : f32 to vector<1x1xf32>
      %186 = arith.addf %182, %185 : vector<1x1xf32>
      %187 = math.rsqrt %186 : vector<1x1xf32>
      %188 = vector.broadcast %187 : vector<1x1xf32> to vector<1x16xf32>
      %189 = arith.mulf %184, %188 : vector<1x16xf32>
      %190 = arith.mulf %189, %170 : vector<1x16xf32>
      %191 = arith.addf %190, %171 : vector<1x16xf32>
      %192 = arith.truncf %191 : vector<1x16xf32> to vector<1x16xbf16>
      %c0_62 = arith.constant 0 : index
      %c0_63 = arith.constant 0 : index
      %193 = vector.load %arg19[%c0_62, %c0_63] : memref<16x128xbf16, #tpu.memory_space<vmem>>, vector<16x128xbf16>
      %cst_64 = arith.constant dense<0.000000e+00> : vector<1x128xf32>
      %194 = tpu.matmul %192, %193, %cst_64 {dimension_numbers = #tpu.dot_dimension_numbers<[1], [0], [0], [1], [0, 0, 1, 1], [], []>} : vector<1x16xbf16>, vector<16x128xbf16>, vector<1x128xf32> -> vector<1x128xf32>
      %c0_65 = arith.constant 0 : index
      %c0_66 = arith.constant 0 : index
      %195 = vector.load %arg20[%c0_65, %c0_66] : memref<1x128xf32, #tpu.memory_space<vmem>>, vector<1x128xf32>
      %196 = arith.addf %194, %195 : vector<1x128xf32>
      %c0_67 = arith.constant 0 : index
      %c0_68 = arith.constant 0 : index
      %c0_69 = arith.constant 0 : index
      %197 = vector.load %arg21[%c0_67, %c0_68, %c0_69] : memref<1x1x128xf32, #tpu.memory_space<vmem>>, vector<1x1x128xf32>
      %198 = vector.shape_cast %197 : vector<1x1x128xf32> to vector<1x128xf32>
      %199 = vector.shape_cast %196 : vector<1x128xf32> to vector<1x1x128xf32>
      tpu.vector_store %arg21[%c0_67, %c0_68, %c0_69], %199 {strides = array<i32>} : memref<1x1x128xf32, #tpu.memory_space<vmem>>, vector<1x1x128xf32>,
    } else {
    }
    return
  }
  func.func @transform_0(%arg0: i32, %arg1: i32) -> (i32, i32, i32) {
    %c0_i32 = arith.constant 0 : i32
    %c0_i32_0 = arith.constant 0 : i32
    %c0_i32_1 = arith.constant 0 : i32
    return %arg0, %c0_i32, %c0_i32_0 : i32, i32, i32
  }
  func.func @transform_1(%arg0: i32, %arg1: i32) -> (i32, i32) {
    %c0_i32 = arith.constant 0 : i32
    %c0_i32_0 = arith.constant 0 : i32
    %c0_i32_1 = arith.constant 0 : i32
    return %c0_i32, %c0_i32_0 : i32, i32
  }
  func.func @transform_2(%arg0: i32, %arg1: i32) -> (i32, i32) {
    %c0_i32 = arith.constant 0 : i32
    %c0_i32_0 = arith.constant 0 : i32
    %c0_i32_1 = arith.constant 0 : i32
    return %c0_i32, %c0_i32_0 : i32, i32
  }
  func.func @transform_3(%arg0: i32, %arg1: i32) -> (i32, i32) {
    %c0_i32 = arith.constant 0 : i32
    %c0_i32_0 = arith.constant 0 : i32
    %c0_i32_1 = arith.constant 0 : i32
    return %c0_i32, %c0_i32_0 : i32, i32
  }
  func.func @transform_4(%arg0: i32, %arg1: i32) -> (i32, i32) {
    %c0_i32 = arith.constant 0 : i32
    %c0_i32_0 = arith.constant 0 : i32
    %c0_i32_1 = arith.constant 0 : i32
    return %c0_i32, %c0_i32_0 : i32, i32
  }
  func.func @transform_5(%arg0: i32, %arg1: i32) -> (i32, i32) {
    %c0_i32 = arith.constant 0 : i32
    %c0_i32_0 = arith.constant 0 : i32
    %c0_i32_1 = arith.constant 0 : i32
    return %c0_i32, %c0_i32_0 : i32, i32
  }
  func.func @transform_6(%arg0: i32, %arg1: i32) -> (i32, i32, i32) {
    %c0_i32 = arith.constant 0 : i32
    %c0_i32_0 = arith.constant 0 : i32
    %c0_i32_1 = arith.constant 0 : i32
    return %arg1, %c0_i32, %c0_i32_0 : i32, i32, i32
  }
  func.func @transform_7(%arg0: i32, %arg1: i32) -> (i32, i32, i32) {
    %c0_i32 = arith.constant 0 : i32
    %c0_i32_0 = arith.constant 0 : i32
    %c0_i32_1 = arith.constant 0 : i32
    return %arg1, %c0_i32, %c0_i32_0 : i32, i32, i32
  }
  func.func @transform_8(%arg0: i32, %arg1: i32) -> (i32, i32, i32) {
    %c0_i32 = arith.constant 0 : i32
    %c0_i32_0 = arith.constant 0 : i32
    %c0_i32_1 = arith.constant 0 : i32
    return %arg1, %c0_i32, %c0_i32_0 : i32, i32, i32
  }
  func.func @transform_9(%arg0: i32, %arg1: i32) -> (i32, i32, i32) {
    %c0_i32 = arith.constant 0 : i32
    %c0_i32_0 = arith.constant 0 : i32
    %c0_i32_1 = arith.constant 0 : i32
    return %arg1, %c0_i32, %c0_i32_0 : i32, i32, i32
  }
  func.func @transform_10(%arg0: i32, %arg1: i32) -> (i32, i32, i32) {
    %c0_i32 = arith.constant 0 : i32
    %c0_i32_0 = arith.constant 0 : i32
    %c0_i32_1 = arith.constant 0 : i32
    return %arg1, %c0_i32, %c0_i32_0 : i32, i32, i32
  }
  func.func @transform_11(%arg0: i32, %arg1: i32) -> (i32, i32, i32) {
    %c0_i32 = arith.constant 0 : i32
    %c0_i32_0 = arith.constant 0 : i32
    %c0_i32_1 = arith.constant 0 : i32
    return %arg1, %c0_i32, %c0_i32_0 : i32, i32, i32
  }
  func.func @transform_12(%arg0: i32, %arg1: i32) -> (i32, i32) {
    %c0_i32 = arith.constant 0 : i32
    %c0_i32_0 = arith.constant 0 : i32
    %c0_i32_1 = arith.constant 0 : i32
    return %c0_i32, %c0_i32_0 : i32, i32
  }
  func.func @transform_13(%arg0: i32, %arg1: i32) -> (i32, i32) {
    %c0_i32 = arith.constant 0 : i32
    %c0_i32_0 = arith.constant 0 : i32
    %c0_i32_1 = arith.constant 0 : i32
    return %c0_i32, %c0_i32_0 : i32, i32
  }
  func.func @transform_14(%arg0: i32, %arg1: i32) -> (i32, i32) {
    %c0_i32 = arith.constant 0 : i32
    %c0_i32_0 = arith.constant 0 : i32
    %c0_i32_1 = arith.constant 0 : i32
    return %c0_i32, %c0_i32_0 : i32, i32
  }
  func.func @transform_15(%arg0: i32, %arg1: i32) -> (i32, i32) {
    %c0_i32 = arith.constant 0 : i32
    %c0_i32_0 = arith.constant 0 : i32
    %c0_i32_1 = arith.constant 0 : i32
    return %c0_i32, %c0_i32_0 : i32, i32
  }
  func.func @transform_16(%arg0: i32, %arg1: i32) -> (i32, i32) {
    %c0_i32 = arith.constant 0 : i32
    %c0_i32_0 = arith.constant 0 : i32
    %c0_i32_1 = arith.constant 0 : i32
    return %c0_i32, %c0_i32_0 : i32, i32
  }
  func.func @transform_17(%arg0: i32, %arg1: i32) -> (i32, i32) {
    %c0_i32 = arith.constant 0 : i32
    %c0_i32_0 = arith.constant 0 : i32
    %c0_i32_1 = arith.constant 0 : i32
    return %c0_i32, %c0_i32_0 : i32, i32
  }
  func.func @transform_18(%arg0: i32, %arg1: i32) -> (i32, i32) {
    %c0_i32 = arith.constant 0 : i32
    %c0_i32_0 = arith.constant 0 : i32
    %c0_i32_1 = arith.constant 0 : i32
    return %c0_i32, %c0_i32_0 : i32, i32
  }
  func.func @transform_19(%arg0: i32, %arg1: i32) -> (i32, i32, i32) {
    %c0_i32 = arith.constant 0 : i32
    %c0_i32_0 = arith.constant 0 : i32
    %c0_i32_1 = arith.constant 0 : i32
    return %arg0, %c0_i32, %c0_i32_0 : i32, i32, i32
  }
}

</mosaic_0001>

<bundles_post_ra>
// kernel: _lambda_.1
= control target key start
LH: loop header
LB: loop body
LE: loop exit
PB: predicated region body
PF: predicated region fallthrough
CT: control target
= control target key end

     0   :  { %s13105_s0 = inlined_call_operand.vmem [shape: f32[2,4,192], index: 0, kind: input, shape index: {}]   ;;  %s13106_s1 = inlined_call_operand.vmem [shape: f32[6,16], index: 1, kind: input, shape index: {}]   ;;  %s13107_s2 = inlined_call_operand.vmem [shape: f32[2,192], index: 2, kind: input, shape index: {}]   ;;  %s13108_s3 = inlined_call_operand.vmem [shape: bf16[192,16], index: 3, kind: input, shape index: {}]   ;;  %s13109_s4 = inlined_call_operand.vmem [shape: f32[3,16], index: 4, kind: input, shape index: {}]   ;;  %s13110_s5 = inlined_call_operand.vmem [shape: f32[4,16], index: 5, kind: input, shape index: {}]   ;;  %s13111_s6 = inlined_call_operand.vmem [shape: bf16[2,16,96], index: 6, kind: input, shape index: {}]   ;;  %s13112_s7 = inlined_call_operand.vmem [shape: bf16[2,32,16], index: 7, kind: input, shape index: {}]   ;;  %s13113_s8 = inlined_call_operand.vmem [shape: f32[2,5,16], index: 8, kind: input, shape index: {}]   ;;  %s13114_s9 = inlined_call_operand.vmem [shape: bf16[2,16,64], index: 9, kind: input, shape index: {}]   ;;  %s13115_s10 = inlined_call_operand.vmem [shape: f32[2,1,64], index: 10, kind: input, shape index: {}]   ;;  %s13116_s11 = inlined_call_operand.vmem [shape: bf16[2,64,16], index: 11, kind: input, shape index: {}]   ;;  %s13117_s12 = inlined_call_operand.vmem [shape: f32[3,96], index: 12, kind: input, shape index: {}]   ;;  %s13118_s13 = inlined_call_operand.vmem [shape: bf16[96,2304], index: 13, kind: input, shape index: {}]   ;;  %s13119_s14 = inlined_call_operand.vmem [shape: f32[1,2304], index: 14, kind: input, shape index: {}]   ;;  %s13120_s15 = inlined_call_operand.vmem [shape: bf16[2304,96], index: 15, kind: input, shape index: {}]   ;;  %s13121_s16 = inlined_call_operand.vmem [shape: f32[2,16], index: 16, kind: input, shape index: {}]   ;;  %s13122_s17 = inlined_call_operand.vmem [shape: bf16[16,128], index: 17, kind: input, shape index: {}]   ;;  %s13123_s18 = inlined_call_operand.vmem [shape: f32[1,128], index: 18, kind: input, shape index: {}]   ;;  %s13124_s19 = inlined_call_operand.hbm [shape: f32[2,1,128], index: 19, kind: output, shape index: {}]  }
   0x1   :  { %13144 = sst [smem:[#allocation17_spill]] %s13105_s0 }
   0x2   :  { %13145 = sst [smem:[#allocation18_spill]] %s13106_s1 }
   0x3   :  { %13146 = sst [smem:[#allocation19_spill]] %s13107_s2 }
   0x4   :  { %13147 = sst [smem:[#allocation20_spill]] %s13108_s3 }
   0x5   :  { %13148 = sst [smem:[#allocation21_spill]] %s13111_s6 }
   0x6   :  { %13149 = sst [smem:[#allocation22_spill]] %s13119_s14 }
   0x7   :  { %13150 = sst [smem:[#allocation23_spill]] %s13120_s15 }
   0x8   :  { %13151 = sst [smem:[#allocation24_spill]] %s13121_s16 }
   0x9   :  { %13152 = sst [smem:[#allocation25_spill]] %s13122_s17 }
   0xa   :  { %13153 = sst [smem:[#allocation26_spill]] %s13123_s18 }
   0xb   :  { %13154 = sst [smem:[#allocation27_spill]] %s13124_s19 }
   0xc   :  { %24 = vsyncpa [#allocation4], 0 }
   0xd   :  { %26 = vsyncpa [#allocation4 + $0x1], 0  ;;  %s10735_s0 = smov 0   ;;  %s10737_s30 = smov 0  }
   0xe   :  { %s10739_s20 = smov 0   ;;  %s10741_s21 = smov 0  }
   0xf   :  { %s10743_s1 = smov 0   ;;  %s10745_s22 = smov 0  }
  0x10   :  { %s10747_s2 = smov 0   ;;  %s10749_s23 = smov 0  }
  0x11 LB: > { %13155 = sst [smem:[#allocation6_spill]] %s10574_s0  ;;  %s8403_s24 = sadd.s32 4294967295, %s10602_s23   ;;  %s10602_s23 = sphi %s10749_s23, %s32_s23   ;;  %s10598_s2 = sphi %s10747_s2, %s13197_s2   ;;  %s10594_s22 = sphi %s10745_s22, %s13193_s22   ;;  %s10590_s1 = sphi %s10743_s1, %s13192_s1   ;;  %s10586_s21 = sphi %s10741_s21, %s13191_s21   ;;  %s10582_s20 = sphi %s10739_s20, %s13190_s20   ;;  %s10578_s30 = sphi %s10737_s30, %s13196_s30   ;;  %s10574_s0 = sphi %s10735_s0, %s13195_s0  }
  0x12   : > { %13156 = sst [smem:[#allocation7_spill]] %s10582_s20  ;;  %s8404_s25 = sadd.s32 4294967294, %s10602_s23  }
  0x13   : > { %13157 = sst [smem:[#allocation8_spill]] %s10590_s1  ;;  %s41_s3 = sadd.s32 1, %s10594_s22 }
  0x14   : > { %13158 = sst [smem:[#allocation9_spill]] %s10594_s22  ;;  %p42_p0 = scmp.ge.s32.totalorder %s41_s3, 2 }
  0x15   : > { %13159 = sst [smem:[#allocation10_spill]] %s10598_s2  ;;  %s44_s26 = sadd.s32 1, %s10598_s2 }
  0x16   : > { %13160 = sst [smem:[#allocation11_spill]] %s10602_s23  ;;  %p495_p1 = scmp.ne.s32.totalorder %s10582_s20, %s10578_s30 }
  0x17   : > { %p496_p2 = scmp.eq.s32.totalorder %s8403_s24, 3  ;;  %s13199_s3 = smov (%p42_p0, %s41_s3), 0 }
  0x18   : > { %13161 = sst [smem:[#allocation12_spill]] %s13199_s3  ;;  %s13201_s26 = smov (!%p42_p0, %s44_s26), %s10598_s2 }
  0x19   : > { %p10784_p3 = por %p496_p2, %p495_p1  ;;  %p501_p4 = scmp.ne.s32.totalorder %s10578_s30, %s10574_s0 }
  0x1a   : > { %p46_p5 = scmp.ge.s32.totalorder %s13201_s26, 2  ;;  %p502_p6 = scmp.eq.s32.totalorder %s8404_s25, 3 }
  0x1b   : > { %s13162_s27 = scalar_select %p10784_p3, 1, 0 }
  0x1c   : > { %p8407_p7 = scmp.ge.s32.totalorder %s10602_s23, 1  ;;  %p609_p8 = scmp.lt.s32.totalorder %s10602_s23, 5 }
  0x1d   : > { %13163 = sst [smem:[#allocation13_spill]] %s13162_s27  ;;  %s13203_s26 = smov (%p46_p5, %s13201_s26), 0 }
  0x1e   : > { %13164 = sst [smem:[#allocation14_spill]] %s13203_s26  ;;  %p10794_p9 = por %p502_p6, %p501_p4 }
  0x1f   : > { %p610_p10 = pnand %p8407_p7, %p609_p8  ;;  %s482_s29 = ssub.s32 %s10598_s2, %s13203_s26 }
  0x20   : > { %s13165_s28 = scalar_select %p10794_p9, 1, 0 }
  0x21   : > { %s485_s24 = sadd.s32 1, %s10582_s20  ;;  %p483_p11 = scmp.eq.s32.totalorder %s482_s29, 0 }
  0x22   : > { %13166 = sst [smem:[#allocation15_spill]] %s13165_s28  ;;  %613 = sbr.rel (%p610_p10) target bundleno = 7575 (0x1d97), region = 96 }
  0x23   : > { %s10802_s3 = scalar_select %p483_p11, %s10582_s20, %s485_s24  }
  0x24   : > { %p691_p12 = scmp.lt.s32.totalorder (!%p610_p10), %s10590_s1, 1  ;;  %p696_p13 = scmp.lt.s32.totalorder (!%p610_p10), %s10586_s21, 1 }
  0x25   : > { %13167 = sst [smem:[#allocation16_spill]] %s10802_s3  ;;  %s13169_s6 = sld [smem:[#allocation21_spill]] (!%p610_p10) }
  0x26   : > { %s13168_s2 = sld [smem:[#allocation17_spill]] (!%p610_p10)  ;;  %p8419_p0 = scmp.ne.s32.totalorder (!%p610_p10), %s10586_s21, 0 }
  0x29   : > { %s692_s22 = scalar_select %p691_p12, %s10590_s1, 1 }
  0x2a   : > { %s10809_s0 = scalar_select %p696_p13, %s10586_s21, 1 }
  0x2b   : > { %s9004_s29 = sshll.u32 %s692_s22, 3  ;;  %727 = sbr.rel (%p8419_p0) target bundleno = 906 (0x38a), region = 100  ;;  %vm735_vm0 = vcmask (!%p8419_p0), 1043456   ;;  %vm737_vm1 = vcmask (!%p8419_p0), 519168   ;;  %v10604_v6 = vmov (!%p8419_p0), 0   ;;  %v748_v13 = vlaneseq (!%p8419_p0) }
  0x2c   : > { %s695_s3 = scalar_lea.vmem %s13168_s2, %s9004_s29  ;;  %s10815_s20 = sshll.u32 %s10809_s0, 3  ;;  %910 = vmatprep.subr.bf16.mxu0 (!%p8419_p0), %v10604_v6  ;;  %v10605_v11 = vmov (!%p8419_p0), 839922192   ;;  %vm906_vm2 = vcmask (!%p8419_p0), 523264   ;;  %v8421_v54 = vld [vmem:[%s13109_s4] ss:$0 sm:$0xff] (!%p8419_p0) }
  0x2d   : > { %s10821_s23 = scalar_lea.vmem %s13169_s6, %s10815_s20  ;;  %s9006_s19 = sshll.u32 %s10809_s0, 4  ;;  %v728_v0 = vld [vmem:[%s695_s3] sm:$0xff] (!%p8419_p0)  ;;  %v746_v12 = vunpack.c.l.s4 (!%p8419_p0), %v10605_v11  ;;  %v749_v15 = vshrl.u32 (!%p8419_p0), %v748_v13, 7  ;;  %vm952_vm3 = vcmask (!%p8419_p0), 125952   ;;  %vm978_vm4 = vcmask (!%p8419_p0), 128000  }
  0x2e   : > { %s10827_s18 = scalar_lea.vmem %s13112_s7, %s9006_s19  ;;  %s10833_s2 = scalar_lea.vmem %s13113_s8, %s10815_s20  ;;  %v733_v1 = vcombine.high (!%p8419_p0), %v728_v0, %v728_v0  ;;  %v736_v2 = vsel (!%p8419_p0), %vm735_vm0, %v728_v0, 0.0  ;;  %v980_v11 = vld [vmem:[%s13110_s5] sm:$0xf] (!%p8419_p0) }
  0x2f   : > { %s714_s24 = scalar_lea.vmem %s13114_s9, %s10815_s20  ;;  %s717_s6 = scalar_lea.vmem %s13115_s10, %s10809_s0  ;;  %v747_v14 = vunpack.c.0.s8 (!%p8419_p0), %v746_v12  ;;  %v779_v36 = vsub.s32 (!%p8419_p0), 0, %v749_v15  ;;  %v783_v37 = vsub.s32 (!%p8419_p0), 1, %v749_v15 }
  0x30   : > { %s9008_s17 = sshll.u32 %s10809_s0, 5  ;;  %s13170_s19 = sand.u32 1, %s10578_s30   ;;  %v738_v3 = vsel (!%p8419_p0), %vm737_vm1, %v733_v1, 0.0 }
  0x31   : > { %s10847_s1 = scalar_lea.vmem %s13116_s11, %s9008_s17  ;;  %s10851_s27 = scalar_lea.vmem [#allocation3], %s13170_s19  ;;  %v739_v4 = vadd.f32 (!%p8419_p0), %v738_v3, %v736_v2  ;;  %v750_v16 = vsub.s32 (!%p8419_p0), %v747_v14, %v749_v15 }
  0x32   : > { %s13171_s15 = sld [smem:[#allocation20_spill]]  ;;  %s13172_s29 = sld [smem:[#allocation19_spill]] }
  0x33   : > { %740 = vadd.xlane.f32.xlu0 %v739_v4  ;;  %s13173_s22 = sld [smem:[#allocation18_spill]] }
  0x38   : > { %v9714_v5 = vld [vmem:[%s13171_s15] sm:$0xff]   ;;  %v9715_v7 = vld [vmem:[%s13171_s15 + $0x8] sm:$0xff]   ;;  %v9716_v8 = vld [vmem:[%s13171_s15 + $0x10] sm:$0xff]  }
  0x39   : > { %911 = vmatpush1.bf16.msra.mxu0 %v9714_v5  ;;  %v9717_v9 = vld [vmem:[%s13171_s15 + $0x18] sm:$0xff]   ;;  %v9718_v10 = vld [vmem:[%s13171_s15 + $0x20] sm:$0xff]   ;;  %v9719_v26 = vld [vmem:[%s13171_s15 + $0x28] sm:$0xff]  }
  0x3a   : > { %912 = vmatprep.subr.bf16.mxu0 %v10604_v6  ;;  %v9720_v27 = vld [vmem:[%s13171_s15 + $0x30] sm:$0xff]   ;;  %v9721_v28 = vld [vmem:[%s13171_s15 + $0x38] sm:$0xff]   ;;  %v9722_v29 = vld [vmem:[%s13171_s15 + $0x40] sm:$0xff]  }
  0x3b   : > { %v9723_v30 = vld [vmem:[%s13171_s15 + $0x48] sm:$0xff]   ;;  %v9724_v31 = vld [vmem:[%s13171_s15 + $0x50] sm:$0xff]   ;;  %v9725_v32 = vld [vmem:[%s13171_s15 + $0x58] sm:$0xff]  }
  0x3c   : > { %v729_v38 = vld [vmem:[%s13172_s29] ss:$2 sm:$0x3]  ;;  %v8420_v39 = vld [vmem:[%s13172_s29 + $0x1] ss:$2 sm:$0x3] }
  0x3d   : > { %913 = vmatpush1.bf16.msra.mxu0 %v9715_v7  ;;  %v780_v40 = vrot.slane %v729_v38, %v779_v36  ;;  %v784_v41 = vrot.slane %v729_v38, %v783_v37  ;;  %v792_v42 = vrot.slane %v8420_v39, %v779_v36  ;;  %v796_v43 = vrot.slane %v8420_v39, %v783_v37  ;;  %v977_v2 = vld [vmem:[%s13173_s22] sm:$0x3f] }
  0x3e   : > { %914 = vmatprep.subr.bf16.mxu0 %v10604_v6  ;;  %979 = vst.msk [vmem:[#allocation2] sm:$0x3f] %vm978_vm4, %v977_v2  ;;  %v8435_v7 = vld [vmem:[%s13109_s4 + $0x1] ss:$0 sm:$0xff] }
  0x3f   : > { %v785_v46 = vcombine.low %v780_v40, %v784_v41  ;;  %v797_v48 = vcombine.low %v792_v42, %v796_v43 }
  0x41   : > { %915 = vmatpush1.bf16.msra.mxu0 %v9716_v8 }
  0x42   : > { %916 = vmatprep.subr.bf16.mxu0 %v10604_v6 }
  0x45   : > { %917 = vmatpush1.bf16.msra.mxu0 %v9717_v9  ;;  %v8436_v9 = vld [vmem:[%s13109_s4 + $0x2] ss:$0 sm:$0xff] }
  0x46   : > { %918 = vmatprep.subr.bf16.mxu0 %v10604_v6 }
  0x49   : > { %919 = vmatpush1.bf16.msra.mxu0 %v9718_v10 }
  0x4a   : > { %920 = vmatprep.subr.bf16.mxu0 %v10604_v6 }
  0x4d   : > { %921 = vmatpush1.bf16.msra.mxu0 %v9719_v26 }
  0x4e   : > { %922 = vmatprep.subr.bf16.mxu0 %v10604_v6 }
  0x51   : > { %923 = vmatpush1.bf16.msra.mxu0 %v9720_v27 }
  0x52   : > { %924 = vmatprep.subr.bf16.mxu0 %v10604_v6 }
  0x55   : > { %925 = vmatpush1.bf16.msra.mxu0 %v9721_v28 }
  0x56   : > { %926 = vmatprep.subr.bf16.mxu0 %v10604_v6 }
  0x59   : > { %927 = vmatpush1.bf16.msra.mxu0 %v9722_v29 }
  0x5a   : > { %928 = vmatprep.subr.bf16.mxu0 %v10604_v6 }
  0x5d   : > { %929 = vmatpush1.bf16.msra.mxu0 %v9723_v30 }
  0x5e   : > { %930 = vmatprep.subr.bf16.mxu0 %v10604_v6 }
  0x61   : > { %931 = vmatpush1.bf16.msra.mxu0 %v9724_v31 }
  0x62   : > { %932 = vmatprep.subr.bf16.mxu0 %v10604_v6 }
  0x65   : > { %933 = vmatpush1.bf16.msra.mxu0 %v9725_v32 }
  0xc0   : > { %v741_v17 = vpop.xlane.xlu0 %740 }
  0xc1   : > { %v743_v18 = vmul.f32 0.0052083335, %v741_v17 }
  0xc3   : > { %v751_v19 = vrot.slane %v743_v18, %v750_v16 }
  0xc5   : > { %v753_v20 = vsub.f32 %v728_v0, %v751_v19 }
  0xc7   : > { %v754_v21 = vmul.f32 %v753_v20, %v753_v20 }
  0xc9   : > { %v756_v22 = vcombine.high %v754_v21, %v754_v21  ;;  %v758_v23 = vsel %vm735_vm0, %v754_v21, 0.0 }
  0xcb   : > { %v759_v24 = vsel %vm737_vm1, %v756_v22, 0.0 }
  0xcc   : > { %v760_v25 = vadd.f32 %v759_v24, %v758_v23 }
  0xce   : > { %761 = vadd.xlane.f32.xlu0 %v760_v25 }
 0x15b   : > { %v762_v33 = vpop.xlane.xlu0 %761 }
 0x15c   : > { %v763_v34 = vmul.f32 0.0052083335, %v762_v33 }
 0x15e   : > { %v764_v35 = vadd.f32 1e-05, %v763_v34 }
 0x160   : > { %9726 = vrsqrt.f32 %v764_v35 }
 0x16a   : > { %v9727_v44 = vpop.eup %9726 }
 0x16b   : > { %v773_v45 = vrot.slane %v9727_v44, %v750_v16 }
 0x16d   : > { %v775_v47 = vmul.f32 %v773_v45, %v753_v20 }
 0x16f   : > { %v787_v49 = vmul.f32 %v785_v46, %v775_v47 }
 0x171   : > { %v799_v50 = vadd.f32 %v797_v48, %v787_v49 }
 0x173   : > { %v801_v51 = vcombine.high %v799_v50, %v799_v50  ;;  %v803_v53 = vpack.c.bf16 %v799_v50, %v799_v50 }
 0x175   : > { %v804_v52 = vpack.c.bf16 %v801_v51, %v801_v51 }
 0x177   : > { %8434 = vmatprep.mubr.msk.bf16.mxu0 %vm906_vm2, %v804_v52 }
 0x178   : > { %943 = vmatmul.mubr.bf16.vlgmr.msra.gmra.mrb[0].mxu0 %v803_v53 }
 0x24b   : > { %v944_v55 = vpop.f32.mrb[0].mxu0 }
 0x24c   : > { %v945_v56 = vadd.f32 %v8421_v54, %v944_v55  ;;  %v946_v57 = vpop.f32.mrb[1].mxu0 }
 0x24d   : > { %v947_v58 = vpop.f32.mrb[2].mxu0 }
 0x24e   : > { %v948_v59 = vpop.f32.mrb[3].mxu0  ;;  %v953_v60 = vsel %vm952_vm3, %v945_v56, 0.0 }
 0x24f   : > { %954 = vadd.xlane.f32.xlu1 %v953_v60 }
 0x2dc   : > { %v955_v61 = vpop.xlane.xlu1 %954 }
 0x2dd   : > { %v957_v62 = vmul.f32 0.0625, %v955_v61 }
 0x2df   : > { %v958_v63 = vsub.f32 %v945_v56, %v957_v62 }
 0x2e1   : > { %v959_v0 = vmul.f32 %v958_v63, %v958_v63 }
 0x2e3   : > { %v960_v1 = vsel %vm952_vm3, %v959_v0, 0.0 }
 0x2e4   : > { %961 = vadd.xlane.f32.xlu1 %v960_v1 }
 0x371   : > { %v962_v3 = vpop.xlane.xlu1 %961 }
 0x372   : > { %v963_v4 = vmul.f32 0.0625, %v962_v3 }
 0x374   : > { %v964_v5 = vadd.f32 1e-05, %v963_v4 }
 0x376   : > { %9728 = vrsqrt.f32 %v964_v5 }
 0x380   : > { %v9729_v6 = vpop.eup %9728 }
 0x381   : > { %v966_v8 = vmul.f32 %v9729_v6, %v958_v63 }
 0x383   : > { %v971_v10 = vmul.f32 %v8435_v7, %v966_v8 }
 0x385   : > { %v976_v12 = vadd.f32 %v8436_v9, %v971_v10 }
 0x387   : > { %v981_v13 = vadd.f32 %v980_v11, %v976_v12 }
 0x389   : > { %982 = vst.msk [vmem:[#allocation2 + $0x6] sm:$0xf] %vm952_vm3, %v981_v13 }
 0x38a PF: > { %v10919_v14 = vld [vmem:[%s10833_s2] sm:$0x1]  ;;  %v10922_v15 = vld [vmem:[%s10833_s2 + $0x1] sm:$0x1]  ;;  %v10925_v16 = vld [vmem:[%s10833_s2 + $0x2] ss:$0 sm:$0xff] }
 0x38b   : > { %v10928_v17 = vld [vmem:[%s10833_s2 + $0x3] ss:$0 sm:$0xff]  ;;  %v10931_v18 = vld [vmem:[%s10833_s2 + $0x4] ss:$0 sm:$0xff]  ;;  %v10946_v23 = vld [vmem:[%s10827_s18 + $0x8] sm:$0xf] }
 0x38c   : > { %v10934_v19 = vld [vmem:[%s10821_s23] sm:$0xf]  ;;  %v10937_v20 = vld [vmem:[%s10821_s23 + $0x4] sm:$0xf]  ;;  %v10949_v24 = vld [vmem:[%s10827_s18 + $0xc] sm:$0xf] }
 0x38d   : > { %v10940_v21 = vld [vmem:[%s10827_s18] sm:$0xf]  ;;  %v10943_v22 = vld [vmem:[%s10827_s18 + $0x4] sm:$0xf]  ;;  %p8437_p1 = scmp.eq.s32.totalorder %s10586_s21, 1 }
 0x38e   : > { %vm1000_vm5 = vcmask (!%p8437_p1), 130048   ;;  %vm1004_vm6 = vcmask (!%p8437_p1), 123904   ;;  %v8438_v39 = vcombine.low (!%p8437_p1), %v10934_v19, %v10937_v20  ;;  %v10606_v40 = vmov (!%p8437_p1), 0.0   ;;  %s10608_s18 = smov (!%p8437_p1), 112   ;;  %s10609_s23 = smov (!%p8437_p1), 120  }
 0x38f   : > { %997 = sbr.rel (%p8437_p1) target bundleno = 4107 (0x100b), region = 104  ;;  %9458 = vmatprep.subr.bf16.mxu0 (!%p8437_p1), %v10606_v40  ;;  %vm10607_vm7 = vmmov (!%p8437_p1), 0   ;;  %9476 = vmatprep.subr.bf16.mxu1 (!%p8437_p1), %v10606_v40  ;;  %v1029_v45 = vlaneseq (!%p8437_p1)  ;;  %s10610_s2 = smov (!%p8437_p1), 104   ;;  %vm1102_vm8 = vcmask (!%p8437_p1), 64512   ;;  %vm1297_vm9 = vcmask (!%p8437_p1), 80896  }
 0x390   : > { %v998_v25 = vld [vmem:[#allocation2] sm:$0xff] (!%p8437_p1)  ;;  %v999_v26 = vld [vmem:[#allocation2 + $0x8] sm:$0x3] (!%p8437_p1)  ;;  %9460 = vmatprep.mubr.msk.bf16.mxu0 (!%p8437_p1), %vm10607_vm7, %v10606_v40  ;;  %9459 = vmatpush3.bf16.msra.mxu0 (!%p8437_p1), %v8438_v39  ;;  %s10611_s14 = smov (!%p8437_p1), 96   ;;  %vm1301_vm10 = vcmask (!%p8437_p1), 74752   ;;  %s10612_s17 = smov (!%p8437_p1), 64  }
 0x391   : > { %v1001_v27 = vsel (!%p8437_p1), %vm1000_vm5, %v998_v25, 0.0  ;;  %v1005_v28 = vsel (!%p8437_p1), %vm1004_vm6, %v999_v26, 0.0  ;;  %9464 = vmatprep.subr.bf16.mxu0 (!%p8437_p1), %v10606_v40  ;;  %9478 = vmatprep.mubr.msk.bf16.mxu1 (!%p8437_p1), %vm10607_vm7, %v10606_v40  ;;  %v10965_v48 = vshrl.u32 (!%p8437_p1), %v1029_v45, 7  ;;  %vm1396_vm11 = vcmask (!%p8437_p1), 1044480   ;;  %s10613_s22 = smov (!%p8437_p1), 8   ;;  %s10614_s3 = smov (!%p8437_p1), 16  }
 0x392   : > { %1002 = vadd.xlane.f32.xlu0 (!%p8437_p1), %v1001_v27  ;;  %s10615_s26 = smov (!%p8437_p1), 24   ;;  %vm1616_vm12 = vcmask (!%p8437_p1), 195584   ;;  %vm1632_vm13 = vcmask (!%p8437_p1), 261120   ;;  %vm1690_vm14 = vcmask (!%p8437_p1), 130054   ;;  %s10616_s28 = smov (!%p8437_p1), 32   ;;  %vm2293_vm15 = vcmask (!%p8437_p1), 392192  }
 0x393   : > { %v10968_v49 = vsub.s32 (!%p8437_p1), 0, %v10965_v48  ;;  %s10617_s25 = smov (!%p8437_p1), 48   ;;  %s10618_s19 = smov (!%p8437_p1), 80   ;;  %vm1821_vm0 = vcmask (!%p8437_p1), 523264   ;;  %vm2296_vm1 = vcmask (!%p8437_p1), 654336   ;;  %vm2298_vm2 = vcmask (!%p8437_p1), 778240  }
 0x394   : > { %vm2952_vm3 = vcmask (!%p8437_p1), 785408   ;;  %s13175_s0 = sld [smem:[#allocation22_spill]] (!%p8437_p1)  ;;  %vm4681_vm4 = vcmask (!%p8437_p1), 1040384  }
 0x395   : > { %v1032_v52 = vrot.slane (!%p8437_p1), %v10919_v14, %v10968_v49  ;;  %v1038_v56 = vrot.slane (!%p8437_p1), %v10922_v15, %v10968_v49 }
 0x396   : > { %1006 = vadd.xlane.f32.xlu0 %v1005_v28 }
 0x41f   : > { %v1003_v29 = vpop.xlane.xlu0 %1002 }
 0x420   : > { %v1009_v30 = vmul.f32 0.0625, %v1003_v29 }
 0x422   : > { %v1011_v31 = vsub.f32 %v998_v25, %v1009_v30 }
 0x423   : > { %v1007_v32 = vpop.xlane.xlu0 %1006 }
 0x424   : > { %v1010_v33 = vmul.f32 0.0625, %v1007_v32  ;;  %v1013_v34 = vmul.f32 %v1011_v31, %v1011_v31 }
 0x426   : > { %v1012_v35 = vsub.f32 %v999_v26, %v1010_v33  ;;  %v1015_v36 = vsel %vm1000_vm5, %v1013_v34, 0.0 }
 0x427   : > { %1016 = vadd.xlane.f32.xlu1 %v1015_v36 }
 0x428   : > { %v1014_v37 = vmul.f32 %v1012_v35, %v1012_v35 }
 0x42a   : > { %v1018_v38 = vsel %vm1004_vm6, %v1014_v37, 0.0 }
 0x42b   : > { %1019 = vadd.xlane.f32.xlu1 %v1018_v38 }
 0x4b4   : > { %v1017_v41 = vpop.xlane.xlu1 %1016 }
 0x4b5   : > { %v1021_v42 = vmul.f32 0.0625, %v1017_v41 }
 0x4b7   : > { %v1023_v43 = vadd.f32 1e-05, %v1021_v42 }
 0x4b8   : > { %v1020_v44 = vpop.xlane.xlu1 %1019 }
 0x4b9   : > { %10056 = vrsqrt.f32 %v1023_v43  ;;  %v1022_v46 = vmul.f32 0.0625, %v1020_v44 }
 0x4bb   : > { %v1024_v47 = vadd.f32 1e-05, %v1022_v46 }
 0x4bd   : > { %10058 = vrsqrt.f32 %v1024_v47 }
 0x4c3   : > { %v10057_v50 = vpop.eup %10056 }
 0x4c4   : > { %v1027_v51 = vmul.f32 %v10057_v50, %v1011_v31 }
 0x4c6   : > { %v1033_v55 = vmul.f32 %v1032_v52, %v1027_v51 }
 0x4c7   : > { %v10059_v53 = vpop.eup %10058 }
 0x4c8   : > { %v1028_v54 = vmul.f32 %v10059_v53, %v1012_v35  ;;  %v1039_v58 = vadd.f32 %v1038_v56, %v1033_v55 }
 0x4ca   : > { %v1034_v57 = vmul.f32 %v1032_v52, %v1028_v54 }
 0x4cc   : > { %v1040_v59 = vadd.f32 %v1038_v56, %v1034_v57 }
 0x4ce   : > { %v1041_v60 = vpack.c.bf16 %v1040_v59, %v1039_v58 }
 0x4d0   : > { %9461 = vmatmul.mubr.msk.bf16.vlgmr.msra.gmra.mrb[0].mxu0 %vm1000_vm5, %v1041_v60 }
 0x4d1   : > { %9466 = vmatprep.mubr.msk.bf16.mxu0 %vm10607_vm7, %v10606_v40 }
 0x5a3   : > { %v1085_v61 = vpop.f32.mrb[0].mxu0 }
 0x5a4   : > { %v9462_v62 = vpop.f32.mrb[1].mxu0 }
 0x5a5   : > { %v1088_v63 = vpop.f32.mrb[2].mxu0 }
 0x5a6   : > { %v10977_v0 = vpack.c.bf16 %v1088_v63, %v1085_v61  ;;  %v9463_v1 = vpop.f32.mrb[3].mxu0 }
 0x5a8   : > { %1096 = vrot.lane.b32.xlu1 %v10977_v0, %s10608_s18  ;;  %1094 = vrot.lane.b32.xlu0 %v10977_v0, %s10609_s23 }
 0x5ac   : > { %1098 = vrot.lane.b32.xlu1 %v10977_v0, %s10610_s2  ;;  %s13174_s2 = sld [smem:[#allocation23_spill]] }
 0x5b0   : > { %1100 = vrot.lane.b32.xlu1 %v10977_v0, %s10611_s14 }
 0x61a   : > { %v10985_v2 = vpop.permute.xlu1 %1096  ;;  %v10987_v3 = vpop.permute.xlu0 %1094 }
 0x61b   : > { %1199 = vrot.lane.b32.xlu1 %v10985_v2, %s10611_s14  ;;  %1150 = vrot.lane.b32.xlu0 %v10987_v3, %s10611_s14 }
 0x61e   : > { %v10993_v4 = vpop.permute.xlu1 %1098 }
 0x61f   : > { %1248 = vrot.lane.b32.xlu0 %v10993_v4, %s10611_s14 }
 0x622   : > { %v1101_v5 = vpop.permute.xlu1 %1100 }
 0x623   : > { %v1107_v6 = vsel %vm1102_vm8, %v1101_v5, 0 }
 0x624   : > { %9465 = vmatpush3.bf16.xpose.msra.mxu0 %v1107_v6 }
 0x625   : > { %9470 = vmatprep.subr.bf16.mxu0 %v10606_v40 }
 0x62b   : > { %9467 = vmatmul.mubr.msk.bf16.vlgmr.msra.gmra.mrb[4].mxu0 %vm1102_vm8, %v10977_v0 }
 0x62c   : > { %9472 = vmatprep.mubr.msk.bf16.mxu0 %vm10607_vm7, %v10606_v40 }
 0x68d   : > { %v1200_v7 = vpop.permute.xlu1 %1199  ;;  %v1151_v8 = vpop.permute.xlu0 %1150 }
 0x68e   : > { %v1156_v9 = vsel %vm1102_vm8, %v1151_v8, 0  ;;  %v1205_v10 = vsel %vm1102_vm8, %v1200_v7, 0 }
 0x68f   : > { %9471 = vmatpush3.bf16.xpose.msra.mxu0 %v1156_v9  ;;  %9477 = vmatpush3.bf16.xpose.msra.mxu1 %v1205_v10 }
 0x690   : > { %9482 = vmatprep.subr.bf16.mxu0 %v10606_v40  ;;  %9488 = vmatprep.subr.bf16.mxu1 %v10606_v40 }
 0x691   : > { %v1249_v11 = vpop.permute.xlu0 %1248 }
 0x692   : > { %v1254_v12 = vsel %vm1102_vm8, %v1249_v11, 0 }
 0x696   : > { %9473 = vmatmul.mubr.msk.bf16.vlgmr.msra.gmra.mrb[8].mxu0 %vm1102_vm8, %v10987_v3  ;;  %9479 = vmatmul.mubr.msk.bf16.vlgmr.msra.gmra.mrb[0].mxu1 %vm1102_vm8, %v10985_v2 }
 0x697   : > { %9483 = vmatpush3.bf16.xpose.msra.mxu0 %v1254_v12  ;;  %9484 = vmatprep.mubr.msk.bf16.mxu0 %vm10607_vm7, %v10606_v40 }
 0x698   : > { %9490 = vmatprep.mubr.msk.bf16.mxu1 %vm10607_vm7, %v10606_v40  ;;  %9494 = vmatprep.subr.bf16.mxu0 %v10606_v40 }
 0x69e   : > { %9485 = vmatmul.mubr.msk.bf16.vlgmr.msra.gmra.mrb[12].mxu0 %vm1102_vm8, %v10993_v4 }
 0x69f   : > { %9496 = vmatprep.mubr.msk.bf16.mxu0 %vm10607_vm7, %v10606_v40 }
 0x6fe   : > { %v1143_v13 = vpop.f32.mrb[4].mxu0 }
 0x6ff   : > { %v9468_v25 = vpop.f32.mrb[5].mxu0  ;;  %v1298_v26 = vsel %vm1297_vm9, %v1143_v13, -inf }
 0x700   : > { %1299 = vmax.xlane.f32.xlu1 %v1298_v26  ;;  %v1146_v27 = vpop.f32.mrb[6].mxu0 }
 0x701   : > { %v9469_v28 = vpop.f32.mrb[7].mxu0  ;;  %v1302_v29 = vsel %vm1301_vm10, %v1146_v27, -inf }
 0x702   : > { %1303 = vmax.xlane.f32.xlu0 %v1302_v29 }
 0x769   : > { %v1192_v30 = vpop.f32.mrb[8].mxu0  ;;  %v1241_v31 = vpop.f32.mrb[0].mxu1 }
 0x76a   : > { %v9474_v32 = vpop.f32.mrb[9].mxu0  ;;  %v9480_v33 = vpop.f32.mrb[1].mxu1  ;;  %v1311_v34 = vsel %vm1297_vm9, %v1241_v31, -inf  ;;  %v1305_v35 = vsel %vm1297_vm9, %v1192_v30, -inf }
 0x76b   : > { %v1244_v36 = vpop.f32.mrb[2].mxu1  ;;  %1312 = vmax.xlane.f32.xlu1 %v1311_v34  ;;  %1306 = vmax.xlane.f32.xlu0 %v1305_v35  ;;  %v1195_v37 = vpop.f32.mrb[10].mxu0 }
 0x76c   : > { %v9475_v38 = vpop.f32.mrb[11].mxu0  ;;  %v9481_v39 = vpop.f32.mrb[3].mxu1  ;;  %v1308_v41 = vsel %vm1301_vm10, %v1195_v37, -inf  ;;  %v1314_v44 = vsel %vm1301_vm10, %v1244_v36, -inf }
 0x76f   : > { %1309 = vmax.xlane.f32.xlu0 %v1308_v41 }
 0x771   : > { %v1290_v42 = vpop.f32.mrb[12].mxu0 }
 0x772   : > { %v9486_v43 = vpop.f32.mrb[13].mxu0  ;;  %v1317_v45 = vsel %vm1297_vm9, %v1290_v42, -inf }
 0x773   : > { %1315 = vmax.xlane.f32.xlu0 %v1314_v44  ;;  %1318 = vmax.xlane.f32.xlu1 %v1317_v45  ;;  %v1293_v46 = vpop.f32.mrb[14].mxu0 }
 0x774   : > { %v9487_v47 = vpop.f32.mrb[15].mxu0  ;;  %v1320_v50 = vsel %vm1301_vm10, %v1293_v46, -inf }
 0x777   : > { %1321 = vmax.xlane.f32.xlu0 %v1320_v50 }
 0x784   : > { %1391 = vrot.lane.b32.xlu1 %v10977_v0, %s10612_s17 }
 0x78d   : > { %v1300_v51 = vpop.xlane.xlu1 %1299 }
 0x78e   : > { %v1323_v54 = vsub.f32 %v1143_v13, %v1300_v51 }
 0x78f   : > { %v1304_v52 = vpop.xlane.xlu0 %1303 }
 0x790   : > { %v1324_v53 = vsub.f32 %v1146_v27, %v1304_v52  ;;  %v1331_v56 = vmul.f32 1.442695, %v1323_v54 }
 0x792   : > { %v1333_v55 = vmul.f32 1.442695, %v1324_v53 }
 0x794   : > { %10060 = vpow2.f32 %v1333_v55 }
 0x795   : > { %10062 = vpow2.f32 %v1331_v56 }
 0x79e   : > { %v10061_v57 = vpop.eup %10060 }
 0x79f   : > { %v1350_v58 = vsel %vm1301_vm10, %v10061_v57, 0.0  ;;  %v10063_v59 = vpop.eup %10062 }
 0x7a0   : > { %1351 = vadd.xlane.f32.xlu0 %v1350_v58  ;;  %v1347_v60 = vsel %vm1297_vm9, %v10063_v59, 0.0 }
 0x7a8   : > { %1348 = vadd.xlane.f32.xlu1 %v1347_v60 }
 0x7f8   : > { %v1313_v61 = vpop.xlane.xlu1 %1312  ;;  %v1307_v62 = vpop.xlane.xlu0 %1306 }
 0x7f9   : > { %v1327_v63 = vsub.f32 %v1241_v31, %v1313_v61  ;;  %v1325_v0 = vsub.f32 %v1192_v30, %v1307_v62 }
 0x7fb   : > { %v1335_v1 = vmul.f32 1.442695, %v1325_v0  ;;  %v1339_v5 = vmul.f32 1.442695, %v1327_v63 }
 0x7fc   : > { %v1310_v6 = vpop.xlane.xlu0 %1309 }
 0x7fd   : > { %v1326_v7 = vsub.f32 %v1195_v37, %v1310_v6  ;;  %10064 = vpow2.f32 %v1335_v1 }
 0x7fe   : > { %10066 = vpow2.f32 %v1339_v5 }
 0x7ff   : > { %v1337_v8 = vmul.f32 1.442695, %v1326_v7 }
 0x800   : > { %v1316_v9 = vpop.xlane.xlu0 %1315  ;;  %v1319_v10 = vpop.xlane.xlu1 %1318 }
 0x801   : > { %10068 = vpow2.f32 %v1337_v8  ;;  %v1328_v11 = vsub.f32 %v1244_v36, %v1316_v9  ;;  %v1329_v12 = vsub.f32 %v1290_v42, %v1319_v10 }
 0x803   : > { %v1341_v13 = vmul.f32 1.442695, %v1328_v11  ;;  %v1343_v25 = vmul.f32 1.442695, %v1329_v12 }
 0x804   : > { %v1392_v26 = vpop.permute.xlu1 %1391  ;;  %v1322_v27 = vpop.xlane.xlu0 %1321 }
 0x805   : > { %10070 = vpow2.f32 %v1341_v13  ;;  %v1398_v28 = vsel %vm1396_vm11, %v1392_v26, 0  ;;  %v1330_v29 = vsub.f32 %v1293_v46, %v1322_v27 }
 0x806   : > { %10072 = vpow2.f32 %v1343_v25  ;;  %9489 = vmatpush3.bf16.msra.mxu1 %v1398_v28 }
 0x807   : > { %v1345_v30 = vmul.f32 1.442695, %v1330_v29  ;;  %9500 = vmatprep.subr.bf16.mxu1 %v10606_v40  ;;  %v10065_v31 = vpop.eup %10064 }
 0x808   : > { %v1353_v32 = vsel %vm1297_vm9, %v10065_v31, 0.0  ;;  %v10067_v33 = vpop.eup %10066 }
 0x809   : > { %10074 = vpow2.f32 %v1345_v30  ;;  %1354 = vadd.xlane.f32.xlu1 %v1353_v32  ;;  %v1359_v36 = vsel %vm1297_vm9, %v10067_v33, 0.0 }
 0x80b   : > { %v10069_v34 = vpop.eup %10068 }
 0x80c   : > { %v1356_v35 = vsel %vm1301_vm10, %v10069_v34, 0.0 }
 0x80d   : > { %1357 = vadd.xlane.f32.xlu0 %v1356_v35  ;;  %1360 = vadd.xlane.f32.xlu1 %v1359_v36 }
 0x80f   : > { %v10071_v37 = vpop.eup %10070 }
 0x810   : > { %v10073_v38 = vpop.eup %10072  ;;  %v1362_v39 = vsel %vm1301_vm10, %v10071_v37, 0.0 }
 0x811   : > { %v1365_v41 = vsel %vm1297_vm9, %v10073_v38, 0.0  ;;  %1363 = vadd.xlane.f32.xlu0 %v1362_v39 }
 0x812   : > { %1366 = vadd.xlane.f32.xlu1 %v1365_v41 }
 0x813   : > { %v10075_v42 = vpop.eup %10074 }
 0x814   : > { %v1368_v43 = vsel %vm1301_vm10, %v10075_v42, 0.0 }
 0x815   : > { %1369 = vadd.xlane.f32.xlu0 %v1368_v43 }
 0x823   : > { %1490 = vrot.lane.b32.xlu1 %v10985_v2, %s10612_s17 }
 0x827   : > { %1539 = vrot.lane.b32.xlu1 %v10993_v4, %s10612_s17 }
 0x82b   : > { %1441 = vrot.lane.b32.xlu0 %v10987_v3, %s10612_s17 }
 0x82d   : > { %v1352_v44 = vpop.xlane.xlu0 %1351 }
 0x82e   : > { %10076 = vrcp.f32 %v1352_v44 }
 0x835   : > { %v1349_v45 = vpop.xlane.xlu1 %1348 }
 0x836   : > { %10078 = vrcp.f32 %v1349_v45 }
 0x838   : > { %v10077_v46 = vpop.eup %10076 }
 0x839   : > { %v1380_v50 = vmul.f32 %v10077_v46, %v10061_v57 }
 0x840   : > { %v10079_v47 = vpop.eup %10078 }
 0x841   : > { %v1379_v51 = vmul.f32 %v10079_v47, %v10063_v59 }
 0x843   : > { %v1387_v52 = vpack.c.bf16 %v1380_v50, %v1379_v51 }
 0x845   : > { %9491 = vmatmul.mubr.msk.bf16.vlgmr.msra.gmra.mrb[4].mxu1 %vm1297_vm9, %v1387_v52 }
 0x846   : > { %9502 = vmatprep.mubr.msk.bf16.mxu1 %vm10607_vm7, %v10606_v40 }
 0x896   : > { %v1355_v2 = vpop.xlane.xlu1 %1354 }
 0x897   : > { %10080 = vrcp.f32 %v1355_v2 }
 0x89a   : > { %v1358_v4 = vpop.xlane.xlu0 %1357  ;;  %v1361_v53 = vpop.xlane.xlu1 %1360 }
 0x89b   : > { %10082 = vrcp.f32 %v1358_v4 }
 0x89c   : > { %10084 = vrcp.f32 %v1361_v53 }
 0x89e   : > { %v1364_v3 = vpop.xlane.xlu0 %1363 }
 0x89f   : > { %v1367_v54 = vpop.xlane.xlu1 %1366  ;;  %10086 = vrcp.f32 %v1364_v3 }
 0x8a0   : > { %10088 = vrcp.f32 %v1367_v54 }
 0x8a1   : > { %v10081_v56 = vpop.eup %10080 }
 0x8a2   : > { %v1370_v55 = vpop.xlane.xlu0 %1369  ;;  %v1381_v60 = vmul.f32 %v10081_v56, %v10065_v31  ;;  %v8448_v31 = vcombine.low %v10940_v21, %v10943_v22 }
 0x8a3   : > { %v1491_v57 = vpop.permute.xlu1 %1490  ;;  %10090 = vrcp.f32 %v1370_v55 }
 0x8a4   : > { %v1496_v58 = vsel %vm1396_vm11, %v1491_v57, 0 }
 0x8a5   : > { %v10083_v59 = vpop.eup %10082  ;;  %9501 = vmatpush3.bf16.msra.mxu1 %v1496_v58 }
 0x8a6   : > { %v1382_v61 = vmul.f32 %v10083_v59, %v10069_v34  ;;  %v1442_v62 = vpop.permute.xlu0 %1441  ;;  %9512 = vmatprep.subr.bf16.mxu1 %v10606_v40  ;;  %v10085_v63 = vpop.eup %10084  ;;  %v8449_v34 = vcombine.low %v10946_v23, %v10949_v24 }
 0x8a7   : > { %v1447_v0 = vsel %vm1396_vm11, %v1442_v62, 0  ;;  %v1540_v1 = vpop.permute.xlu1 %1539  ;;  %v1383_v7 = vmul.f32 %v10085_v63, %v10067_v33 }
 0x8a8   : > { %9495 = vmatpush3.bf16.msra.mxu0 %v1447_v0  ;;  %v1388_v5 = vpack.c.bf16 %v1382_v61, %v1381_v60  ;;  %v1545_v10 = vsel %vm1396_vm11, %v1540_v1, 0  ;;  %v10136_v1 = vld [vmem:[#allocation2] sm:$0xff] }
 0x8a9   : > { %v10087_v6 = vpop.eup %10086  ;;  %9506 = vmatprep.subr.bf16.mxu0 %v10606_v40 }
 0x8aa   : > { %v1384_v8 = vmul.f32 %v10087_v6, %v10071_v37  ;;  %v10089_v9 = vpop.eup %10088 }
 0x8ab   : > { %9497 = vmatmul.mubr.msk.bf16.vlgmr.msra.gmra.mrb[16].mxu0 %vm1297_vm9, %v1388_v5  ;;  %v1385_v13 = vmul.f32 %v10089_v9, %v10073_v38 }
 0x8ac   : > { %9507 = vmatpush3.bf16.msra.mxu0 %v1545_v10  ;;  %v1389_v11 = vpack.c.bf16 %v1384_v8, %v1383_v7  ;;  %9508 = vmatprep.mubr.msk.bf16.mxu0 %vm10607_vm7, %v10606_v40  ;;  %v10137_v8 = vld [vmem:[#allocation2 + $0x8] sm:$0x3] }
 0x8ad   : > { %v10091_v12 = vpop.eup %10090  ;;  %9520 = vmatprep.subr.bf16.mxu0 %v10606_v40 }
 0x8ae   : > { %v1386_v25 = vmul.f32 %v10091_v12, %v10075_v42  ;;  %9503 = vmatmul.mubr.msk.bf16.vlgmr.msra.gmra.mrb[8].mxu1 %vm1297_vm9, %v1389_v11 }
 0x8af   : > { %9516 = vmatprep.mubr.msk.bf16.mxu1 %vm10607_vm7, %v10606_v40  ;;  %9513 = vmatpush3.bf16.msra.mxu1 %v8448_v31 }
 0x8b0   : > { %v1390_v26 = vpack.c.bf16 %v1386_v25, %v1385_v13  ;;  %9514 = vmatprep.subr.bf16.mxu1 %v10606_v40 }
 0x8b3   : > { %9509 = vmatmul.mubr.msk.bf16.vlgmr.msra.gmra.mrb[20].mxu0 %vm1297_vm9, %v1390_v26  ;;  %9515 = vmatpush3.bf16.msra.mxu1 %v8449_v34 }
 0x8b4   : > { %9522 = vmatprep.mubr.msk.bf16.mxu0 %vm10607_vm7, %v10606_v40  ;;  %9526 = vmatprep.subr.bf16.mxu1 %v10606_v40 }
 0x918   : > { %v1434_v27 = vpop.f32.mrb[4].mxu1 }
 0x919   : > { %v9492_v28 = vpop.f32.mrb[5].mxu1 }
 0x91a   : > { %v1437_v29 = vpop.f32.mrb[6].mxu1 }
 0x91b   : > { %v9493_v30 = vpop.f32.mrb[7].mxu1 }
 0x97e   : > { %v1483_v32 = vpop.f32.mrb[16].mxu0 }
 0x97f   : > { %v9498_v33 = vpop.f32.mrb[17].mxu0 }
 0x980   : > { %v1486_v35 = vpop.f32.mrb[18].mxu0 }
 0x981   : > { %v9730_v36 = vpack.i.bf16 %v1486_v35, %v1483_v32  ;;  %v9499_v37 = vpop.f32.mrb[19].mxu0  ;;  %v1532_v38 = vpop.f32.mrb[8].mxu1 }
 0x982   : > { %v9504_v39 = vpop.f32.mrb[9].mxu1 }
 0x983   : > { %v1535_v41 = vpop.f32.mrb[10].mxu1  ;;  %9731 = vrot.lane.b32.xlu1 %v9730_v36, %s10613_s22  ;;  %v9745_v39 = vld [vmem:[%s714_s24] sm:$0xff]  }
 0x984   : > { %v9735_v42 = vpack.i.bf16 %v1535_v41, %v1532_v38  ;;  %v9505_v43 = vpop.f32.mrb[11].mxu1  ;;  %9521 = vmatpush3.bf16.msra.mxu0 %v9745_v39  ;;  %v10619_v39 = vmov 0  }
 0x986   : > { %9736 = vrot.lane.b32.xlu0 %v9735_v42, %s10614_s3  ;;  %v1581_v44 = vpop.f32.mrb[20].mxu0 }
 0x987   : > { %v9510_v45 = vpop.f32.mrb[21].mxu0 }
 0x988   : > { %v1584_v46 = vpop.f32.mrb[22].mxu0 }
 0x989   : > { %v9740_v47 = vpack.i.bf16 %v1584_v46, %v1581_v44  ;;  %v9511_v50 = vpop.f32.mrb[23].mxu0 }
 0x98b   : > { %9741 = vrot.lane.b32.xlu1 %v9740_v47, %s10615_s26 }
 0x9f5   : > { %v9732_v51 = vpop.permute.xlu1 %9731 }
 0x9f6   : > { %v9734_v2 = vunpack.i.h.bf16 %v9732_v51  ;;  %v9733_v4 = vunpack.i.l.bf16 %v9732_v51 }
 0x9f8   : > { %v9737_v52 = vpop.permute.xlu0 %9736  ;;  %v1613_v55 = vsel %vm1102_vm8, %v1437_v29, %v9734_v2  ;;  %v1612_v56 = vsel %vm1102_vm8, %v1434_v27, %v9733_v4  ;;  %vm4690_vm8 = vcmask 128000  }
 0x9f9   : > { %v9739_v53 = vunpack.i.h.bf16 %v9737_v52  ;;  %v9738_v3 = vunpack.i.l.bf16 %v9737_v52 }
 0x9fb   : > { %v1614_v59 = vsel %vm1000_vm5, %v1612_v56, %v9738_v3  ;;  %v1615_v60 = vsel %vm1000_vm5, %v1613_v55, %v9739_v53 }
 0x9fd   : > { %v9742_v54 = vpop.permute.xlu1 %9741 }
 0x9fe   : > { %v9744_v57 = vunpack.i.h.bf16 %v9742_v54  ;;  %v9743_v58 = vunpack.i.l.bf16 %v9742_v54 }
 0xa00   : > { %v1618_v61 = vsel %vm1616_vm12, %v1615_v60, %v9744_v57  ;;  %v1617_v62 = vsel %vm1616_vm12, %v1614_v59, %v9743_v58 }
 0xa01   : > { %v1619_v63 = vpack.c.bf16 %v1618_v61, %v1617_v62 }
 0xa03   : > { %9517 = vmatmul.mubr.msk.bf16.vlgmr.msra.gmra.mrb[12].mxu1 %vm1632_vm13, %v1619_v63 }
 0xa04   : > { %9534 = vmatprep.mubr.msk.bf16.mxu1 %vm10607_vm7, %v10606_v40  ;;  %vm4687_vm7 = vcmask 1043456  }
 0xad6   : > { %v1670_v0 = vpop.f32.mrb[12].mxu1 }
 0xad7   : > { %v11079_v5 = vadd.f32 %v10136_v1, %v1670_v0  ;;  %v9518_v6 = vpop.f32.mrb[13].mxu1 }
 0xad8   : > { %v1673_v7 = vpop.f32.mrb[14].mxu1 }
 0xad9   : > { %v11081_v9 = vadd.f32 %v10137_v8, %v1673_v7  ;;  %v9519_v10 = vpop.f32.mrb[15].mxu1  ;;  %v1691_v11 = vsel %vm1690_vm14, %v11079_v5, 0.0  ;;  %v2275_v13 = vrot.slane %v11079_v5, 2  ;;  %v2279_v25 = vrot.slane %v11079_v5, 3  ;;  %v9746_v7 = vld [vmem:[%s10847_s1] sm:$0xff]   ;;  %v9747_v8 = vld [vmem:[%s10847_s1 + $0x8] sm:$0xff]  }
 0xada   : > { %1692 = vadd.xlane.f32.xlu0 %v1691_v11  ;;  %v2283_v26 = vrot.slane %v11079_v5, 4  ;;  %v2271_v37 = vrot.slane %v11079_v5, 1  ;;  %v2287_v38 = vrot.slane %v11079_v5, 5  ;;  %9527 = vmatpush3.bf16.msra.mxu1 %v9746_v7  ;;  %v9748_v10 = vld [vmem:[%s10847_s1 + $0x10] sm:$0xff]   ;;  %v9752_v11 = vld [vmem:[%s13118_s13 + $0x4] ss:$72 sps:$4 sm:$0xff]  }
 0xadb   : > { %v1694_v12 = vsel %vm1004_vm6, %v11081_v9, 0.0  ;;  %9528 = vmatprep.subr.bf16.mxu1 %v10606_v40  ;;  %2956 = vmatprep.subr.bf16.mxu0 %v9752_v11 }
 0xadc   : > { %1695 = vadd.xlane.f32.xlu1 %v1694_v12  ;;  %v9755_v12 = vld [vmem:[%s13118_s13 + $0xc] ss:$72 sps:$4 sm:$0xff]  }
 0xade   : > { %9529 = vmatpush3.bf16.msra.mxu1 %v9747_v8  ;;  %v1870_v8 = vld [vmem:[%s13117_s12] sm:$0x7] }
 0xadf   : > { %9530 = vmatprep.subr.bf16.mxu1 %v10606_v40 }
 0xae2   : > { %9531 = vmatpush3.bf16.msra.mxu1 %v9748_v10 }
 0xae3   : > { %9532 = vmatprep.subr.bf16.mxu1 %v10606_v40 }
 0xaed   : > { %2276 = vrot.lane.b32.xlu1 %v2275_v13, %s10616_s28 }
 0xaf1   : > { %2280 = vrot.lane.b32.xlu1 %v2279_v25, %s10617_s25 }
 0xaf5   : > { %2284 = vrot.lane.b32.xlu1 %v2283_v26, %s10612_s17 }
 0xb67   : > { %v1693_v27 = vpop.xlane.xlu0 %1692 }
 0xb68   : > { %v1697_v28 = vmul.f32 0.0625, %v1693_v27 }
 0xb69   : > { %v1696_v29 = vpop.xlane.xlu1 %1695 }
 0xb6a   : > { %v1699_v30 = vsub.f32 %v11079_v5, %v1697_v28  ;;  %v1698_v31 = vmul.f32 0.0625, %v1696_v29  ;;  %v9758_v28 = vld [vmem:[%s13118_s13 + $0x94] ss:$72 sps:$4 sm:$0xff]   ;;  %v9756_v29 = vld [vmem:[%s13118_s13 + $0x90] ss:$72 sps:$4 sm:$0xff]  }
 0xb6c   : > { %v1700_v32 = vsub.f32 %v11081_v9, %v1698_v31  ;;  %v1701_v33 = vmul.f32 %v1699_v30, %v1699_v30  ;;  %v9762_v31 = vld [vmem:[%s13118_s13 + $0x120] ss:$72 sps:$4 sm:$0xff]  }
 0xb6d   : > { %v2277_v41 = vpop.permute.xlu1 %2276 }
 0xb6e   : > { %v1703_v34 = vsel %vm1690_vm14, %v1701_v33, 0.0  ;;  %v1702_v35 = vmul.f32 %v1700_v32, %v1700_v32  ;;  %v9768_v33 = vld [vmem:[%s13118_s13 + $0x1b0] ss:$72 sps:$4 sm:$0xff]  }
 0xb6f   : > { %1704 = vadd.xlane.f32.xlu0 %v1703_v34  ;;  %v9776_v34 = vld [vmem:[%s13118_s13 + $0x244] ss:$72 sps:$4 sm:$0xff]  }
 0xb70   : > { %v1706_v36 = vsel %vm1004_vm6, %v1702_v35, 0.0  ;;  %v9774_v35 = vld [vmem:[%s13118_s13 + $0x240] ss:$72 sps:$4 sm:$0xff]  }
 0xb71   : > { %v2281_v46 = vpop.permute.xlu1 %2280 }
 0xb73   : > { %1707 = vadd.xlane.f32.xlu0 %v1706_v36  ;;  %v9782_v36 = vld [vmem:[%s13118_s13 + $0x2d4] ss:$72 sps:$4 sm:$0xff]  }
 0xb75   : > { %v2285_v4 = vpop.permute.xlu1 %2284 }
 0xb89   : > { %2272 = vrot.lane.b32.xlu0 %v2271_v37, %s10614_s3  ;;  %v9780_v37 = vld [vmem:[%s13118_s13 + $0x2d0] ss:$72 sps:$4 sm:$0xff]  }
 0xb8d   : > { %2288 = vrot.lane.b32.xlu0 %v2287_v38, %s10618_s19  ;;  %v9788_v38 = vld [vmem:[%s13118_s13 + $0x14] ss:$72 sps:$4 sm:$0xff]  }
 0xbfc   : > { %v1705_v42 = vpop.xlane.xlu0 %1704 }
 0xbfd   : > { %v1709_v43 = vmul.f32 0.0625, %v1705_v42 }
 0xbff   : > { %v1711_v44 = vadd.f32 1e-05, %v1709_v43 }
 0xc00   : > { %v1708_v45 = vpop.xlane.xlu0 %1707 }
 0xc01   : > { %10092 = vrsqrt.f32 %v1711_v44  ;;  %v1710_v47 = vmul.f32 0.0625, %v1708_v45 }
 0xc03   : > { %v1712_v50 = vadd.f32 1e-05, %v1710_v47 }
 0xc04   : > { %v2273_v51 = vpop.permute.xlu0 %2272 }
 0xc05   : > { %10094 = vrsqrt.f32 %v1712_v50  ;;  %v2291_v52 = vsel %vm1000_vm5, %v11079_v5, %v2273_v51 }
 0xc06   : > { %v2292_v2 = vsel %vm1632_vm13, %v2291_v52, %v2277_v41  ;;  %v8453_v41 = vld [vmem:[%s717_s6] ss:$0 sm:$0xff] }
 0xc07   : > { %v2294_v53 = vsel %vm2293_vm15, %v2292_v2, %v2281_v46 }
 0xc08   : > { %v2289_v3 = vpop.permute.xlu0 %2288  ;;  %v2295_v54 = vsel %vm1821_vm0, %v2294_v53, %v2285_v4  ;;  %v9753_v4 = vld [vmem:[%s13118_s13 + $0x8] ss:$72 sps:$4 sm:$0xff]  }
 0xc09   : > { %v11109_v55 = vsel %vm2296_vm1, %v2295_v54, %v2289_v3  ;;  %v9761_v3 = vld [vmem:[%s13118_s13 + $0x9c] ss:$72 sps:$4 sm:$0xff]   ;;  %v9759_v54 = vld [vmem:[%s13118_s13 + $0x98] ss:$72 sps:$4 sm:$0xff]  }
 0xc0a   : > { %v2299_v56 = vsel %vm2298_vm2, %v11109_v55, 0.0 }
 0xc0b   : > { %v10093_v57 = vpop.eup %10092  ;;  %2300 = vadd.xlane.f32.xlu1 %v2299_v56  ;;  %v9767_v56 = vld [vmem:[%s13118_s13 + $0x12c] ss:$72 sps:$4 sm:$0xff]  }
 0xc0c   : > { %v1715_v58 = vmul.f32 %v10093_v57, %v1699_v30  ;;  %v9764_v30 = vld [vmem:[%s13118_s13 + $0x124] ss:$72 sps:$4 sm:$0xff]   ;;  %v9765_v57 = vld [vmem:[%s13118_s13 + $0x128] ss:$72 sps:$4 sm:$0xff]  }
 0xc0e   : > { %v1721_v60 = vmul.f32 %v10925_v16, %v1715_v58  ;;  %v9773_v58 = vld [vmem:[%s13118_s13 + $0x1bc] ss:$72 sps:$4 sm:$0xff]  }
 0xc0f   : > { %v10095_v59 = vpop.eup %10094 }
 0xc10   : > { %v1716_v61 = vmul.f32 %v10095_v59, %v1700_v32  ;;  %v1727_v63 = vadd.f32 %v10928_v17, %v1721_v60  ;;  %v9770_v32 = vld [vmem:[%s13118_s13 + $0x1b4] ss:$72 sps:$4 sm:$0xff]   ;;  %v9771_v59 = vld [vmem:[%s13118_s13 + $0x1b8] ss:$72 sps:$4 sm:$0xff]  }
 0xc11   : > { %v9779_v60 = vld [vmem:[%s13118_s13 + $0x24c] ss:$72 sps:$4 sm:$0xff]  }
 0xc12   : > { %v1722_v62 = vmul.f32 %v10925_v16, %v1716_v61  ;;  %v9749_v16 = vld [vmem:[%s10847_s1 + $0x18] sm:$0xff]   ;;  %v9777_v61 = vld [vmem:[%s13118_s13 + $0x248] ss:$72 sps:$4 sm:$0xff]  }
 0xc13   : > { %9533 = vmatpush3.bf16.msra.mxu1 %v9749_v16  ;;  %v2315_v16 = vrot.slane %v1870_v8, 1 }
 0xc14   : > { %v1728_v0 = vadd.f32 %v10928_v17, %v1722_v62  ;;  %v9750_v17 = vld [vmem:[%s13118_s13] ss:$72 sps:$4 sm:$0xff]   ;;  %2997 = vmatprep.subr.bf16.mxu1 %v9755_v12  ;;  %v9785_v62 = vld [vmem:[%s13118_s13 + $0x2dc] ss:$72 sps:$4 sm:$0xff]  }
 0xc16   : > { %v1729_v1 = vpack.c.bf16 %v1728_v0, %v1727_v63  ;;  %v9783_v63 = vld [vmem:[%s13118_s13 + $0x2d8] ss:$72 sps:$4 sm:$0xff]   ;;  %v9791_v0 = vld [vmem:[%s13118_s13 + $0x1c] ss:$72 sps:$4 sm:$0xff]  }
 0xc18   : > { %v1737_v6 = vrot.slane %v1729_v1, 3 }
 0xc1a   : > { %9523 = vmatmul.mubr.msk.bf16.vlgmr.msra.gmra.mrb[24].mxu0 %vm1000_vm5, %v1737_v6  ;;  %vm4683_vm5 = vcmask 1041408  }
 0xc1b   : > { %2957 = vmatpush1.bf16.msra.mxu0 %v9750_v17  ;;  %2988 = vmatprep.mubr.bf16.mxu0 %v10619_v39 }
 0xc1c   : > { %2958 = vmatprep.subr.bf16.mxu0 %v9758_v28  ;;  %v9792_v28 = vld [vmem:[%s13118_s13 + $0xa0] ss:$72 sps:$4 sm:$0xff]  }
 0xc1f   : > { %2959 = vmatpush1.bf16.msra.mxu0 %v9756_v29  ;;  %v9795_v29 = vld [vmem:[%s13118_s13 + $0xa8] ss:$72 sps:$4 sm:$0xff]  }
 0xc20   : > { %2960 = vmatprep.subr.bf16.mxu0 %v9764_v30  ;;  %v9800_v30 = vld [vmem:[%s13118_s13 + $0x134] ss:$72 sps:$4 sm:$0xff]  }
 0xc23   : > { %2961 = vmatpush1.bf16.msra.mxu0 %v9762_v31  ;;  %v9803_v31 = vld [vmem:[%s13118_s13 + $0x13c] ss:$72 sps:$4 sm:$0xff]  }
 0xc24   : > { %2962 = vmatprep.subr.bf16.mxu0 %v9770_v32  ;;  %v9798_v32 = vld [vmem:[%s13118_s13 + $0x130] ss:$72 sps:$4 sm:$0xff]  }
 0xc27   : > { %2963 = vmatpush1.bf16.msra.mxu0 %v9768_v33  ;;  %v9801_v33 = vld [vmem:[%s13118_s13 + $0x138] ss:$72 sps:$4 sm:$0xff]  }
 0xc28   : > { %2964 = vmatprep.subr.bf16.mxu0 %v9776_v34  ;;  %v9806_v34 = vld [vmem:[%s13118_s13 + $0x1c4] ss:$72 sps:$4 sm:$0xff]  }
 0xc2b   : > { %2965 = vmatpush1.bf16.msra.mxu0 %v9774_v35  ;;  %v9809_v35 = vld [vmem:[%s13118_s13 + $0x1cc] ss:$72 sps:$4 sm:$0xff]  }
 0xc2c   : > { %2966 = vmatprep.subr.bf16.mxu0 %v9782_v36  ;;  %v9804_v36 = vld [vmem:[%s13118_s13 + $0x1c0] ss:$72 sps:$4 sm:$0xff]  }
 0xc2f   : > { %2967 = vmatpush1.bf16.msra.mxu0 %v9780_v37  ;;  %v9807_v37 = vld [vmem:[%s13118_s13 + $0x1c8] ss:$72 sps:$4 sm:$0xff]  }
 0xc30   : > { %3038 = vmatprep.subr.bf16.mxu0 %v9788_v38  ;;  %v9812_v38 = vld [vmem:[%s13118_s13 + $0x254] ss:$72 sps:$4 sm:$0xff]  }
 0xc98   : > { %v2301_v13 = vpop.xlane.xlu1 %2300 }
 0xc99   : > { %v2303_v25 = vmul.f32 0.010416667, %v2301_v13  ;;  %v9786_v13 = vld [vmem:[%s13118_s13 + $0x10] ss:$72 sps:$4 sm:$0xff]  }
 0xc9b   : > { %v11135_v40 = vsub.f32 %v11109_v55, %v2303_v25  ;;  %v9789_v25 = vld [vmem:[%s13118_s13 + $0x18] ss:$72 sps:$4 sm:$0xff]  }
 0xc9d   : > { %v2305_v26 = vmul.f32 %v11135_v40, %v11135_v40 }
 0xc9f   : > { %v2306_v27 = vsel %vm2298_vm2, %v2305_v26, 0.0 }
 0xca0   : > { %2307 = vadd.xlane.f32.xlu0 %v2306_v27  ;;  %v9794_v27 = vld [vmem:[%s13118_s13 + $0xa4] ss:$72 sps:$4 sm:$0xff]  }
 0xced   : > { %v1781_v42 = vpop.f32.mrb[24].mxu0 }
 0xcee   : > { %v1782_v43 = vadd.f32 %v8453_v41, %v1781_v42  ;;  %v9524_v44 = vpop.f32.mrb[25].mxu0  ;;  %v9815_v41 = vld [vmem:[%s13118_s13 + $0x25c] ss:$72 sps:$4 sm:$0xff]   ;;  %v9810_v42 = vld [vmem:[%s13118_s13 + $0x250] ss:$72 sps:$4 sm:$0xff]  }
 0xcef   : > { %v1784_v45 = vpop.f32.mrb[26].mxu0  ;;  %v9818_v44 = vld [vmem:[%s13118_s13 + $0x2e4] ss:$72 sps:$4 sm:$0xff]  }
 0xcf0   : > { %v1788_v46 = vmul.f32 0.70710677, %v1782_v43  ;;  %v9525_v47 = vpop.f32.mrb[27].mxu0  ;;  %v1787_v51 = vmul.f32 0.5, %v1782_v43  ;;  %v9813_v43 = vld [vmem:[%s13118_s13 + $0x258] ss:$72 sps:$4 sm:$0xff]  }
 0xcf1   : > { %v9821_v45 = vld [vmem:[%s13118_s13 + $0x2ec] ss:$72 sps:$4 sm:$0xff]   ;;  %v9819_v47 = vld [vmem:[%s13118_s13 + $0x2e8] ss:$72 sps:$4 sm:$0xff]  }
 0xcf2   : > { %10096 = verf.f32 %v1788_v46  ;;  %v9816_v46 = vld [vmem:[%s13118_s13 + $0x2e0] ss:$72 sps:$4 sm:$0xff]  }
 0xcfc   : > { %v10097_v50 = vpop.eup %10096 }
 0xcfd   : > { %v1790_v52 = vadd.f32 1.0, %v10097_v50  ;;  %v9824_v50 = vld [vmem:[%s13118_s13 + $0x24] ss:$72 sps:$4 sm:$0xff]  }
 0xcff   : > { %v1791_v2 = vmul.f32 %v1790_v52, %v1787_v51  ;;  %v9827_v51 = vld [vmem:[%s13118_s13 + $0x2c] ss:$72 sps:$4 sm:$0xff]   ;;  %v9822_v52 = vld [vmem:[%s13118_s13 + $0x20] ss:$72 sps:$4 sm:$0xff]  }
 0xd01   : > { %v1792_v53 = vpack.c.bf16 %v1791_v2, %v1791_v2  ;;  %v9825_v2 = vld [vmem:[%s13118_s13 + $0x28] ss:$72 sps:$4 sm:$0xff]  }
 0xd03   : > { %9535 = vmatmul.mubr.msk.bf16.vlgmr.msra.gmra.mrb[16].mxu1 %vm1821_vm0, %v1792_v53  ;;  %v9833_v53 = vld [vmem:[%s13118_s13 + $0xbc] ss:$72 sps:$4 sm:$0xff]  }
 0xd04   : > { %2998 = vmatpush1.bf16.msra.mxu1 %v9753_v4  ;;  %3029 = vmatprep.mubr.bf16.mxu1 %v10619_v39  ;;  %v9830_v4 = vld [vmem:[%s13118_s13 + $0xb4] ss:$72 sps:$4 sm:$0xff]  }
 0xd05   : > { %2999 = vmatprep.subr.bf16.mxu1 %v9761_v3  ;;  %v9828_v3 = vld [vmem:[%s13118_s13 + $0xb0] ss:$72 sps:$4 sm:$0xff]  }
 0xd08   : > { %3000 = vmatpush1.bf16.msra.mxu1 %v9759_v54  ;;  %v9831_v54 = vld [vmem:[%s13118_s13 + $0xb8] ss:$72 sps:$4 sm:$0xff]  }
 0xd09   : > { %3001 = vmatprep.subr.bf16.mxu1 %v9767_v56  ;;  %v9836_v56 = vld [vmem:[%s13118_s13 + $0x144] ss:$72 sps:$4 sm:$0xff]  }
 0xd0c   : > { %3002 = vmatpush1.bf16.msra.mxu1 %v9765_v57  ;;  %v9839_v57 = vld [vmem:[%s13118_s13 + $0x14c] ss:$72 sps:$4 sm:$0xff]  }
 0xd0d   : > { %3003 = vmatprep.subr.bf16.mxu1 %v9773_v58  ;;  %v9834_v58 = vld [vmem:[%s13118_s13 + $0x140] ss:$72 sps:$4 sm:$0xff]  }
 0xd10   : > { %3004 = vmatpush1.bf16.msra.mxu1 %v9771_v59  ;;  %v9837_v59 = vld [vmem:[%s13118_s13 + $0x148] ss:$72 sps:$4 sm:$0xff]  }
 0xd11   : > { %3005 = vmatprep.subr.bf16.mxu1 %v9779_v60  ;;  %v9842_v60 = vld [vmem:[%s13118_s13 + $0x1d4] ss:$72 sps:$4 sm:$0xff]  }
 0xd14   : > { %3006 = vmatpush1.bf16.msra.mxu1 %v9777_v61  ;;  %v9845_v61 = vld [vmem:[%s13118_s13 + $0x1dc] ss:$72 sps:$4 sm:$0xff]  }
 0xd15   : > { %3007 = vmatprep.subr.bf16.mxu1 %v9785_v62  ;;  %v9840_v62 = vld [vmem:[%s13118_s13 + $0x1d0] ss:$72 sps:$4 sm:$0xff]  }
 0xd18   : > { %3008 = vmatpush1.bf16.msra.mxu1 %v9783_v63  ;;  %v9843_v63 = vld [vmem:[%s13118_s13 + $0x1d8] ss:$72 sps:$4 sm:$0xff]  }
 0xd19   : > { %3079 = vmatprep.subr.bf16.mxu1 %v9791_v0  ;;  %v9848_v0 = vld [vmem:[%s13118_s13 + $0x264] ss:$72 sps:$4 sm:$0xff]  }
 0xd2d   : > { %v2308_v1 = vpop.xlane.xlu0 %2307 }
 0xd2e   : > { %v2309_v6 = vmul.f32 0.010416667, %v2308_v1  ;;  %v9851_v1 = vld [vmem:[%s13118_s13 + $0x26c] ss:$72 sps:$4 sm:$0xff]  }
 0xd30   : > { %v2310_v7 = vadd.f32 1e-05, %v2309_v6  ;;  %v9846_v6 = vld [vmem:[%s13118_s13 + $0x260] ss:$72 sps:$4 sm:$0xff]  }
 0xd32   : > { %10098 = vrsqrt.f32 %v2310_v7  ;;  %v9849_v7 = vld [vmem:[%s13118_s13 + $0x268] ss:$72 sps:$4 sm:$0xff]  }
 0xd3c   : > { %v10099_v10 = vpop.eup %10098 }
 0xd3d   : > { %v2312_v17 = vmul.f32 %v10099_v10, %v11135_v40  ;;  %v9797_v40 = vld [vmem:[%s13118_s13 + $0xac] ss:$72 sps:$4 sm:$0xff]   ;;  %v9857_v10 = vld [vmem:[%s13118_s13 + $0x2fc] ss:$72 sps:$4 sm:$0xff]  }
 0xd3f   : > { %v2313_v11 = vmul.f32 %v2312_v17, %v1870_v8  ;;  %v9854_v8 = vld [vmem:[%s13118_s13 + $0x2f4] ss:$72 sps:$4 sm:$0xff]   ;;  %v9855_v17 = vld [vmem:[%s13118_s13 + $0x2f8] ss:$72 sps:$4 sm:$0xff]  }
 0xd41   : > { %v2317_v12 = vadd.f32 %v2315_v16, %v2313_v11  ;;  %v9852_v16 = vld [vmem:[%s13118_s13 + $0x2f0] ss:$72 sps:$4 sm:$0xff]   ;;  %v9860_v11 = vld [vmem:[%s13118_s13 + $0x34] ss:$72 sps:$4 sm:$0xff]  }
 0xd43   : > { %v11227_v26 = vpack.c.bf16 %v2317_v12, %v2317_v12  ;;  %v9863_v12 = vld [vmem:[%s13118_s13 + $0x3c] ss:$72 sps:$4 sm:$0xff]  }
 0xd45   : > { %8570 = vmatmul.mubr.msk.bf16.vlgmr.msra.gmra.mrb[28].mxu0 %vm2952_vm3, %v11227_v26  ;;  %8571 = vmatmul.mubr.msk.bf16.vlgmr.msra.gmra.mrb[20].mxu1 %vm2952_vm3, %v11227_v26 }
 0xd46   : > { %3039 = vmatpush1.bf16.msra.mxu0 %v9786_v13  ;;  %3080 = vmatpush1.bf16.msra.mxu1 %v9789_v25  ;;  %v9858_v13 = vld [vmem:[%s13118_s13 + $0x30] ss:$72 sps:$4 sm:$0xff]  }
 0xd47   : > { %3040 = vmatprep.subr.bf16.mxu0 %v9794_v27  ;;  %3081 = vmatprep.subr.bf16.mxu1 %v9797_v40  ;;  %v9861_v25 = vld [vmem:[%s13118_s13 + $0x38] ss:$72 sps:$4 sm:$0xff]   ;;  %v9866_v27 = vld [vmem:[%s13118_s13 + $0xc4] ss:$72 sps:$4 sm:$0xff]  }
 0xd48   : > { %3070 = vmatprep.mubr.bf16.mxu0 %v10619_v39  ;;  %3111 = vmatprep.mubr.bf16.mxu1 %v10619_v39  ;;  %v9869_v40 = vld [vmem:[%s13118_s13 + $0xcc] ss:$72 sps:$4 sm:$0xff]  }
 0xd4a   : > { %3041 = vmatpush1.bf16.msra.mxu0 %v9792_v28  ;;  %3082 = vmatpush1.bf16.msra.mxu1 %v9795_v29  ;;  %v9864_v28 = vld [vmem:[%s13118_s13 + $0xc0] ss:$72 sps:$4 sm:$0xff]  }
 0xd4b   : > { %3042 = vmatprep.subr.bf16.mxu0 %v9800_v30  ;;  %3083 = vmatprep.subr.bf16.mxu1 %v9803_v31  ;;  %v9867_v29 = vld [vmem:[%s13118_s13 + $0xc8] ss:$72 sps:$4 sm:$0xff]   ;;  %v9872_v30 = vld [vmem:[%s13118_s13 + $0x154] ss:$72 sps:$4 sm:$0xff]  }
 0xd4c   : > { %v9875_v31 = vld [vmem:[%s13118_s13 + $0x15c] ss:$72 sps:$4 sm:$0xff]  }
 0xd4e   : > { %3043 = vmatpush1.bf16.msra.mxu0 %v9798_v32  ;;  %3084 = vmatpush1.bf16.msra.mxu1 %v9801_v33  ;;  %v9870_v32 = vld [vmem:[%s13118_s13 + $0x150] ss:$72 sps:$4 sm:$0xff]  }
 0xd4f   : > { %3044 = vmatprep.subr.bf16.mxu0 %v9806_v34  ;;  %3085 = vmatprep.subr.bf16.mxu1 %v9809_v35  ;;  %v9873_v33 = vld [vmem:[%s13118_s13 + $0x158] ss:$72 sps:$4 sm:$0xff]   ;;  %v9878_v34 = vld [vmem:[%s13118_s13 + $0x1e4] ss:$72 sps:$4 sm:$0xff]  }
 0xd50   : > { %v9881_v35 = vld [vmem:[%s13118_s13 + $0x1ec] ss:$72 sps:$4 sm:$0xff]  }
 0xd52   : > { %3045 = vmatpush1.bf16.msra.mxu0 %v9804_v36  ;;  %3086 = vmatpush1.bf16.msra.mxu1 %v9807_v37  ;;  %v9876_v36 = vld [vmem:[%s13118_s13 + $0x1e0] ss:$72 sps:$4 sm:$0xff]  }
 0xd53   : > { %3046 = vmatprep.subr.bf16.mxu0 %v9812_v38  ;;  %3087 = vmatprep.subr.bf16.mxu1 %v9815_v41  ;;  %v9879_v37 = vld [vmem:[%s13118_s13 + $0x1e8] ss:$72 sps:$4 sm:$0xff]   ;;  %v9884_v38 = vld [vmem:[%s13118_s13 + $0x274] ss:$72 sps:$4 sm:$0xff]  }
 0xd54   : > { %v9887_v41 = vld [vmem:[%s13118_s13 + $0x27c] ss:$72 sps:$4 sm:$0xff]  }
 0xd56   : > { %3047 = vmatpush1.bf16.msra.mxu0 %v9810_v42  ;;  %3088 = vmatpush1.bf16.msra.mxu1 %v9813_v43  ;;  %v9882_v42 = vld [vmem:[%s13118_s13 + $0x270] ss:$72 sps:$4 sm:$0xff]  }
 0xd57   : > { %3048 = vmatprep.subr.bf16.mxu0 %v9818_v44  ;;  %3089 = vmatprep.subr.bf16.mxu1 %v9821_v45  ;;  %v9885_v43 = vld [vmem:[%s13118_s13 + $0x278] ss:$72 sps:$4 sm:$0xff]   ;;  %v9890_v44 = vld [vmem:[%s13118_s13 + $0x304] ss:$72 sps:$4 sm:$0xff]  }
 0xd58   : > { %v9893_v45 = vld [vmem:[%s13118_s13 + $0x30c] ss:$72 sps:$4 sm:$0xff]  }
 0xd5a   : > { %3049 = vmatpush1.bf16.msra.mxu0 %v9816_v46  ;;  %3090 = vmatpush1.bf16.msra.mxu1 %v9819_v47  ;;  %v9888_v46 = vld [vmem:[%s13118_s13 + $0x300] ss:$72 sps:$4 sm:$0xff]  }
 0xd5b   : > { %3120 = vmatprep.subr.bf16.mxu0 %v9824_v50  ;;  %3161 = vmatprep.subr.bf16.mxu1 %v9827_v51  ;;  %v9891_v47 = vld [vmem:[%s13118_s13 + $0x308] ss:$72 sps:$4 sm:$0xff]   ;;  %v9896_v50 = vld [vmem:[%s13118_s13 + $0x44] ss:$72 sps:$4 sm:$0xff]  }
 0xd5c   : > { %v9912_v51 = vld [vmem:[%s13174_s2 + $0x40] sm:$0xff]  }
 0xd5d   : > { %8572 = vmatmul.mubr.msk.bf16.vlgmr.msra.gmra.mrb[32].mxu0 %vm2952_vm3, %v11227_v26  ;;  %8573 = vmatmul.mubr.msk.bf16.vlgmr.msra.gmra.mrb[24].mxu1 %vm2952_vm3, %v11227_v26 }
 0xd5e   : > { %3121 = vmatpush1.bf16.msra.mxu0 %v9822_v52  ;;  %3162 = vmatpush1.bf16.msra.mxu1 %v9825_v2  ;;  %v9894_v52 = vld [vmem:[%s13118_s13 + $0x40] ss:$72 sps:$4 sm:$0xff]   ;;  %v9899_v2 = vld [vmem:[%s13118_s13 + $0xd4] ss:$72 sps:$4 sm:$0xff]  }
 0xd5f   : > { %3122 = vmatprep.subr.bf16.mxu0 %v9830_v4  ;;  %3163 = vmatprep.subr.bf16.mxu1 %v9833_v53  ;;  %v9914_v4 = vld [vmem:[%s13174_s2] sm:$0xff]   ;;  %v9916_v53 = vld [vmem:[%s13174_s2 + $0x48] sm:$0xff]  }
 0xd60   : > { %3152 = vmatprep.mubr.bf16.mxu0 %v10619_v39  ;;  %3193 = vmatprep.mubr.bf16.mxu1 %v10619_v39 }
 0xd62   : > { %3123 = vmatpush1.bf16.msra.mxu0 %v9828_v3  ;;  %3164 = vmatpush1.bf16.msra.mxu1 %v9831_v54  ;;  %v9897_v3 = vld [vmem:[%s13118_s13 + $0xd0] ss:$72 sps:$4 sm:$0xff]   ;;  %v9902_v54 = vld [vmem:[%s13118_s13 + $0x164] ss:$72 sps:$4 sm:$0xff]  }
 0xd63   : > { %3124 = vmatprep.subr.bf16.mxu0 %v9836_v56  ;;  %3165 = vmatprep.subr.bf16.mxu1 %v9839_v57  ;;  %v9918_v56 = vld [vmem:[%s13174_s2 + $0x8] sm:$0xff]   ;;  %v9920_v57 = vld [vmem:[%s13174_s2 + $0x50] sm:$0xff]  }
 0xd66   : > { %3125 = vmatpush1.bf16.msra.mxu0 %v9834_v58  ;;  %3166 = vmatpush1.bf16.msra.mxu1 %v9837_v59  ;;  %v9905_v58 = vld [vmem:[%s13118_s13 + $0x1f4] ss:$72 sps:$4 sm:$0xff]   ;;  %v9903_v59 = vld [vmem:[%s13118_s13 + $0x1f0] ss:$72 sps:$4 sm:$0xff]  }
 0xd67   : > { %3126 = vmatprep.subr.bf16.mxu0 %v9842_v60  ;;  %3167 = vmatprep.subr.bf16.mxu1 %v9845_v61  ;;  %v9908_v60 = vld [vmem:[%s13118_s13 + $0x284] ss:$72 sps:$4 sm:$0xff]   ;;  %v9922_v61 = vld [vmem:[%s13174_s2 + $0x10] sm:$0xff]  }
 0xd6a   : > { %3127 = vmatpush1.bf16.msra.mxu0 %v9840_v62  ;;  %3168 = vmatpush1.bf16.msra.mxu1 %v9843_v63  ;;  %v9906_v62 = vld [vmem:[%s13118_s13 + $0x280] ss:$72 sps:$4 sm:$0xff]   ;;  %v9911_v63 = vld [vmem:[%s13118_s13 + $0x314] ss:$72 sps:$4 sm:$0xff]  }
 0xd6b   : > { %3128 = vmatprep.subr.bf16.mxu0 %v9848_v0  ;;  %3169 = vmatprep.subr.bf16.mxu1 %v9851_v1  ;;  %v9924_v0 = vld [vmem:[%s13174_s2 + $0x58] sm:$0xff]  }
 0xd6c   : > { %v9926_v1 = vld [vmem:[%s13174_s2 + $0x18] sm:$0xff]  }
 0xd6e   : > { %3129 = vmatpush1.bf16.msra.mxu0 %v9846_v6  ;;  %3170 = vmatpush1.bf16.msra.mxu1 %v9849_v7  ;;  %v9909_v6 = vld [vmem:[%s13118_s13 + $0x310] ss:$72 sps:$4 sm:$0xff]   ;;  %v9913_v7 = vld [vmem:[%s13174_s2 + $0xc0] sm:$0xff]  }
 0xd6f   : > { %3130 = vmatprep.subr.bf16.mxu0 %v9854_v8  ;;  %3171 = vmatprep.subr.bf16.mxu1 %v9857_v10  ;;  %v9928_v8 = vld [vmem:[%s13174_s2 + $0x60] sm:$0xff]  }
 0xd70   : > { %v9930_v10 = vld [vmem:[%s13174_s2 + $0x20] sm:$0xff]  }
 0xd72   : > { %3131 = vmatpush1.bf16.msra.mxu0 %v9852_v16  ;;  %3172 = vmatpush1.bf16.msra.mxu1 %v9855_v17  ;;  %v9915_v16 = vld [vmem:[%s13174_s2 + $0x80] sm:$0xff]   ;;  %v9917_v17 = vld [vmem:[%s13174_s2 + $0xc8] sm:$0xff]  }
 0xd73   : > { %3202 = vmatprep.subr.bf16.mxu0 %v9860_v11  ;;  %3243 = vmatprep.subr.bf16.mxu1 %v9863_v12  ;;  %v9932_v11 = vld [vmem:[%s13174_s2 + $0x68] sm:$0xff]  }
 0xd74   : > { %v9934_v12 = vld [vmem:[%s13174_s2 + $0x28] sm:$0xff]  }
 0xd75   : > { %8574 = vmatmul.mubr.msk.bf16.vlgmr.msra.gmra.mrb[36].mxu0 %vm2952_vm3, %v11227_v26  ;;  %8575 = vmatmul.mubr.msk.bf16.vlgmr.msra.gmra.mrb[28].mxu1 %vm2952_vm3, %v11227_v26 }
 0xd76   : > { %3203 = vmatpush1.bf16.msra.mxu0 %v9858_v13  ;;  %3244 = vmatpush1.bf16.msra.mxu1 %v9861_v25  ;;  %v9919_v13 = vld [vmem:[%s13174_s2 + $0x88] sm:$0xff]   ;;  %v9921_v25 = vld [vmem:[%s13174_s2 + $0xd0] sm:$0xff]  }
 0xd77   : > { %3204 = vmatprep.subr.bf16.mxu0 %v9866_v27  ;;  %3245 = vmatprep.subr.bf16.mxu1 %v9869_v40  ;;  %v9936_v27 = vld [vmem:[%s13174_s2 + $0x70] sm:$0xff]  }
 0xd78   : > { %3234 = vmatprep.mubr.bf16.mxu0 %v10619_v39  ;;  %3275 = vmatprep.mubr.bf16.mxu1 %v10619_v39  ;;  %v9923_v40 = vld [vmem:[%s13174_s2 + $0x90] sm:$0xff]  }
 0xd7a   : > { %3205 = vmatpush1.bf16.msra.mxu0 %v9864_v28  ;;  %3246 = vmatpush1.bf16.msra.mxu1 %v9867_v29  ;;  %v9925_v28 = vld [vmem:[%s13174_s2 + $0xd8] sm:$0xff]  }
 0xd7b   : > { %3206 = vmatprep.subr.bf16.mxu0 %v9872_v30  ;;  %3247 = vmatprep.subr.bf16.mxu1 %v9875_v31  ;;  %v9940_v29 = vld [vmem:[%s13174_s2 + $0x78] sm:$0xff]  }
 0xd7c   : > { %v9942_v30 = vld [vmem:[%s13174_s2 + $0x38] sm:$0xff]  }
 0xd7d   : > { %v9927_v31 = vld [vmem:[%s13174_s2 + $0x98] sm:$0xff]  }
 0xd7e   : > { %3207 = vmatpush1.bf16.msra.mxu0 %v9870_v32  ;;  %3248 = vmatpush1.bf16.msra.mxu1 %v9873_v33  ;;  %v9929_v32 = vld [vmem:[%s13174_s2 + $0xe0] sm:$0xff]  }
 0xd7f   : > { %3208 = vmatprep.subr.bf16.mxu0 %v9878_v34  ;;  %3249 = vmatprep.subr.bf16.mxu1 %v9881_v35  ;;  %v9944_v33 = vld [vmem:[%s13174_s2 + $0x140] sm:$0xff]   ;;  %v9933_v35 = vld [vmem:[%s13174_s2 + $0xe8] sm:$0xff]  }
 0xd80   : > { %v9931_v34 = vld [vmem:[%s13174_s2 + $0xa0] sm:$0xff]  }
 0xd82   : > { %3209 = vmatpush1.bf16.msra.mxu0 %v9876_v36  ;;  %3250 = vmatpush1.bf16.msra.mxu1 %v9879_v37  ;;  %v9935_v36 = vld [vmem:[%s13174_s2 + $0xa8] sm:$0xff]   ;;  %v9937_v37 = vld [vmem:[%s13174_s2 + $0xf0] sm:$0xff]  }
 0xd83   : > { %3210 = vmatprep.subr.bf16.mxu0 %v9884_v38  ;;  %3251 = vmatprep.subr.bf16.mxu1 %v9887_v41  ;;  %v9939_v38 = vld [vmem:[%s13174_s2 + $0xb0] sm:$0xff]   ;;  %v9941_v41 = vld [vmem:[%s13174_s2 + $0xf8] sm:$0xff]  }
 0xd86   : > { %3211 = vmatpush1.bf16.msra.mxu0 %v9882_v42  ;;  %3252 = vmatpush1.bf16.msra.mxu1 %v9885_v43  ;;  %v9943_v42 = vld [vmem:[%s13174_s2 + $0xb8] sm:$0xff]   ;;  %v9945_v43 = vld [vmem:[%s13174_s2 + $0x1c0] sm:$0xff]  }
 0xd87   : > { %3212 = vmatprep.subr.bf16.mxu0 %v9890_v44  ;;  %3253 = vmatprep.subr.bf16.mxu1 %v9893_v45 }
 0xd8a   : > { %3213 = vmatpush1.bf16.msra.mxu0 %v9888_v46  ;;  %3254 = vmatpush1.bf16.msra.mxu1 %v9891_v47 }
 0xd8b   : > { %3284 = vmatprep.subr.bf16.mxu0 %v9896_v50  ;;  %9037 = vmatprep.subr.bf16.mxu1 %v9912_v51 }
 0xd8d   : > { %8576 = vmatmul.mubr.msk.bf16.vlgmr.msra.gmra.mrb[40].mxu0 %vm2952_vm3, %v11227_v26  ;;  %8577 = vmatmul.mubr.msk.bf16.vlgmr.msra.gmra.mrb[32].mxu1 %vm2952_vm3, %v11227_v26 }
 0xd8e   : > { %3285 = vmatpush1.bf16.msra.mxu0 %v9894_v52  ;;  %3316 = vmatprep.mubr.bf16.mxu0 %v10619_v39  ;;  %v9900_v39 = vld [vmem:[%s13118_s13 + $0x160] ss:$72 sps:$4 sm:$0xff]  }
 0xd8f   : > { %3286 = vmatprep.subr.bf16.mxu0 %v9899_v2  ;;  %9038 = vmatpush3.bf16.msra.mxu1 %v9914_v4  ;;  %v2872_v4 = vsub.s32 2, %v10965_v48 }
 0xd90   : > { %9039 = vmatprep.subr.bf16.mxu1 %v9916_v53  ;;  %v1979_v53 = vld [vmem:[%s13175_s0] sm:$0xff] }
 0xd92   : > { %3287 = vmatpush1.bf16.msra.mxu0 %v9897_v3  ;;  %v2876_v3 = vsub.s32 3, %v10965_v48 }
 0xd93   : > { %3288 = vmatprep.subr.bf16.mxu0 %v9902_v54  ;;  %9040 = vmatpush3.bf16.msra.mxu1 %v9918_v56  ;;  %v2865_v54 = vrot.slane %v1979_v53, %v10968_v49 }
 0xd94   : > { %9041 = vmatprep.subr.bf16.mxu1 %v9920_v57  ;;  %v2877_v56 = vrot.slane %v1979_v53, %v2876_v3 }
 0xd96   : > { %3289 = vmatpush1.bf16.msra.mxu0 %v9900_v39 }
 0xd97   : > { %3290 = vmatprep.subr.bf16.mxu0 %v9905_v58  ;;  %9042 = vmatpush3.bf16.msra.mxu1 %v9922_v61 }
 0xd98   : > { %9043 = vmatprep.subr.bf16.mxu1 %v9924_v0 }
 0xd9a   : > { %3291 = vmatpush1.bf16.msra.mxu0 %v9903_v59 }
 0xd9b   : > { %3292 = vmatprep.subr.bf16.mxu0 %v9908_v60  ;;  %9044 = vmatpush3.bf16.msra.mxu1 %v9926_v1 }
 0xd9c   : > { %9045 = vmatprep.subr.bf16.mxu1 %v9928_v8 }
 0xd9e   : > { %3293 = vmatpush1.bf16.msra.mxu0 %v9906_v62 }
 0xd9f   : > { %3294 = vmatprep.subr.bf16.mxu0 %v9911_v63  ;;  %9046 = vmatpush3.bf16.msra.mxu1 %v9930_v10 }
 0xda0   : > { %9047 = vmatprep.subr.bf16.mxu1 %v9932_v11 }
 0xda2   : > { %3295 = vmatpush1.bf16.msra.mxu0 %v9909_v6 }
 0xda3   : > { %9059 = vmatprep.subr.bf16.mxu0 %v9913_v7  ;;  %9048 = vmatpush3.bf16.msra.mxu1 %v9934_v12 }
 0xda4   : > { %9049 = vmatprep.subr.bf16.mxu1 %v9936_v27 }
 0xda5   : > { %8578 = vmatmul.mubr.msk.bf16.vlgmr.msra.gmra.mrb[44].mxu0 %vm2952_vm3, %v11227_v26  ;;  %v9938_v26 = vld [vmem:[%s13174_s2 + $0x30] sm:$0xff]  }
 0xda6   : > { %9060 = vmatpush3.bf16.msra.mxu0 %v9915_v16 }
 0xda7   : > { %9061 = vmatprep.subr.bf16.mxu0 %v9917_v17  ;;  %9050 = vmatpush3.bf16.msra.mxu1 %v9938_v26 }
 0xda8   : > { %9051 = vmatprep.subr.bf16.mxu1 %v9940_v29 }
 0xdaa   : > { %9062 = vmatpush3.bf16.msra.mxu0 %v9919_v13 }
 0xdab   : > { %9063 = vmatprep.subr.bf16.mxu0 %v9921_v25  ;;  %9052 = vmatpush3.bf16.msra.mxu1 %v9942_v30 }
 0xdac   : > { %9081 = vmatprep.subr.bf16.mxu1 %v9944_v33  ;;  %v2892_v33 = vsub.s32 7, %v10965_v48 }
 0xdae   : > { %9064 = vmatpush3.bf16.msra.mxu0 %v9923_v40  ;;  %v2880_v40 = vsub.s32 4, %v10965_v48 }
 0xdaf   : > { %9065 = vmatprep.subr.bf16.mxu0 %v9925_v28  ;;  %v2884_v28 = vsub.s32 5, %v10965_v48 }
 0xdb2   : > { %9066 = vmatpush3.bf16.msra.mxu0 %v9927_v31 }
 0xdb3   : > { %9067 = vmatprep.subr.bf16.mxu0 %v9929_v32 }
 0xdb6   : > { %9068 = vmatpush3.bf16.msra.mxu0 %v9931_v34 }
 0xdb7   : > { %9069 = vmatprep.subr.bf16.mxu0 %v9933_v35 }
 0xdba   : > { %9070 = vmatpush3.bf16.msra.mxu0 %v9935_v36 }
 0xdbb   : > { %9071 = vmatprep.subr.bf16.mxu0 %v9937_v37  ;;  %v2888_v37 = vsub.s32 6, %v10965_v48 }
 0xdbe   : > { %9072 = vmatpush3.bf16.msra.mxu0 %v9939_v38 }
 0xdbf   : > { %9073 = vmatprep.subr.bf16.mxu0 %v9941_v41 }
 0xdc2   : > { %9074 = vmatpush3.bf16.msra.mxu0 %v9943_v42 }
 0xdc3   : > { %9103 = vmatprep.subr.bf16.mxu0 %v9945_v43  ;;  %v2881_v43 = vrot.slane %v1979_v53, %v2880_v40 }
 0xdd6   : > { %v1859_v44 = vpop.f32.mrb[16].mxu1 }
 0xdd7   : > { %v1860_v45 = vadd.f32 %v10931_v18, %v1859_v44  ;;  %v9536_v46 = vpop.f32.mrb[17].mxu1  ;;  %v11606_v18 = vsub.s32 1, %v10965_v48 }
 0xdd8   : > { %v1862_v47 = vpop.f32.mrb[18].mxu1  ;;  %v2893_v46 = vrot.slane %v1979_v53, %v2892_v33 }
 0xdd9   : > { %v1866_v50 = vrot.slane %v1860_v45, 2  ;;  %v9537_v51 = vpop.f32.mrb[19].mxu1  ;;  %v2885_v45 = vrot.slane %v1979_v53, %v2884_v28  ;;  %v9946_v47 = vld [vmem:[%s13174_s2 + $0x100] sm:$0xff]  }
 0xdda   : > { %v2889_v51 = vrot.slane %v1979_v53, %v2888_v37 }
 0xddb   : > { %v1868_v52 = vadd.f32 %v1866_v50, %v11079_v5  ;;  %v1869_v2 = vadd.f32 %v1866_v50, %v11081_v9  ;;  %v2873_v5 = vrot.slane %v1979_v53, %v2872_v4  ;;  %v2869_v9 = vrot.slane %v1979_v53, %v11606_v18 }
 0xddd   : > { %4692 = vst.msk [vmem:[#allocation2] sm:$0xc0] %vm1690_vm14, %v1868_v52 }
 0xdde   : > { %4693 = vst.msk [vmem:[#allocation2 + $0x8] sm:$0x3] %vm1004_vm6, %v1869_v2  ;;  %v9947_v2 = vld [vmem:[%s13174_s2 + $0x180] sm:$0xff]   ;;  %vm4685_vm6 = vcmask 1042432  }
 0xe18   : > { %v2990_v57 = vpop.f32.mrb[28].mxu0  ;;  %v3031_v39 = vpop.f32.mrb[20].mxu1 }
 0xe19   : > { %v2991_v58 = vadd.f32 %v2990_v57, %v2865_v54  ;;  %v3032_v59 = vadd.f32 %v3031_v39, %v2873_v5  ;;  %v2992_v60 = vpop.f32.mrb[29].mxu0  ;;  %v3033_v61 = vpop.f32.mrb[21].mxu1  ;;  %v9948_v54 = vld [vmem:[%s13174_s2 + $0x148] sm:$0xff]  }
 0xe1a   : > { %v2993_v62 = vadd.f32 %v2992_v60, %v2869_v9  ;;  %v3034_v63 = vadd.f32 %v3033_v61, %v2877_v56  ;;  %v2994_v0 = vpop.f32.mrb[30].mxu0  ;;  %v3035_v1 = vpop.f32.mrb[22].mxu1  ;;  %v9949_v57 = vld [vmem:[%s13174_s2 + $0x1c8] sm:$0xff]  }
 0xe1b   : > { %v3343_v6 = vmul.f32 0.70710677, %v2991_v58  ;;  %v3345_v7 = vmul.f32 0.70710677, %v3032_v59  ;;  %v2995_v16 = vpop.f32.mrb[31].mxu0  ;;  %v3036_v17 = vpop.f32.mrb[23].mxu1 }
 0xe1c   : > { %v3344_v8 = vmul.f32 0.70710677, %v2993_v62  ;;  %v3346_v10 = vmul.f32 0.70710677, %v3034_v63  ;;  %v3325_v27 = vmul.f32 0.5, %v2991_v58  ;;  %v3327_v30 = vmul.f32 0.5, %v3032_v59 }
 0xe1d   : > { %10100 = verf.f32 %v3343_v6  ;;  %v3326_v31 = vmul.f32 0.5, %v2993_v62  ;;  %v3328_v35 = vmul.f32 0.5, %v3034_v63  ;;  %v9950_v63 = vld [vmem:[%s13174_s2 + $0x108] sm:$0xff]   ;;  %v9952_v6 = vld [vmem:[%s13174_s2 + $0x150] sm:$0xff]  }
 0xe1e   : > { %10102 = verf.f32 %v3345_v7  ;;  %v9951_v1 = vld [vmem:[%s13174_s2 + $0x188] sm:$0xff]  }
 0xe1f   : > { %10104 = verf.f32 %v3344_v8 }
 0xe20   : > { %10106 = verf.f32 %v3346_v10  ;;  %v9953_v10 = vld [vmem:[%s13174_s2 + $0x1d0] sm:$0xff]  }
 0xe27   : > { %v10101_v11 = vpop.eup %10100 }
 0xe28   : > { %v10103_v12 = vpop.eup %10102  ;;  %v3379_v13 = vadd.f32 1.0, %v10101_v11 }
 0xe29   : > { %v10105_v25 = vpop.eup %10104  ;;  %v3381_v26 = vadd.f32 1.0, %v10103_v12  ;;  %v9954_v12 = vld [vmem:[%s13174_s2 + $0x110] sm:$0xff]  }
 0xe2a   : > { %v10107_v29 = vpop.eup %10106  ;;  %v3380_v32 = vadd.f32 1.0, %v10105_v25  ;;  %v3397_v34 = vmul.f32 %v3379_v13, %v3325_v27  ;;  %v9955_v25 = vld [vmem:[%s13174_s2 + $0x190] sm:$0xff]   ;;  %v9956_v27 = vld [vmem:[%s13174_s2 + $0x158] sm:$0xff]  }
 0xe2b   : > { %v3382_v36 = vadd.f32 1.0, %v10107_v29  ;;  %v3399_v38 = vmul.f32 %v3381_v26, %v3327_v30  ;;  %v9957_v26 = vld [vmem:[%s13174_s2 + $0x1d8] sm:$0xff]  }
 0xe2c   : > { %v3398_v41 = vmul.f32 %v3380_v32, %v3326_v31  ;;  %v3415_v50 = vpack.c.bf16 %v3397_v34, %v3397_v34  ;;  %v9958_v29 = vld [vmem:[%s13174_s2 + $0x118] sm:$0xff]   ;;  %v9960_v31 = vld [vmem:[%s13174_s2 + $0x160] sm:$0xff]  }
 0xe2d   : > { %v3400_v42 = vmul.f32 %v3382_v36, %v3328_v35  ;;  %v3417_v5 = vpack.c.bf16 %v3399_v38, %v3399_v38  ;;  %v9959_v30 = vld [vmem:[%s13174_s2 + $0x198] sm:$0xff]   ;;  %v9961_v32 = vld [vmem:[%s13174_s2 + $0x1e0] sm:$0xff]   ;;  %v9964_v36 = vld [vmem:[%s13174_s2 + $0x168] sm:$0xff]  }
 0xe2e   : > { %v3416_v44 = vpack.c.bf16 %v3398_v41, %v3398_v41  ;;  %v9962_v34 = vld [vmem:[%s13174_s2 + $0x120] sm:$0xff]   ;;  %v9965_v38 = vld [vmem:[%s13174_s2 + $0x1e8] sm:$0xff]  }
 0xe2f   : > { %v3418_v52 = vpack.c.bf16 %v3400_v42, %v3400_v42  ;;  %v9963_v35 = vld [vmem:[%s13174_s2 + $0x1a0] sm:$0xff]  }
 0xe30   : > { %v3072_v9 = vpop.f32.mrb[32].mxu0  ;;  %v3113_v56 = vpop.f32.mrb[24].mxu1  ;;  %4331 = vmatprep.mubr.bf16.mxu1 %v3416_v44 }
 0xe31   : > { %4371 = vmatprep.mubr.bf16.mxu0 %v3418_v52  ;;  %v3074_v39 = vpop.f32.mrb[33].mxu0  ;;  %v3115_v53 = vpop.f32.mrb[25].mxu1  ;;  %4332 = vmatmul.mubr.bf16.vlgmr.msra.gmra.mrb[36].mxu1 %v3415_v50  ;;  %v11639_v58 = vadd.f32 %v3072_v9, %v2881_v43  ;;  %v11644_v0 = vadd.f32 %v3113_v56, %v2889_v51  ;;  %v9967_v51 = vld [vmem:[%s13174_s2 + $0x1a8] sm:$0xff]   ;;  %v9968_v52 = vld [vmem:[%s13174_s2 + $0x170] sm:$0xff]  }
 0xe32   : > { %v3075_v59 = vadd.f32 %v3074_v39, %v2885_v45  ;;  %v3116_v60 = vadd.f32 %v3115_v53, %v2893_v46  ;;  %4372 = vmatmul.mubr.bf16.vlgmr.msra.gmra.mrb[48].mxu0 %v3417_v5  ;;  %9082 = vmatpush3.bf16.msra.mxu1 %v9946_v47  ;;  %v3076_v61 = vpop.f32.mrb[34].mxu0  ;;  %v3117_v62 = vpop.f32.mrb[26].mxu1  ;;  %v9966_v45 = vld [vmem:[%s13174_s2 + $0x128] sm:$0xff]   ;;  %v9969_v5 = vld [vmem:[%s13174_s2 + $0x1f0] sm:$0xff]  }
 0xe33   : > { %9104 = vmatpush3.bf16.msra.mxu0 %v9947_v2  ;;  %9083 = vmatprep.subr.bf16.mxu1 %v9948_v54  ;;  %v3077_v16 = vpop.f32.mrb[35].mxu0  ;;  %v3118_v17 = vpop.f32.mrb[27].mxu1  ;;  %v3347_v11 = vmul.f32 0.70710677, %v11639_v58  ;;  %v3349_v13 = vmul.f32 0.70710677, %v11644_v0 }
 0xe34   : > { %v3348_v7 = vmul.f32 0.70710677, %v3075_v59  ;;  %v3350_v8 = vmul.f32 0.70710677, %v3116_v60  ;;  %9105 = vmatprep.subr.bf16.mxu0 %v9949_v57  ;;  %v3330_v43 = vmul.f32 0.5, %v3075_v59  ;;  %v11699_v46 = vld [vmem:[%s13175_s0 + $0x8] sm:$0xff] }
 0xe35   : > { %v3332_v47 = vmul.f32 0.5, %v3116_v60  ;;  %v2905_v57 = vrot.slane %v11699_v46, %v2872_v4  ;;  %v2901_v53 = vrot.slane %v11699_v46, %v11606_v18  ;;  %v2909_v59 = vrot.slane %v11699_v46, %v2876_v3  ;;  %v9970_v60 = vld [vmem:[%s13174_s2 + $0x130] sm:$0xff]  }
 0xe36   : > { %9084 = vmatpush3.bf16.msra.mxu1 %v9950_v63  ;;  %10108 = verf.f32 %v3348_v7  ;;  %v9971_v4 = vld [vmem:[%s13174_s2 + $0x1b0] sm:$0xff]   ;;  %v9972_v63 = vld [vmem:[%s13174_s2 + $0x178] sm:$0xff]  }
 0xe37   : > { %9106 = vmatpush3.bf16.msra.mxu0 %v9951_v1  ;;  %9085 = vmatprep.subr.bf16.mxu1 %v9952_v6  ;;  %10110 = verf.f32 %v3350_v8  ;;  %v9973_v7 = vld [vmem:[%s13174_s2 + $0x1f8] sm:$0xff]   ;;  %v3329_v8 = vmul.f32 0.5, %v11639_v58 }
 0xe38   : > { %9107 = vmatprep.subr.bf16.mxu0 %v9953_v10  ;;  %10112 = verf.f32 %v3347_v11  ;;  %v3331_v11 = vmul.f32 0.5, %v11644_v0  ;;  %v9975_v58 = vld [vmem:[%s13174_s2 + $0x1b8] sm:$0xff]   ;;  %v9976_v0 = vld [vmem:[%s13174_s2 + $0x240] sm:$0xff]  }
 0xe39   : > { %10114 = verf.f32 %v3349_v13 }
 0xe3a   : > { %9086 = vmatpush3.bf16.msra.mxu1 %v9954_v12 }
 0xe3b   : > { %9108 = vmatpush3.bf16.msra.mxu0 %v9955_v25  ;;  %9087 = vmatprep.subr.bf16.mxu1 %v9956_v27 }
 0xe3c   : > { %9109 = vmatprep.subr.bf16.mxu0 %v9957_v26  ;;  %v9974_v26 = vld [vmem:[%s13174_s2 + $0x138] sm:$0xff]  }
 0xe3e   : > { %9088 = vmatpush3.bf16.msra.mxu1 %v9958_v29 }
 0xe3f   : > { %9110 = vmatpush3.bf16.msra.mxu0 %v9959_v30  ;;  %9089 = vmatprep.subr.bf16.mxu1 %v9960_v31 }
 0xe40   : > { %9111 = vmatprep.subr.bf16.mxu0 %v9961_v32  ;;  %v10109_v41 = vpop.eup %10108 }
 0xe41   : > { %v10111_v42 = vpop.eup %10110  ;;  %v3384_v44 = vadd.f32 1.0, %v10109_v41  ;;  %v9978_v41 = vld [vmem:[%s13174_s2 + $0x200] sm:$0xff]  }
 0xe42   : > { %9090 = vmatpush3.bf16.msra.mxu1 %v9962_v34  ;;  %v3386_v50 = vadd.f32 1.0, %v10111_v42  ;;  %v10113_v2 = vpop.eup %10112  ;;  %v9977_v34 = vld [vmem:[%s13174_s2 + $0x2c0] sm:$0xff]  }
 0xe43   : > { %9112 = vmatpush3.bf16.msra.mxu0 %v9963_v35  ;;  %9091 = vmatprep.subr.bf16.mxu1 %v9964_v36  ;;  %v3402_v54 = vmul.f32 %v3384_v44, %v3330_v43  ;;  %v10115_v9 = vpop.eup %10114  ;;  %v3383_v61 = vadd.f32 1.0, %v10113_v2  ;;  %v9979_v43 = vld [vmem:[%s13174_s2 + $0x280] sm:$0xff]   ;;  %v9980_v44 = vld [vmem:[%s13174_s2 + $0x248] sm:$0xff]   ;;  %v9984_v2 = vld [vmem:[%s13174_s2 + $0x250] sm:$0xff]  }
 0xe44   : > { %9113 = vmatprep.subr.bf16.mxu0 %v9965_v38  ;;  %v3404_v56 = vmul.f32 %v3386_v50, %v3332_v47  ;;  %v3385_v1 = vadd.f32 1.0, %v10115_v9  ;;  %v2897_v38 = vrot.slane %v11699_v46, %v10968_v49  ;;  %v9981_v47 = vld [vmem:[%s13174_s2 + $0x2c8] sm:$0xff]   ;;  %v9986_v9 = vld [vmem:[%s13174_s2 + $0x210] sm:$0xff]  }
 0xe45   : > { %v3420_v39 = vpack.c.bf16 %v3402_v54, %v3402_v54  ;;  %v3401_v29 = vmul.f32 %v3383_v61, %v3329_v8  ;;  %v9985_v54 = vld [vmem:[%s13174_s2 + $0x2d0] sm:$0xff]   ;;  %v9993_v8 = vld [vmem:[%s13174_s2 + $0x2e0] sm:$0xff]  }
 0xe46   : > { %9092 = vmatpush3.bf16.msra.mxu1 %v9966_v45  ;;  %v3422_v62 = vpack.c.bf16 %v3404_v56, %v3404_v56  ;;  %v3403_v30 = vmul.f32 %v3385_v1, %v3331_v11  ;;  %v2921_v11 = vrot.slane %v11699_v46, %v2888_v37  ;;  %v9995_v37 = vld [vmem:[%s13174_s2 + $0x2a0] sm:$0xff]  }
 0xe47   : > { %9114 = vmatpush3.bf16.msra.mxu0 %v9967_v51  ;;  %9093 = vmatprep.subr.bf16.mxu1 %v9968_v52  ;;  %v3419_v42 = vpack.c.bf16 %v3401_v29, %v3401_v29  ;;  %v9982_v51 = vld [vmem:[%s13174_s2 + $0x208] sm:$0xff]  }
 0xe48   : > { %4411 = vmatprep.mubr.bf16.mxu1 %v3420_v39  ;;  %v3154_v6 = vpop.f32.mrb[36].mxu0  ;;  %v3195_v3 = vpop.f32.mrb[28].mxu1  ;;  %9115 = vmatprep.subr.bf16.mxu0 %v9969_v5  ;;  %v3421_v45 = vpack.c.bf16 %v3403_v30, %v3403_v30  ;;  %v9983_v52 = vld [vmem:[%s13174_s2 + $0x288] sm:$0xff]   ;;  %v9988_v39 = vld [vmem:[%s13174_s2 + $0x258] sm:$0xff]  }
 0xe49   : > { %4451 = vmatprep.mubr.bf16.mxu0 %v3422_v62  ;;  %v11731_v10 = vadd.f32 %v3195_v3, %v2905_v57  ;;  %v3156_v16 = vpop.f32.mrb[37].mxu0  ;;  %v3197_v17 = vpop.f32.mrb[29].mxu1  ;;  %v11760_v50 = vadd.f32 %v3154_v6, %v2897_v38  ;;  %v9987_v57 = vld [vmem:[%s13174_s2 + $0x290] sm:$0xff]   ;;  %v9991_v6 = vld [vmem:[%s13174_s2 + $0x298] sm:$0xff]   ;;  %v9992_v3 = vld [vmem:[%s13174_s2 + $0x260] sm:$0xff]  }
 0xe4a   : > { %v3157_v12 = vadd.f32 %v3156_v16, %v2901_v53  ;;  %v3198_v13 = vadd.f32 %v3197_v17, %v2909_v59  ;;  %9094 = vmatpush3.bf16.msra.mxu1 %v9970_v60  ;;  %v3158_v25 = vpop.f32.mrb[38].mxu0  ;;  %v3199_v27 = vpop.f32.mrb[30].mxu1  ;;  %v9989_v53 = vld [vmem:[%s13174_s2 + $0x2d8] sm:$0xff]   ;;  %v2913_v17 = vrot.slane %v11699_v46, %v2880_v40  ;;  %v10000_v38 = vld [vmem:[%s13174_s2 + $0x270] sm:$0xff]  }
 0xe4b   : > { %9116 = vmatpush3.bf16.msra.mxu0 %v9971_v4  ;;  %9095 = vmatprep.subr.bf16.mxu1 %v9972_v63  ;;  %v3159_v35 = vpop.f32.mrb[39].mxu0  ;;  %v3200_v36 = vpop.f32.mrb[31].mxu1  ;;  %v3351_v5 = vmul.f32 0.70710677, %v11760_v50  ;;  %v3353_v56 = vmul.f32 0.70710677, %v11731_v10  ;;  %v2925_v25 = vrot.slane %v11699_v46, %v2892_v33 }
 0xe4c   : > { %v3352_v31 = vmul.f32 0.70710677, %v3157_v12  ;;  %v3354_v32 = vmul.f32 0.70710677, %v3198_v13  ;;  %9117 = vmatprep.subr.bf16.mxu0 %v9973_v7  ;;  %v3334_v61 = vmul.f32 0.5, %v3157_v12  ;;  %v9990_v4 = vld [vmem:[%s13174_s2 + $0x218] sm:$0xff]  }
 0xe4d   : > { %v3336_v63 = vmul.f32 0.5, %v3198_v13  ;;  %v2917_v13 = vrot.slane %v11699_v46, %v2884_v28  ;;  %v9994_v27 = vld [vmem:[%s13174_s2 + $0x220] sm:$0xff]   ;;  %v9997_v33 = vld [vmem:[%s13174_s2 + $0x2e8] sm:$0xff]  }
 0xe4e   : > { %9096 = vmatpush3.bf16.msra.mxu1 %v9974_v26  ;;  %10116 = verf.f32 %v3352_v31  ;;  %v9996_v26 = vld [vmem:[%s13174_s2 + $0x268] sm:$0xff]  }
 0xe4f   : > { %9118 = vmatpush3.bf16.msra.mxu0 %v9975_v58  ;;  %9125 = vmatprep.subr.bf16.mxu1 %v9976_v0  ;;  %10118 = verf.f32 %v3354_v32  ;;  %v9998_v35 = vld [vmem:[%s13174_s2 + $0x228] sm:$0xff]  }
 0xe50   : > { %9147 = vmatprep.subr.bf16.mxu0 %v9977_v34  ;;  %10120 = verf.f32 %v3351_v5  ;;  %v9999_v36 = vld [vmem:[%s13174_s2 + $0x2a8] sm:$0xff]   ;;  %v10004_v5 = vld [vmem:[%s13174_s2 + $0x278] sm:$0xff]  }
 0xe51   : > { %4412 = vmatmul.mubr.bf16.vlgmr.msra.gmra.mrb[40].mxu1 %v3419_v42  ;;  %10122 = verf.f32 %v3353_v56  ;;  %v10005_v56 = vld [vmem:[%s13174_s2 + $0x2f8] sm:$0xff]  }
 0xe52   : > { %4452 = vmatmul.mubr.bf16.vlgmr.msra.gmra.mrb[52].mxu0 %v3421_v45  ;;  %9126 = vmatpush3.bf16.msra.mxu1 %v9978_v41 }
 0xe53   : > { %9148 = vmatpush3.bf16.msra.mxu0 %v9979_v43  ;;  %9127 = vmatprep.subr.bf16.mxu1 %v9980_v44  ;;  %v10001_v44 = vld [vmem:[%s13174_s2 + $0x2f0] sm:$0xff]  }
 0xe54   : > { %9149 = vmatprep.subr.bf16.mxu0 %v9981_v47 }
 0xe56   : > { %9128 = vmatpush3.bf16.msra.mxu1 %v9982_v51 }
 0xe57   : > { %9150 = vmatpush3.bf16.msra.mxu0 %v9983_v52  ;;  %9129 = vmatprep.subr.bf16.mxu1 %v9984_v2  ;;  %v10002_v52 = vld [vmem:[%s13174_s2 + $0x230] sm:$0xff]  }
 0xe58   : > { %9151 = vmatprep.subr.bf16.mxu0 %v9985_v54  ;;  %v10117_v59 = vpop.eup %10116  ;;  %v10003_v54 = vld [vmem:[%s13174_s2 + $0x2b0] sm:$0xff]  }
 0xe59   : > { %v10119_v60 = vpop.eup %10118  ;;  %v3388_v62 = vadd.f32 1.0, %v10117_v59 }
 0xe5a   : > { %9130 = vmatpush3.bf16.msra.mxu1 %v9986_v9  ;;  %v3390_v1 = vadd.f32 1.0, %v10119_v60  ;;  %v10121_v41 = vpop.eup %10120  ;;  %v10007_v60 = vld [vmem:[%s13174_s2 + $0x2b8] sm:$0xff]  }
 0xe5b   : > { %9152 = vmatpush3.bf16.msra.mxu0 %v9987_v57  ;;  %9131 = vmatprep.subr.bf16.mxu1 %v9988_v39  ;;  %v3406_v7 = vmul.f32 %v3388_v62, %v3334_v61  ;;  %v10123_v45 = vpop.eup %10122  ;;  %v3387_v2 = vadd.f32 1.0, %v10121_v41  ;;  %v3333_v57 = vmul.f32 0.5, %v11760_v50  ;;  %v3335_v39 = vmul.f32 0.5, %v11731_v10  ;;  %v10008_v61 = vld [vmem:[%s13174_s2 + $0x340] sm:$0xff]  }
 0xe5c   : > { %9153 = vmatprep.subr.bf16.mxu0 %v9989_v53  ;;  %v3408_v16 = vmul.f32 %v3390_v1, %v3336_v63  ;;  %v3389_v9 = vadd.f32 1.0, %v10123_v45  ;;  %v10006_v53 = vld [vmem:[%s13174_s2 + $0x238] sm:$0xff]   ;;  %v10009_v10 = vld [vmem:[%s13174_s2 + $0x3c0] sm:$0xff]   ;;  %v10012_v1 = vld [vmem:[%s13174_s2 + $0x348] sm:$0xff]  }
 0xe5d   : > { %v3424_v12 = vpack.c.bf16 %v3406_v7, %v3406_v7  ;;  %v3405_v59 = vmul.f32 %v3387_v2, %v3333_v57  ;;  %v10010_v50 = vld [vmem:[%s13174_s2 + $0x300] sm:$0xff]   ;;  %v10032_v57 = vld [vmem:[%s13174_s2 + $0x370] sm:$0xff]  }
 0xe5e   : > { %9132 = vmatpush3.bf16.msra.mxu1 %v9990_v4  ;;  %v3426_v40 = vpack.c.bf16 %v3408_v16, %v3408_v16  ;;  %v3407_v62 = vmul.f32 %v3389_v9, %v3335_v39  ;;  %v10011_v63 = vld [vmem:[%s13174_s2 + $0x380] sm:$0xff]   ;;  %v10030_v9 = vld [vmem:[%s13174_s2 + $0x328] sm:$0xff]  }
 0xe5f   : > { %9154 = vmatpush3.bf16.msra.mxu0 %v9991_v6  ;;  %9133 = vmatprep.subr.bf16.mxu1 %v9992_v3  ;;  %v3423_v4 = vpack.c.bf16 %v3405_v59, %v3405_v59  ;;  %v10013_v3 = vld [vmem:[%s13174_s2 + $0x3c8] sm:$0xff]   ;;  %v10024_v45 = vld [vmem:[%s13174_s2 + $0x360] sm:$0xff]  }
 0xe60   : > { %4491 = vmatprep.mubr.bf16.mxu1 %v3424_v12  ;;  %v3236_v28 = vpop.f32.mrb[40].mxu0  ;;  %v3277_v48 = vpop.f32.mrb[32].mxu1  ;;  %9155 = vmatprep.subr.bf16.mxu0 %v9993_v8  ;;  %v3425_v6 = vpack.c.bf16 %v3407_v62, %v3407_v62  ;;  %v10027_v2 = vld [vmem:[%s13174_s2 + $0x3a0] sm:$0xff]   ;;  %v10035_v62 = vld [vmem:[%s13174_s2 + $0x3b0] sm:$0xff]  }
 0xe61   : > { %4531 = vmatprep.mubr.bf16.mxu0 %v3426_v40  ;;  %v11824_v46 = vadd.f32 %v3236_v28, %v2913_v17  ;;  %v11826_v29 = vadd.f32 %v3277_v48, %v2921_v11  ;;  %v3238_v58 = vpop.f32.mrb[41].mxu0  ;;  %v3279_v0 = vpop.f32.mrb[33].mxu1  ;;  %v10014_v11 = vld [vmem:[%s13174_s2 + $0x308] sm:$0xff]   ;;  %v10016_v40 = vld [vmem:[%s13174_s2 + $0x350] sm:$0xff]  }
 0xe62   : > { %v3239_v30 = vadd.f32 %v3238_v58, %v2917_v13  ;;  %v3280_v31 = vadd.f32 %v3279_v0, %v2925_v25  ;;  %9134 = vmatpush3.bf16.msra.mxu1 %v9994_v27  ;;  %v3240_v32 = vpop.f32.mrb[42].mxu0  ;;  %v3281_v34 = vpop.f32.mrb[34].mxu1  ;;  %v10015_v25 = vld [vmem:[%s13174_s2 + $0x388] sm:$0xff]   ;;  %v11887_v27 = vld [vmem:[%s13175_s0 + $0x10] sm:$0x3] }
 0xe63   : > { %9156 = vmatpush3.bf16.msra.mxu0 %v9995_v37  ;;  %9135 = vmatprep.subr.bf16.mxu1 %v9996_v26  ;;  %v3241_v47 = vpop.f32.mrb[43].mxu0  ;;  %v3282_v51 = vpop.f32.mrb[35].mxu1  ;;  %v10017_v26 = vld [vmem:[%s13174_s2 + $0x3d0] sm:$0xff]   ;;  %v3355_v48 = vmul.f32 0.70710677, %v11824_v46  ;;  %v2933_v58 = vrot.slane %v11887_v27, %v11606_v18  ;;  %v10020_v34 = vld [vmem:[%s13174_s2 + $0x358] sm:$0xff]  }
 0xe64   : > { %v3356_v42 = vmul.f32 0.70710677, %v3239_v30  ;;  %v3358_v43 = vmul.f32 0.70710677, %v3280_v31  ;;  %9157 = vmatprep.subr.bf16.mxu0 %v9997_v33  ;;  %v3338_v16 = vmul.f32 0.5, %v3239_v30  ;;  %v3340_v12 = vmul.f32 0.5, %v3280_v31 }
 0xe65   : > { %v10018_v0 = vld [vmem:[%s13174_s2 + $0x310] sm:$0xff]   ;;  %v3357_v30 = vmul.f32 0.70710677, %v11826_v29  ;;  %v10021_v18 = vld [vmem:[%s13174_s2 + $0x3d8] sm:$0xff]   ;;  %v10025_v51 = vld [vmem:[%s13174_s2 + $0x3e0] sm:$0xff]  }
 0xe66   : > { %9136 = vmatpush3.bf16.msra.mxu1 %v9998_v35  ;;  %10124 = verf.f32 %v3356_v42  ;;  %v10019_v32 = vld [vmem:[%s13174_s2 + $0x390] sm:$0xff]   ;;  %v10022_v42 = vld [vmem:[%s13174_s2 + $0x318] sm:$0xff]  }
 0xe67   : > { %9158 = vmatpush3.bf16.msra.mxu0 %v9999_v36  ;;  %9137 = vmatprep.subr.bf16.mxu1 %v10000_v38  ;;  %10126 = verf.f32 %v3358_v43 }
 0xe68   : > { %9159 = vmatprep.subr.bf16.mxu0 %v10001_v44  ;;  %10128 = verf.f32 %v3355_v48  ;;  %v10023_v44 = vld [vmem:[%s13174_s2 + $0x398] sm:$0xff]  }
 0xe69   : > { %10130 = verf.f32 %v3357_v30  ;;  %v10048_v30 = vld [vmem:[%s13174_s2 + $0x460] sm:$0xff]  }
 0xe6a   : > { %9138 = vmatpush3.bf16.msra.mxu1 %v10002_v52  ;;  %v10026_v52 = vld [vmem:[%s13174_s2 + $0x320] sm:$0xff]  }
 0xe6b   : > { %9160 = vmatpush3.bf16.msra.mxu0 %v10003_v54  ;;  %9139 = vmatprep.subr.bf16.mxu1 %v10004_v5  ;;  %v10028_v54 = vld [vmem:[%s13174_s2 + $0x368] sm:$0xff]  }
 0xe6c   : > { %9161 = vmatprep.subr.bf16.mxu0 %v10005_v56  ;;  %v10029_v5 = vld [vmem:[%s13174_s2 + $0x3e8] sm:$0xff]  }
 0xe6d   : > { %v10031_v56 = vld [vmem:[%s13174_s2 + $0x3a8] sm:$0xff]  }
 0xe6e   : > { %9140 = vmatpush3.bf16.msra.mxu1 %v10006_v53  ;;  %v10033_v53 = vld [vmem:[%s13174_s2 + $0x3f0] sm:$0xff]  }
 0xe6f   : > { %9162 = vmatpush3.bf16.msra.mxu0 %v10007_v60  ;;  %9169 = vmatprep.subr.bf16.mxu1 %v10008_v61  ;;  %v10034_v60 = vld [vmem:[%s13174_s2 + $0x330] sm:$0xff]  }
 0xe70   : > { %9191 = vmatprep.subr.bf16.mxu0 %v10009_v10  ;;  %v10125_v7 = vpop.eup %10124  ;;  %v10036_v10 = vld [vmem:[%s13174_s2 + $0x378] sm:$0xff]  }
 0xe71   : > { %4492 = vmatmul.mubr.bf16.vlgmr.msra.gmra.mrb[44].mxu1 %v3423_v4  ;;  %v10127_v8 = vpop.eup %10126  ;;  %v3392_v17 = vadd.f32 1.0, %v10125_v7  ;;  %v10038_v7 = vld [vmem:[%s13174_s2 + $0x338] sm:$0xff]  }
 0xe72   : > { %4532 = vmatmul.mubr.bf16.vlgmr.msra.gmra.mrb[56].mxu0 %v3425_v6  ;;  %9170 = vmatpush3.bf16.msra.mxu1 %v10010_v50  ;;  %v3394_v13 = vadd.f32 1.0, %v10127_v8  ;;  %v10129_v39 = vpop.eup %10128 }
 0xe73   : > { %9192 = vmatpush3.bf16.msra.mxu0 %v10011_v63  ;;  %9171 = vmatprep.subr.bf16.mxu1 %v10012_v1  ;;  %v3410_v37 = vmul.f32 %v3392_v17, %v3338_v16  ;;  %v10131_v59 = vpop.eup %10130  ;;  %v3391_v61 = vadd.f32 1.0, %v10129_v39  ;;  %v10037_v63 = vld [vmem:[%s13174_s2 + $0x3f8] sm:$0xff]   ;;  %v3337_v1 = vmul.f32 0.5, %v11824_v46  ;;  %v10040_v46 = vld [vmem:[%s13174_s2 + $0x440] sm:$0xff]  }
 0xe74   : > { %9193 = vmatprep.subr.bf16.mxu0 %v10013_v3  ;;  %v3412_v28 = vmul.f32 %v3394_v13, %v3340_v12  ;;  %v3393_v4 = vadd.f32 1.0, %v10131_v59  ;;  %v3339_v3 = vmul.f32 0.5, %v11826_v29  ;;  %v10039_v17 = vld [vmem:[%s13174_s2 + $0x3b8] sm:$0xff]   ;;  %v2929_v12 = vrot.slane %v11887_v27, %v10968_v49  ;;  %v10041_v13 = vld [vmem:[%s13174_s2 + $0x400] sm:$0xff]   ;;  %v10043_v49 = vld [vmem:[%s13174_s2 + $0x408] sm:$0xff]  }
 0xe75   : > { %v3428_v33 = vpack.c.bf16 %v3410_v37, %v3410_v37  ;;  %v3409_v8 = vmul.f32 %v3391_v61, %v3337_v1  ;;  %v10044_v27 = vld [vmem:[%s13174_s2 + $0x450] sm:$0xff]  }
 0xe76   : > { %9172 = vmatpush3.bf16.msra.mxu1 %v10014_v11  ;;  %v3430_v31 = vpack.c.bf16 %v3412_v28, %v3412_v28  ;;  %v3411_v11 = vmul.f32 %v3393_v4, %v3339_v3 }
 0xe77   : > { %9194 = vmatpush3.bf16.msra.mxu0 %v10015_v25  ;;  %9173 = vmatprep.subr.bf16.mxu1 %v10016_v40  ;;  %v3427_v25 = vpack.c.bf16 %v3409_v8, %v3409_v8  ;;  %v10042_v40 = vld [vmem:[%s13174_s2 + $0x448] sm:$0xff]  }
 0xe78   : > { %4571 = vmatprep.mubr.bf16.mxu1 %v3428_v33  ;;  %v11908_v35 = vpop.f32.mrb[44].mxu0  ;;  %9195 = vmatprep.subr.bf16.mxu0 %v10017_v26  ;;  %v3429_v37 = vpack.c.bf16 %v3411_v11, %v3411_v11  ;;  %v10045_v33 = vld [vmem:[%s13174_s2 + $0x410] sm:$0xff]  }
 0xe79   : > { %4611 = vmatprep.mubr.bf16.mxu0 %v3430_v31  ;;  %v3320_v36 = vpop.f32.mrb[45].mxu0  ;;  %v3319_v28 = vadd.f32 %v11908_v35, %v2929_v12  ;;  %v10049_v31 = vld [vmem:[%s13174_s2 + $0x420] sm:$0xff]   ;;  %v10052_v35 = vld [vmem:[%s13174_s2 + $0x470] sm:$0xff]  }
 0xe7a   : > { %v3321_v38 = vadd.f32 %v3320_v36, %v2933_v58  ;;  %9174 = vmatpush3.bf16.msra.mxu1 %v10018_v0  ;;  %v3322_v41 = vpop.f32.mrb[46].mxu0  ;;  %v10046_v58 = vld [vmem:[%s13174_s2 + $0x458] sm:$0xff]   ;;  %v10053_v36 = vld [vmem:[%s13174_s2 + $0x430] sm:$0xff]  }
 0xe7b   : > { %9196 = vmatpush3.bf16.msra.mxu0 %v10019_v32  ;;  %v3323_v43 = vpop.f32.mrb[47].mxu0  ;;  %9175 = vmatprep.subr.bf16.mxu1 %v10020_v34  ;;  %v3359_v48 = vmul.f32 0.70710677, %v3319_v28  ;;  %v10047_v0 = vld [vmem:[%s13174_s2 + $0x418] sm:$0xff]   ;;  %v10050_v32 = vld [vmem:[%s13174_s2 + $0x468] sm:$0xff]  }
 0xe7c   : > { %v3360_v47 = vmul.f32 0.70710677, %v3321_v38  ;;  %9197 = vmatprep.subr.bf16.mxu0 %v10021_v18  ;;  %v3342_v16 = vmul.f32 0.5, %v3321_v38  ;;  %v10051_v34 = vld [vmem:[%s13174_s2 + $0x428] sm:$0xff]   ;;  %v10054_v41 = vld [vmem:[%s13174_s2 + $0x478] sm:$0xff]  }
 0xe7d   : > { %v10055_v43 = vld [vmem:[%s13174_s2 + $0x438] sm:$0xff]  }
 0xe7e   : > { %10132 = verf.f32 %v3360_v47  ;;  %9176 = vmatpush3.bf16.msra.mxu1 %v10022_v42  ;;  %v3341_v42 = vmul.f32 0.5, %v3319_v28 }
 0xe7f   : > { %9198 = vmatpush3.bf16.msra.mxu0 %v10023_v44  ;;  %9177 = vmatprep.subr.bf16.mxu1 %v10024_v45  ;;  %10134 = verf.f32 %v3359_v48 }
 0xe80   : > { %9199 = vmatprep.subr.bf16.mxu0 %v10025_v51  ;;  %v10138_v51 = vld [vmem:[%s13117_s12] sm:$0x7] }
 0xe82   : > { %9178 = vmatpush3.bf16.msra.mxu1 %v10026_v52  ;;  %v4297_v52 = vrot.slane %v10138_v51, 2 }
 0xe83   : > { %9200 = vmatpush3.bf16.msra.mxu0 %v10027_v2  ;;  %9179 = vmatprep.subr.bf16.mxu1 %v10028_v54 }
 0xe84   : > { %9201 = vmatprep.subr.bf16.mxu0 %v10029_v5 }
 0xe86   : > { %9180 = vmatpush3.bf16.msra.mxu1 %v10030_v9 }
 0xe87   : > { %9202 = vmatpush3.bf16.msra.mxu0 %v10031_v56  ;;  %9181 = vmatprep.subr.bf16.mxu1 %v10032_v57 }
 0xe88   : > { %v10133_v50 = vpop.eup %10132  ;;  %9203 = vmatprep.subr.bf16.mxu0 %v10033_v53 }
 0xe89   : > { %v3396_v6 = vadd.f32 1.0, %v10133_v50  ;;  %v10135_v18 = vpop.eup %10134 }
 0xe8a   : > { %9182 = vmatpush3.bf16.msra.mxu1 %v10034_v60  ;;  %v3395_v38 = vadd.f32 1.0, %v10135_v18 }
 0xe8b   : > { %9204 = vmatpush3.bf16.msra.mxu0 %v10035_v62  ;;  %9183 = vmatprep.subr.bf16.mxu1 %v10036_v10  ;;  %v3414_v29 = vmul.f32 %v3396_v6, %v3342_v16 }
 0xe8c   : > { %9205 = vmatprep.subr.bf16.mxu0 %v10037_v63  ;;  %v3413_v44 = vmul.f32 %v3395_v38, %v3341_v42 }
 0xe8d   : > { %v3432_v26 = vpack.c.bf16 %v3414_v29, %v3414_v29 }
 0xe8e   : > { %9184 = vmatpush3.bf16.msra.mxu1 %v10038_v7  ;;  %v3431_v45 = vpack.c.bf16 %v3413_v44, %v3413_v44 }
 0xe8f   : > { %9206 = vmatpush3.bf16.msra.mxu0 %v10039_v17  ;;  %9213 = vmatprep.subr.bf16.mxu1 %v10040_v46 }
 0xe91   : > { %4572 = vmatmul.mubr.bf16.vlgmr.msra.gmra.mrb[48].mxu1 %v3427_v25 }
 0xe92   : > { %4612 = vmatmul.mubr.bf16.vlgmr.msra.gmra.mrb[60].mxu0 %v3429_v37  ;;  %9214 = vmatpush3.bf16.msra.mxu1 %v10041_v13 }
 0xe93   : > { %4651 = vmatprep.mubr.bf16.mxu1 %v3432_v26  ;;  %9215 = vmatprep.subr.bf16.mxu1 %v10042_v40 }
 0xe96   : > { %9216 = vmatpush3.bf16.msra.mxu1 %v10043_v49 }
 0xe97   : > { %9217 = vmatprep.subr.bf16.mxu1 %v10044_v27 }
 0xe9a   : > { %9218 = vmatpush3.bf16.msra.mxu1 %v10045_v33 }
 0xe9b   : > { %9219 = vmatprep.subr.bf16.mxu1 %v10046_v58 }
 0xe9e   : > { %9220 = vmatpush3.bf16.msra.mxu1 %v10047_v0 }
 0xe9f   : > { %9221 = vmatprep.subr.bf16.mxu1 %v10048_v30 }
 0xea2   : > { %9222 = vmatpush3.bf16.msra.mxu1 %v10049_v31 }
 0xea3   : > { %9223 = vmatprep.subr.bf16.mxu1 %v10050_v32 }
 0xea6   : > { %9224 = vmatpush3.bf16.msra.mxu1 %v10051_v34 }
 0xea7   : > { %9225 = vmatprep.subr.bf16.mxu1 %v10052_v35 }
 0xeaa   : > { %9226 = vmatpush3.bf16.msra.mxu1 %v10053_v36 }
 0xeab   : > { %9227 = vmatprep.subr.bf16.mxu1 %v10054_v41 }
 0xeae   : > { %9228 = vmatpush3.bf16.msra.mxu1 %v10055_v43 }
 0xeb1   : > { %4652 = vmatmul.mubr.bf16.vlgmr.msra.gmra.mrb[52].mxu1 %v3431_v45 }
 0xf04   : > { %v9053_v47 = vpop.f32.mrb[36].mxu1 }
 0xf05   : > { %v9075_v2 = vpop.f32.mrb[48].mxu0  ;;  %v9054_v54 = vpop.f32.mrb[37].mxu1 }
 0xf06   : > { %v9055_v5 = vadd.f32 %v9054_v54, %v9053_v47  ;;  %v9076_v9 = vpop.f32.mrb[49].mxu0  ;;  %v9056_v56 = vpop.f32.mrb[38].mxu1 }
 0xf07   : > { %v9077_v57 = vadd.f32 %v9076_v9, %v9075_v2  ;;  %v9078_v39 = vpop.f32.mrb[50].mxu0  ;;  %v9057_v53 = vpop.f32.mrb[39].mxu1 }
 0xf08   : > { %v4334_v59 = vadd.f32 %v9055_v5, %v4297_v52  ;;  %v9079_v60 = vpop.f32.mrb[51].mxu0 }
 0xf0a   : > { %v4374_v61 = vadd.f32 %v9077_v57, %v4334_v59 }
 0xf24   : > { %v9097_v62 = vpop.f32.mrb[40].mxu1 }
 0xf25   : > { %v9119_v10 = vpop.f32.mrb[52].mxu0  ;;  %v9098_v50 = vpop.f32.mrb[41].mxu1 }
 0xf26   : > { %v9099_v4 = vadd.f32 %v9098_v50, %v9097_v62  ;;  %v9120_v63 = vpop.f32.mrb[53].mxu0  ;;  %v9100_v1 = vpop.f32.mrb[42].mxu1 }
 0xf27   : > { %v9121_v6 = vadd.f32 %v9120_v63, %v9119_v10  ;;  %v9122_v3 = vpop.f32.mrb[54].mxu0  ;;  %v9101_v7 = vpop.f32.mrb[43].mxu1 }
 0xf28   : > { %v4414_v8 = vadd.f32 %v9099_v4, %v4374_v61  ;;  %v9123_v16 = vpop.f32.mrb[55].mxu0 }
 0xf2a   : > { %v4454_v17 = vadd.f32 %v9121_v6, %v4414_v8 }
 0xf44   : > { %v9141_v46 = vpop.f32.mrb[44].mxu1 }
 0xf45   : > { %v9163_v11 = vpop.f32.mrb[56].mxu0  ;;  %v9142_v29 = vpop.f32.mrb[45].mxu1 }
 0xf46   : > { %v9143_v12 = vadd.f32 %v9142_v29, %v9141_v46  ;;  %v9164_v13 = vpop.f32.mrb[57].mxu0  ;;  %v9144_v25 = vpop.f32.mrb[46].mxu1 }
 0xf47   : > { %v9165_v40 = vadd.f32 %v9164_v13, %v9163_v11  ;;  %v9166_v37 = vpop.f32.mrb[58].mxu0  ;;  %v9145_v26 = vpop.f32.mrb[47].mxu1 }
 0xf48   : > { %v4494_v28 = vadd.f32 %v9143_v12, %v4454_v17  ;;  %v9167_v49 = vpop.f32.mrb[59].mxu0 }
 0xf4a   : > { %v4534_v27 = vadd.f32 %v9165_v40, %v4494_v28 }
 0xf64   : > { %v9185_v48 = vpop.f32.mrb[48].mxu1 }
 0xf65   : > { %v9207_v33 = vpop.f32.mrb[60].mxu0  ;;  %v9186_v58 = vpop.f32.mrb[49].mxu1 }
 0xf66   : > { %v9187_v0 = vadd.f32 %v9186_v58, %v9185_v48  ;;  %v9208_v30 = vpop.f32.mrb[61].mxu0  ;;  %v9188_v31 = vpop.f32.mrb[50].mxu1 }
 0xf67   : > { %v9209_v32 = vadd.f32 %v9208_v30, %v9207_v33  ;;  %v9210_v34 = vpop.f32.mrb[62].mxu0  ;;  %v9189_v35 = vpop.f32.mrb[51].mxu1 }
 0xf68   : > { %v4574_v18 = vadd.f32 %v9187_v0, %v4534_v27  ;;  %v9211_v36 = vpop.f32.mrb[63].mxu0 }
 0xf6a   : > { %v4614_v38 = vadd.f32 %v9209_v32, %v4574_v18 }
 0xf84   : > { %v9229_v41 = vpop.f32.mrb[52].mxu1 }
 0xf85   : > { %v9230_v42 = vpop.f32.mrb[53].mxu1 }
 0xf86   : > { %v9231_v43 = vadd.f32 %v9230_v42, %v9229_v41  ;;  %v9232_v44 = vpop.f32.mrb[54].mxu1 }
 0xf87   : > { %v9233_v45 = vpop.f32.mrb[55].mxu1 }
 0xf88   : > { %v4654_v47 = vadd.f32 %v9231_v43, %v4614_v38 }
 0xf8a   : > { %v4659_v51 = vadd.f32 %v4654_v47, %v11109_v55 }
 0xf8c   : > { %v4665_v52 = vrot.slane %v4659_v51, 6  ;;  %v4661_v2 = vrot.slane %v4659_v51, 7  ;;  %v4669_v54 = vrot.slane %v4659_v51, 5  ;;  %v4673_v5 = vrot.slane %v4659_v51, 4 }
 0xf8d   : > { %v4677_v9 = vrot.slane %v4659_v51, 3 }
 0xf8e   : > { %4666 = vrot.lane.b32.xlu1 %v4665_v52, %s10611_s14  ;;  %4662 = vrot.lane.b32.xlu0 %v4661_v2, %s10608_s18 }
 0xf92   : > { %4670 = vrot.lane.b32.xlu1 %v4669_v54, %s10618_s19  ;;  %4674 = vrot.lane.b32.xlu0 %v4673_v5, %s10612_s17 }
 0xf96   : > { %4678 = vrot.lane.b32.xlu1 %v4677_v9, %s10617_s25 }
0x1000   : > { %v4667_v56 = vpop.permute.xlu1 %4666  ;;  %v4663_v57 = vpop.permute.xlu0 %4662 }
0x1001   : > { %v4682_v39 = vsel %vm4681_vm4, %v4659_v51, %v4663_v57 }
0x1002   : > { %v4684_v53 = vsel %vm4683_vm5, %v4682_v39, %v4667_v56 }
0x1004   : > { %v4671_v55 = vpop.permute.xlu1 %4670  ;;  %v4675_v60 = vpop.permute.xlu0 %4674 }
0x1005   : > { %v4686_v59 = vsel %vm4685_vm6, %v4684_v53, %v4671_v55 }
0x1006   : > { %v4688_v61 = vsel %vm4687_vm7, %v4686_v59, %v4675_v60 }
0x1008   : > { %v4679_v62 = vpop.permute.xlu1 %4678 }
0x1009   : > { %v4689_v10 = vsel %vm1396_vm11, %v4688_v61, %v4679_v62 }
0x100a   : > { %4691 = vst.msk [vmem:[#allocation2] sm:$0x3f] %vm4690_vm8, %v4689_v10 }
0x100b PF: > { %p8723_p2 = scmp.ne.s32.totalorder %s10586_s21, 1 }
0x100c   : > { %vm4700_vm9 = vcmask (!%p8723_p2), 130048   ;;  %v4699_v4 = vld [vmem:[#allocation2 + $0x8] sm:$0x3] (!%p8723_p2)  ;;  %vm4704_vm10 = vcmask (!%p8723_p2), 123904   ;;  %v8724_v6 = vcombine.low (!%p8723_p2), %v10934_v19, %v10937_v20  ;;  %s10620_s18 = smov (!%p8723_p2), 96   ;;  %v10621_v40 = vmov (!%p8723_p2), 0.0  }
0x100d   : > { %4697 = sbr.rel (%p8723_p2) target bundleno = 7548 (0x1d7c), region = 108  ;;  %v4705_v1 = vsel (!%p8723_p2), %vm4704_vm10, %v4699_v4, 0.0  ;;  %9538 = vmatprep.subr.bf16.mxu0 (!%p8723_p2), %v10621_v40  ;;  %9544 = vmatprep.subr.bf16.mxu1 (!%p8723_p2), %v10621_v40  ;;  %vm10622_vm11 = vmmov (!%p8723_p2), 0   ;;  %v4729_v28 = vlaneseq (!%p8723_p2)  ;;  %vm4851_vm12 = vcmask (!%p8723_p2), 64512   ;;  %s10623_s21 = smov (!%p8723_p2), 104  }
0x100e   : > { %9539 = vmatpush3.bf16.msra.mxu0 (!%p8723_p2), %v8724_v6  ;;  %9540 = vmatprep.mubr.msk.bf16.mxu0 (!%p8723_p2), %vm10622_vm11, %v10621_v40  ;;  %s10624_s14 = smov (!%p8723_p2), 120   ;;  %s10625_s17 = smov (!%p8723_p2), 112   ;;  %vm5036_vm13 = vcmask (!%p8723_p2), 78848   ;;  %vm5091_vm14 = vcmask (!%p8723_p2), 1044480   ;;  %vm5087_vm15 = vcmask (!%p8723_p2), 80896   ;;  %vm5293_vm0 = vcmask (!%p8723_p2), 195584  }
0x100f   : > { %9546 = vmatprep.mubr.msk.bf16.mxu1 (!%p8723_p2), %vm10622_vm11, %v10621_v40  ;;  %9550 = vmatprep.subr.bf16.mxu0 (!%p8723_p2), %v10621_v40  ;;  %v12046_v48 = vshrl.u32 (!%p8723_p2), %v4729_v28, 7  ;;  %s10626_s25 = smov (!%p8723_p2), 8   ;;  %s10627_s19 = smov (!%p8723_p2), 16   ;;  %vm5308_vm1 = vcmask (!%p8723_p2), 261120   ;;  %vm5776_vm2 = vcmask (!%p8723_p2), 392192   ;;  %vm5778_vm3 = vcmask (!%p8723_p2), 523264  }
0x1010   : > { %s10628_s2 = smov (!%p8723_p2), 24   ;;  %s10629_s22 = smov (!%p8723_p2), 32   ;;  %vm5780_vm4 = vcmask (!%p8723_p2), 654336   ;;  %vm5782_vm5 = vcmask (!%p8723_p2), 778240   ;;  %vm6436_vm6 = vcmask (!%p8723_p2), 785408   ;;  %vm8165_vm7 = vcmask (!%p8723_p2), 1040384  }
0x1011   : > { %v4698_v50 = vld [vmem:[#allocation2] sm:$0xff] (!%p8723_p2)  ;;  %v12049_v33 = vsub.s32 (!%p8723_p2), 0, %v12046_v48  ;;  %s10630_s6 = smov (!%p8723_p2), 64   ;;  %s10631_s3 = smov (!%p8723_p2), 48   ;;  %vm8167_vm8 = vcmask (!%p8723_p2), 1041408  }
0x1012   : > { %v4701_v63 = vsel (!%p8723_p2), %vm4700_vm9, %v4698_v50, 0.0  ;;  %s10632_s26 = smov (!%p8723_p2), 80   ;;  %s13176_s23 = sld [smem:[#allocation23_spill]] (!%p8723_p2) }
0x1013   : > { %4702 = vadd.xlane.f32.xlu0 (!%p8723_p2), %v4701_v63  ;;  %v4732_v30 = vrot.slane (!%p8723_p2), %v10919_v14, %v12049_v33  ;;  %v4738_v35 = vrot.slane (!%p8723_p2), %v10922_v15, %v12049_v33  ;;  %s13181_s16 = sld [smem:[#allocation26_spill]] (!%p8723_p2) }
0x1017   : > { %4706 = vadd.xlane.f32.xlu0 %v4705_v1 }
0x102d   : > { %4791 = vrot.lane.b32.xlu0 %v8724_v6, %s10620_s18 }
0x10a0   : > { %v4703_v3 = vpop.xlane.xlu0 %4702 }
0x10a1   : > { %v4709_v7 = vmul.f32 0.0625, %v4703_v3 }
0x10a3   : > { %v4711_v8 = vsub.f32 %v4698_v50, %v4709_v7 }
0x10a4   : > { %v4707_v16 = vpop.xlane.xlu0 %4706 }
0x10a5   : > { %v4710_v17 = vmul.f32 0.0625, %v4707_v16  ;;  %v4713_v46 = vmul.f32 %v4711_v8, %v4711_v8 }
0x10a7   : > { %v4712_v11 = vsub.f32 %v4699_v4, %v4710_v17  ;;  %v4715_v29 = vsel %vm4700_vm9, %v4713_v46, 0.0 }
0x10a8   : > { %4716 = vadd.xlane.f32.xlu1 %v4715_v29  ;;  %v4792_v25 = vpop.permute.xlu0 %4791 }
0x10a9   : > { %v4714_v12 = vmul.f32 %v4712_v11, %v4712_v11  ;;  %9545 = vmatpush3.bf16.msra.mxu1 %v4792_v25 }
0x10aa   : > { %9556 = vmatprep.subr.bf16.mxu1 %v10621_v40 }
0x10ab   : > { %v4718_v13 = vsel %vm4704_vm10, %v4714_v12, 0.0  ;;  %vm8169_vm10 = vcmask 1042432  }
0x10ac   : > { %4719 = vadd.xlane.f32.xlu1 %v4718_v13 }
0x1135   : > { %v4717_v19 = vpop.xlane.xlu1 %4716 }
0x1136   : > { %v4721_v20 = vmul.f32 0.0625, %v4717_v19 }
0x1138   : > { %v4723_v37 = vadd.f32 1e-05, %v4721_v20 }
0x1139   : > { %v4720_v26 = vpop.xlane.xlu1 %4719 }
0x113a   : > { %10446 = vrsqrt.f32 %v4723_v37  ;;  %v4722_v49 = vmul.f32 0.0625, %v4720_v26 }
0x113c   : > { %v4724_v27 = vadd.f32 1e-05, %v4722_v49 }
0x113e   : > { %10448 = vrsqrt.f32 %v4724_v27 }
0x1144   : > { %v10447_v58 = vpop.eup %10446 }
0x1145   : > { %v4727_v0 = vmul.f32 %v10447_v58, %v4711_v8 }
0x1147   : > { %v4733_v34 = vmul.f32 %v4732_v30, %v4727_v0 }
0x1148   : > { %v10449_v31 = vpop.eup %10448 }
0x1149   : > { %v4728_v32 = vmul.f32 %v10449_v31, %v4712_v11  ;;  %v4739_v36 = vadd.f32 %v4738_v35, %v4733_v34 }
0x114b   : > { %v4734_v18 = vmul.f32 %v4732_v30, %v4728_v32 }
0x114d   : > { %v4740_v38 = vadd.f32 %v4738_v35, %v4734_v18 }
0x114f   : > { %v4741_v41 = vpack.c.bf16 %v4740_v38, %v4739_v36 }
0x1151   : > { %9541 = vmatmul.mubr.msk.bf16.vlgmr.msra.gmra.mrb[0].mxu0 %vm4700_vm9, %v4741_v41  ;;  %9547 = vmatmul.mubr.msk.bf16.vlgmr.msra.gmra.mrb[0].mxu1 %vm4700_vm9, %v4741_v41 }
0x1152   : > { %9552 = vmatprep.mubr.msk.bf16.mxu0 %vm10622_vm11, %v10621_v40  ;;  %9558 = vmatprep.mubr.msk.bf16.mxu1 %vm10622_vm11, %v10621_v40 }
0x1224   : > { %v4785_v14 = vpop.f32.mrb[0].mxu0  ;;  %v4828_v42 = vpop.f32.mrb[0].mxu1 }
0x1225   : > { %v9542_v43 = vpop.f32.mrb[1].mxu0  ;;  %v9548_v44 = vpop.f32.mrb[1].mxu1  ;;  %v4835_v54 = vpack.c.bf16 %v4785_v14, %v4785_v14 }
0x1226   : > { %v4788_v45 = vpop.f32.mrb[2].mxu0  ;;  %v4831_v15 = vpop.f32.mrb[2].mxu1 }
0x1227   : > { %v4843_v47 = vpack.c.bf16 %v4831_v15, %v4828_v42  ;;  %v9543_v51 = vpop.f32.mrb[3].mxu0  ;;  %v9549_v52 = vpop.f32.mrb[3].mxu1 }
0x1229   : > { %4849 = vrot.lane.b32.xlu0 %v4843_v47, %s10623_s21  ;;  %4845 = vrot.lane.b32.xlu1 %v4843_v47, %s10624_s14  ;;  %v4856_v2 = vsel %vm4851_vm12, %v4843_v47, 0 }
0x122a   : > { %9551 = vmatpush3.bf16.xpose.msra.mxu0 %v4856_v2 }
0x122b   : > { %9562 = vmatprep.subr.bf16.mxu0 %v10621_v40 }
0x122d   : > { %4841 = vrot.lane.b32.xlu0 %v4835_v54, %s10623_s21  ;;  %4847 = vrot.lane.b32.xlu1 %v4843_v47, %s10625_s17 }
0x1231   : > { %4837 = vrot.lane.b32.xlu1 %v4835_v54, %s10624_s14  ;;  %9553 = vmatmul.mubr.msk.bf16.vlgmr.msra.gmra.mrb[4].mxu0 %vm4851_vm12, %v4835_v54 }
0x1232   : > { %9564 = vmatprep.mubr.msk.bf16.mxu0 %vm10622_vm11, %v10621_v40 }
0x1235   : > { %4839 = vrot.lane.b32.xlu1 %v4835_v54, %s10625_s17 }
0x129b   : > { %v12068_v5 = vpop.permute.xlu1 %4845  ;;  %v12077_v39 = vpop.permute.xlu0 %4849 }
0x129c   : > { %v4902_v9 = vsel %vm4851_vm12, %v12068_v5, 0  ;;  %v4994_v53 = vsel %vm4851_vm12, %v12077_v39, 0 }
0x129d   : > { %9557 = vmatpush3.bf16.xpose.msra.mxu1 %v4902_v9 }
0x129e   : > { %9568 = vmatprep.subr.bf16.mxu1 %v10621_v40 }
0x129f   : > { %v12073_v56 = vpop.permute.xlu1 %4847  ;;  %v4842_v60 = vpop.permute.xlu0 %4841 }
0x12a0   : > { %v4948_v57 = vsel %vm4851_vm12, %v12073_v56, 0 }
0x12a1   : > { %9563 = vmatpush3.bf16.xpose.msra.mxu0 %v4948_v57 }
0x12a2   : > { %9574 = vmatprep.subr.bf16.mxu0 %v10621_v40 }
0x12a3   : > { %v4838_v55 = vpop.permute.xlu1 %4837 }
0x12a4   : > { %9559 = vmatmul.mubr.msk.bf16.vlgmr.msra.gmra.mrb[4].mxu1 %vm4851_vm12, %v4838_v55 }
0x12a5   : > { %9569 = vmatpush3.bf16.xpose.msra.mxu1 %v4994_v53  ;;  %9570 = vmatprep.mubr.msk.bf16.mxu1 %vm10622_vm11, %v10621_v40 }
0x12a6   : > { %9580 = vmatprep.subr.bf16.mxu1 %v10621_v40 }
0x12a7   : > { %v4840_v59 = vpop.permute.xlu1 %4839 }
0x12a8   : > { %9565 = vmatmul.mubr.msk.bf16.vlgmr.msra.gmra.mrb[8].mxu0 %vm4851_vm12, %v4840_v59 }
0x12a9   : > { %9576 = vmatprep.mubr.msk.bf16.mxu0 %vm10622_vm11, %v10621_v40 }
0x12ac   : > { %9571 = vmatmul.mubr.msk.bf16.vlgmr.msra.gmra.mrb[8].mxu1 %vm4851_vm12, %v4842_v60 }
0x12ad   : > { %9582 = vmatprep.mubr.msk.bf16.mxu1 %vm10622_vm11, %v10621_v40 }
0x1304   : > { %v4892_v61 = vpop.f32.mrb[4].mxu0 }
0x1305   : > { %v9554_v62 = vpop.f32.mrb[5].mxu0  ;;  %v5037_v10 = vsel %vm5036_vm13, %v4892_v61, -inf }
0x1306   : > { %5038 = vmax.xlane.f32.xlu1 %v5037_v10  ;;  %v4895_v50 = vpop.f32.mrb[6].mxu0 }
0x1307   : > { %v9555_v4 = vpop.f32.mrb[7].mxu0 }
0x1317   : > { %5085 = vrot.lane.b32.xlu1 %v4843_v47, %s10620_s18 }
0x1377   : > { %v4938_v63 = vpop.f32.mrb[4].mxu1 }
0x1378   : > { %v9560_v1 = vpop.f32.mrb[5].mxu1  ;;  %v5040_v6 = vsel %vm5036_vm13, %v4938_v63, -inf }
0x1379   : > { %5041 = vmax.xlane.f32.xlu0 %v5040_v6  ;;  %v4941_v3 = vpop.f32.mrb[6].mxu1 }
0x137a   : > { %v9561_v7 = vpop.f32.mrb[7].mxu1 }
0x137b   : > { %v4984_v8 = vpop.f32.mrb[8].mxu0 }
0x137c   : > { %v9566_v16 = vpop.f32.mrb[9].mxu0  ;;  %v5043_v17 = vsel %vm5036_vm13, %v4984_v8, -inf }
0x137d   : > { %v4987_v46 = vpop.f32.mrb[10].mxu0  ;;  %5044 = vmax.xlane.f32.xlu0 %v5043_v17  ;;  %v8735_v16 = vcombine.low %v10940_v21, %v10943_v22  ;;  %v8736_v17 = vcombine.low %v10946_v23, %v10949_v24 }
0x137e   : > { %v9567_v11 = vpop.f32.mrb[11].mxu0 }
0x137f   : > { %v5030_v29 = vpop.f32.mrb[8].mxu1 }
0x1380   : > { %v9572_v12 = vpop.f32.mrb[9].mxu1  ;;  %v5046_v13 = vsel %vm5036_vm13, %v5030_v29, -inf }
0x1381   : > { %5047 = vmax.xlane.f32.xlu0 %v5046_v13  ;;  %v5033_v25 = vpop.f32.mrb[10].mxu1 }
0x1382   : > { %v9573_v19 = vpop.f32.mrb[11].mxu1 }
0x1393   : > { %v5039_v20 = vpop.xlane.xlu1 %5038 }
0x1394   : > { %v5049_v37 = vsub.f32 %v4892_v61, %v5039_v20 }
0x1396   : > { %v5053_v26 = vmul.f32 1.442695, %v5049_v37 }
0x1397   : > { %v5086_v28 = vpop.permute.xlu1 %5085 }
0x1398   : > { %10450 = vpow2.f32 %v5053_v26  ;;  %v5093_v49 = vsel %vm5091_vm14, %v5086_v28, 0 }
0x1399   : > { %9575 = vmatpush3.bf16.msra.mxu0 %v5093_v49 }
0x139a   : > { %9586 = vmatprep.subr.bf16.mxu0 %v10621_v40 }
0x13a2   : > { %v10451_v27 = vpop.eup %10450 }
0x13a3   : > { %v5061_v58 = vsel %vm5036_vm13, %v10451_v27, 0.0 }
0x13a4   : > { %5062 = vadd.xlane.f32.xlu1 %v5061_v58 }
0x1406   : > { %v5042_v0 = vpop.xlane.xlu0 %5041 }
0x1407   : > { %v5050_v30 = vsub.f32 %v4938_v63, %v5042_v0 }
0x1409   : > { %v5055_v31 = vmul.f32 1.442695, %v5050_v30 }
0x140a   : > { %v5045_v32 = vpop.xlane.xlu0 %5044 }
0x140b   : > { %10452 = vpow2.f32 %v5055_v31  ;;  %v5051_v34 = vsub.f32 %v4984_v8, %v5045_v32  ;;  %v10506_v31 = vld [vmem:[#allocation2] sm:$0xff] }
0x140d   : > { %v5057_v35 = vmul.f32 1.442695, %v5051_v34 }
0x140e   : > { %v5048_v18 = vpop.xlane.xlu0 %5047 }
0x140f   : > { %10454 = vpow2.f32 %v5057_v35  ;;  %v5052_v36 = vsub.f32 %v5030_v29, %v5048_v18 }
0x1411   : > { %v5059_v38 = vmul.f32 1.442695, %v5052_v36 }
0x1413   : > { %10456 = vpow2.f32 %v5059_v38 }
0x1415   : > { %v10453_v41 = vpop.eup %10452 }
0x1416   : > { %v5064_v14 = vsel %vm5036_vm13, %v10453_v41, 0.0 }
0x1417   : > { %5065 = vadd.xlane.f32.xlu0 %v5064_v14 }
0x1419   : > { %v10455_v42 = vpop.eup %10454 }
0x141a   : > { %v5067_v43 = vsel %vm5036_vm13, %v10455_v42, 0.0 }
0x141b   : > { %5068 = vadd.xlane.f32.xlu1 %v5067_v43 }
0x141d   : > { %v10457_v44 = vpop.eup %10456 }
0x141e   : > { %v5070_v45 = vsel %vm5036_vm13, %v10457_v44, 0.0 }
0x141f   : > { %5071 = vadd.xlane.f32.xlu0 %v5070_v45 }
0x142c   : > { %5183 = vrot.lane.b32.xlu1 %v12073_v56, %s10620_s18 }
0x1430   : > { %5231 = vrot.lane.b32.xlu1 %v12077_v39, %s10620_s18 }
0x1431   : > { %v5063_v15 = vpop.xlane.xlu1 %5062 }
0x1432   : > { %10458 = vrcp.f32 %v5063_v15 }
0x1435   : > { %5135 = vrot.lane.b32.xlu0 %v12068_v5, %s10620_s18 }
0x143c   : > { %v10459_v47 = vpop.eup %10458 }
0x143d   : > { %v5077_v51 = vmul.f32 %v10459_v47, %v10451_v27 }
0x143f   : > { %v5081_v52 = vpack.c.bf16 %v5077_v51, %v5077_v51 }
0x1441   : > { %9577 = vmatmul.mubr.msk.bf16.vlgmr.msra.gmra.mrb[12].mxu0 %vm5087_vm15, %v5081_v52 }
0x1442   : > { %9588 = vmatprep.mubr.msk.bf16.mxu0 %vm10622_vm11, %v10621_v40 }
0x14a4   : > { %v5066_v2 = vpop.xlane.xlu0 %5065 }
0x14a5   : > { %10460 = vrcp.f32 %v5066_v2 }
0x14a8   : > { %v5069_v54 = vpop.xlane.xlu1 %5068 }
0x14a9   : > { %10462 = vrcp.f32 %v5069_v54 }
0x14ac   : > { %v5184_v9 = vpop.permute.xlu1 %5183  ;;  %v5072_v56 = vpop.xlane.xlu0 %5071 }
0x14ad   : > { %v5189_v57 = vsel %vm5091_vm14, %v5184_v9, 0  ;;  %10464 = vrcp.f32 %v5072_v56 }
0x14ae   : > { %9587 = vmatpush3.bf16.msra.mxu0 %v5189_v57  ;;  %v10139_v57 = vld [vmem:[%s13118_s13] ss:$72 sps:$4 sm:$0xff]  }
0x14af   : > { %v10461_v5 = vpop.eup %10460  ;;  %9598 = vmatprep.subr.bf16.mxu0 %v10621_v40 }
0x14b0   : > { %v5078_v39 = vmul.f32 %v10461_v5, %v10453_v41  ;;  %v5136_v55 = vpop.permute.xlu0 %5135  ;;  %v5232_v59 = vpop.permute.xlu1 %5231  ;;  %v10141_v5 = vld [vmem:[%s13118_s13 + $0x4] ss:$72 sps:$4 sm:$0xff]  }
0x14b1   : > { %v5141_v53 = vsel %vm5091_vm14, %v5136_v55, 0  ;;  %v5237_v10 = vsel %vm5091_vm14, %v5232_v59, 0  ;;  %v10144_v55 = vld [vmem:[%s13118_s13 + $0xc] ss:$72 sps:$4 sm:$0xff]  }
0x14b2   : > { %9581 = vmatpush3.bf16.msra.mxu1 %v5141_v53  ;;  %v5082_v60 = vpack.c.bf16 %v5078_v39, %v5078_v39  ;;  %v10142_v39 = vld [vmem:[%s13118_s13 + $0x8] ss:$72 sps:$4 sm:$0xff]  }
0x14b3   : > { %v10463_v61 = vpop.eup %10462  ;;  %9592 = vmatprep.subr.bf16.mxu1 %v10621_v40 }
0x14b4   : > { %v5079_v62 = vmul.f32 %v10463_v61, %v10455_v42 }
0x14b5   : > { %9583 = vmatmul.mubr.msk.bf16.vlgmr.msra.gmra.mrb[12].mxu1 %vm5087_vm15, %v5082_v60 }
0x14b6   : > { %9593 = vmatpush3.bf16.msra.mxu1 %v5237_v10  ;;  %v5083_v50 = vpack.c.bf16 %v5079_v62, %v5079_v62  ;;  %9594 = vmatprep.mubr.msk.bf16.mxu1 %vm10622_vm11, %v10621_v40  ;;  %v10147_v10 = vld [vmem:[%s13118_s13 + $0x94] ss:$72 sps:$4 sm:$0xff]  }
0x14b7   : > { %v10465_v4 = vpop.eup %10464  ;;  %6440 = vmatprep.subr.bf16.mxu1 %v10141_v5  ;;  %v10210_v5 = vld [vmem:[%s13118_s13 + $0x2ec] ss:$72 sps:$4 sm:$0xff]  }
0x14b8   : > { %v5080_v63 = vmul.f32 %v10465_v4, %v10457_v44  ;;  %9589 = vmatmul.mubr.msk.bf16.vlgmr.msra.gmra.mrb[16].mxu0 %vm5087_vm15, %v5083_v50  ;;  %v10150_v50 = vld [vmem:[%s13118_s13 + $0x9c] ss:$72 sps:$4 sm:$0xff]   ;;  %v10145_v4 = vld [vmem:[%s13118_s13 + $0x90] ss:$72 sps:$4 sm:$0xff]  }
0x14b9   : > { %9602 = vmatprep.mubr.msk.bf16.mxu0 %vm10622_vm11, %v10621_v40  ;;  %9599 = vmatpush3.bf16.msra.mxu0 %v8735_v16  ;;  %v10162_v16 = vld [vmem:[%s13118_s13 + $0x1bc] ss:$72 sps:$4 sm:$0xff]  }
0x14ba   : > { %v5084_v1 = vpack.c.bf16 %v5080_v63, %v5080_v63  ;;  %9600 = vmatprep.subr.bf16.mxu0 %v10621_v40  ;;  %v10148_v63 = vld [vmem:[%s13118_s13 + $0x98] ss:$72 sps:$4 sm:$0xff]  }
0x14bd   : > { %9595 = vmatmul.mubr.msk.bf16.vlgmr.msra.gmra.mrb[16].mxu1 %vm5087_vm15, %v5084_v1  ;;  %9601 = vmatpush3.bf16.msra.mxu0 %v8736_v17  ;;  %v10153_v1 = vld [vmem:[%s13118_s13 + $0x124] ss:$72 sps:$4 sm:$0xff]   ;;  %v10157_v17 = vld [vmem:[%s13118_s13 + $0x1b0] ss:$72 sps:$4 sm:$0xff]  }
0x14be   : > { %6481 = vmatprep.subr.bf16.mxu0 %v10144_v55  ;;  %6441 = vmatpush1.bf16.msra.mxu1 %v10139_v57  ;;  %v10207_v57 = vld [vmem:[%s13118_s13 + $0x2e4] ss:$72 sps:$4 sm:$0xff]   ;;  %v10208_v55 = vld [vmem:[%s13118_s13 + $0x2e8] ss:$72 sps:$4 sm:$0xff]  }
0x14bf   : > { %6442 = vmatprep.subr.bf16.mxu1 %v10147_v10  ;;  %v10222_v10 = vld [vmem:[%s13118_s13 + $0xbc] ss:$72 sps:$4 sm:$0xff]  }
0x14c2   : > { %6443 = vmatpush1.bf16.msra.mxu1 %v10145_v4  ;;  %v10220_v4 = vld [vmem:[%s13118_s13 + $0xb8] ss:$72 sps:$4 sm:$0xff]  }
0x14c3   : > { %6444 = vmatprep.subr.bf16.mxu1 %v10153_v1  ;;  %v10228_v1 = vld [vmem:[%s13118_s13 + $0x14c] ss:$72 sps:$4 sm:$0xff]  }
0x1514   : > { %v5129_v6 = vpop.f32.mrb[12].mxu0 }
0x1515   : > { %v9578_v3 = vpop.f32.mrb[13].mxu0 }
0x1516   : > { %v5132_v7 = vpop.f32.mrb[14].mxu0  ;;  %v10151_v3 = vld [vmem:[%s13118_s13 + $0x120] ss:$72 sps:$4 sm:$0xff]  }
0x1517   : > { %v9579_v8 = vpop.f32.mrb[15].mxu0  ;;  %v10154_v7 = vld [vmem:[%s13118_s13 + $0x128] ss:$72 sps:$4 sm:$0xff]   ;;  %6445 = vmatpush1.bf16.msra.mxu1 %v10151_v3 }
0x1518   : > { %v10159_v8 = vld [vmem:[%s13118_s13 + $0x1b4] ss:$72 sps:$4 sm:$0xff]   ;;  %v10226_v3 = vld [vmem:[%s13118_s13 + $0x148] ss:$72 sps:$4 sm:$0xff]  }
0x1519   : > { %6446 = vmatprep.subr.bf16.mxu1 %v10159_v8  ;;  %v10234_v8 = vld [vmem:[%s13118_s13 + $0x1dc] ss:$72 sps:$4 sm:$0xff]  }
0x151b   : > { %6447 = vmatpush1.bf16.msra.mxu1 %v10157_v17  ;;  %v10232_v17 = vld [vmem:[%s13118_s13 + $0x1d8] ss:$72 sps:$4 sm:$0xff]  }
0x1588   : > { %v5177_v46 = vpop.f32.mrb[12].mxu1 }
0x1589   : > { %5280 = vrot.lane.b32.xlu1 %v5177_v46, %s10626_s25  ;;  %v9584_v11 = vpop.f32.mrb[13].mxu1  ;;  %v10160_v46 = vld [vmem:[%s13118_s13 + $0x1b8] ss:$72 sps:$4 sm:$0xff]  }
0x158a   : > { %v5180_v29 = vpop.f32.mrb[14].mxu1  ;;  %v10165_v11 = vld [vmem:[%s13118_s13 + $0x244] ss:$72 sps:$4 sm:$0xff]  }
0x158b   : > { %v9585_v12 = vpop.f32.mrb[15].mxu1  ;;  %v5225_v13 = vpop.f32.mrb[16].mxu0  ;;  %v10168_v29 = vld [vmem:[%s13118_s13 + $0x24c] ss:$72 sps:$4 sm:$0xff]   ;;  %6448 = vmatprep.subr.bf16.mxu1 %v10165_v11 }
0x158c   : > { %v9590_v25 = vpop.f32.mrb[17].mxu0  ;;  %5284 = vrot.lane.b32.xlu0 %v5225_v13, %s10627_s19  ;;  %v10163_v12 = vld [vmem:[%s13118_s13 + $0x240] ss:$72 sps:$4 sm:$0xff]   ;;  %v10240_v11 = vld [vmem:[%s13118_s13 + $0x26c] ss:$72 sps:$4 sm:$0xff]  }
0x158d   : > { %v5228_v19 = vpop.f32.mrb[18].mxu0  ;;  %v10166_v13 = vld [vmem:[%s13118_s13 + $0x248] ss:$72 sps:$4 sm:$0xff]   ;;  %6449 = vmatpush1.bf16.msra.mxu1 %v10163_v12  ;;  %v10171_v25 = vld [vmem:[%s13118_s13 + $0x2d4] ss:$72 sps:$4 sm:$0xff]  }
0x158e   : > { %v9591_v21 = vpop.f32.mrb[19].mxu0  ;;  %v10174_v19 = vld [vmem:[%s13118_s13 + $0x2dc] ss:$72 sps:$4 sm:$0xff]   ;;  %6450 = vmatprep.subr.bf16.mxu1 %v10171_v25  ;;  %v10238_v12 = vld [vmem:[%s13118_s13 + $0x268] ss:$72 sps:$4 sm:$0xff]  }
0x158f   : > { %v10169_v21 = vld [vmem:[%s13118_s13 + $0x2d0] ss:$72 sps:$4 sm:$0xff]   ;;  %v10246_v25 = vld [vmem:[%s13118_s13 + $0x2fc] ss:$72 sps:$4 sm:$0xff]  }
0x1590   : > { %v5273_v22 = vpop.f32.mrb[16].mxu1 }
0x1591   : > { %5288 = vrot.lane.b32.xlu1 %v5273_v22, %s10628_s2  ;;  %v9596_v20 = vpop.f32.mrb[17].mxu1  ;;  %v10172_v22 = vld [vmem:[%s13118_s13 + $0x2d8] ss:$72 sps:$4 sm:$0xff]   ;;  %6451 = vmatpush1.bf16.msra.mxu1 %v10169_v21 }
0x1592   : > { %v5276_v37 = vpop.f32.mrb[18].mxu1  ;;  %v10177_v20 = vld [vmem:[%s13118_s13 + $0x14] ss:$72 sps:$4 sm:$0xff]   ;;  %v10244_v21 = vld [vmem:[%s13118_s13 + $0x2f8] ss:$72 sps:$4 sm:$0xff]  }
0x1593   : > { %v9597_v23 = vpop.f32.mrb[19].mxu1  ;;  %v10633_v37 = vmov 0   ;;  %6522 = vmatprep.subr.bf16.mxu1 %v10177_v20  ;;  %v10252_v20 = vld [vmem:[%s13118_s13 + $0x3c] ss:$72 sps:$4 sm:$0xff]  }
0x1594   : > { %6472 = vmatprep.mubr.bf16.mxu1 %v10633_v37  ;;  %v10180_v23 = vld [vmem:[%s13118_s13 + $0x1c] ss:$72 sps:$4 sm:$0xff]  }
0x15fb   : > { %v5281_v24 = vpop.permute.xlu1 %5280 }
0x15fc   : > { %v5291_v28 = vsel %vm4851_vm12, %v5129_v6, %v5281_v24  ;;  %v10156_v6 = vld [vmem:[%s13118_s13 + $0x12c] ss:$72 sps:$4 sm:$0xff]   ;;  %vm8174_vm12 = vcmask 128000  }
0x15fe   : > { %v5285_v26 = vpop.permute.xlu0 %5284 }
0x15ff   : > { %v5292_v49 = vsel %vm4700_vm9, %v5291_v28, %v5285_v26 }
0x1603   : > { %v5289_v27 = vpop.permute.xlu1 %5288 }
0x1604   : > { %v5294_v58 = vsel %vm5293_vm0, %v5292_v49, %v5289_v27  ;;  %v5353_v49 = vld [vmem:[%s13117_s12] sm:$0x7] }
0x1605   : > { %v5295_v0 = vpack.c.bf16 %v5294_v58, %v5294_v58  ;;  %v5799_v58 = vrot.slane %v5353_v49, 1 }
0x1607   : > { %9603 = vmatmul.mubr.msk.bf16.vlgmr.msra.gmra.mrb[20].mxu0 %vm5308_vm1, %v5295_v0 }
0x1608   : > { %6482 = vmatpush1.bf16.msra.mxu0 %v10142_v39  ;;  %6513 = vmatprep.mubr.bf16.mxu0 %v10633_v37  ;;  %v10205_v39 = vld [vmem:[%s13118_s13 + $0x2e0] ss:$72 sps:$4 sm:$0xff]  }
0x1609   : > { %6483 = vmatprep.subr.bf16.mxu0 %v10150_v50  ;;  %v10217_v50 = vld [vmem:[%s13118_s13 + $0xb0] ss:$72 sps:$4 sm:$0xff]  }
0x160c   : > { %6484 = vmatpush1.bf16.msra.mxu0 %v10148_v63  ;;  %v10225_v63 = vld [vmem:[%s13118_s13 + $0x144] ss:$72 sps:$4 sm:$0xff]  }
0x160d   : > { %6485 = vmatprep.subr.bf16.mxu0 %v10156_v6  ;;  %v10223_v6 = vld [vmem:[%s13118_s13 + $0x140] ss:$72 sps:$4 sm:$0xff]  }
0x1610   : > { %6486 = vmatpush1.bf16.msra.mxu0 %v10154_v7  ;;  %v10231_v7 = vld [vmem:[%s13118_s13 + $0x1d4] ss:$72 sps:$4 sm:$0xff]  }
0x1611   : > { %6487 = vmatprep.subr.bf16.mxu0 %v10162_v16  ;;  %v10229_v16 = vld [vmem:[%s13118_s13 + $0x1d0] ss:$72 sps:$4 sm:$0xff]  }
0x1614   : > { %6488 = vmatpush1.bf16.msra.mxu0 %v10160_v46  ;;  %v10237_v46 = vld [vmem:[%s13118_s13 + $0x264] ss:$72 sps:$4 sm:$0xff]  }
0x1615   : > { %6489 = vmatprep.subr.bf16.mxu0 %v10168_v29  ;;  %v10235_v29 = vld [vmem:[%s13118_s13 + $0x260] ss:$72 sps:$4 sm:$0xff]  }
0x1618   : > { %6490 = vmatpush1.bf16.msra.mxu0 %v10166_v13  ;;  %v10243_v13 = vld [vmem:[%s13118_s13 + $0x2f4] ss:$72 sps:$4 sm:$0xff]  }
0x1619   : > { %6491 = vmatprep.subr.bf16.mxu0 %v10174_v19  ;;  %v10241_v19 = vld [vmem:[%s13118_s13 + $0x2f0] ss:$72 sps:$4 sm:$0xff]  }
0x161c   : > { %6492 = vmatpush1.bf16.msra.mxu0 %v10172_v22  ;;  %v10249_v22 = vld [vmem:[%s13118_s13 + $0x34] ss:$72 sps:$4 sm:$0xff]  }
0x161d   : > { %6563 = vmatprep.subr.bf16.mxu0 %v10180_v23  ;;  %v10247_v23 = vld [vmem:[%s13118_s13 + $0x30] ss:$72 sps:$4 sm:$0xff]  }
0x16da   : > { %v5346_v30 = vpop.f32.mrb[20].mxu0 }
0x16db   : > { %v5352_v32 = vadd.f32 %v10506_v31, %v5346_v30  ;;  %v9604_v34 = vpop.f32.mrb[21].mxu0 }
0x16dc   : > { %v5349_v35 = vpop.f32.mrb[22].mxu0  ;;  %v10178_v34 = vld [vmem:[%s13118_s13 + $0x18] ss:$72 sps:$4 sm:$0xff]  }
0x16dd   : > { %v9605_v18 = vpop.f32.mrb[23].mxu0  ;;  %v5758_v36 = vrot.slane %v5352_v32, 2  ;;  %v5754_v38 = vrot.slane %v5352_v32, 1  ;;  %v5766_v41 = vrot.slane %v5352_v32, 4  ;;  %v5762_v14 = vrot.slane %v5352_v32, 3 }
0x16de   : > { %v5770_v42 = vrot.slane %v5352_v32, 5  ;;  %v10183_v18 = vld [vmem:[%s13118_s13 + $0xa4] ss:$72 sps:$4 sm:$0xff]  }
0x16df   : > { %5759 = vrot.lane.b32.xlu1 %v5758_v36, %s10629_s22  ;;  %5755 = vrot.lane.b32.xlu0 %v5754_v38, %s10627_s19  ;;  %v10186_v36 = vld [vmem:[%s13118_s13 + $0xac] ss:$72 sps:$4 sm:$0xff]   ;;  %v10181_v38 = vld [vmem:[%s13118_s13 + $0xa0] ss:$72 sps:$4 sm:$0xff]   ;;  %s13177_s19 = sld [smem:[#allocation22_spill]] }
0x16e3   : > { %5767 = vrot.lane.b32.xlu1 %v5766_v41, %s10630_s6  ;;  %5763 = vrot.lane.b32.xlu0 %v5762_v14, %s10631_s3  ;;  %v10184_v41 = vld [vmem:[%s13118_s13 + $0xa8] ss:$72 sps:$4 sm:$0xff]   ;;  %v10189_v14 = vld [vmem:[%s13118_s13 + $0x134] ss:$72 sps:$4 sm:$0xff]  }
0x16e7   : > { %5771 = vrot.lane.b32.xlu0 %v5770_v42, %s10632_s26  ;;  %v10192_v42 = vld [vmem:[%s13118_s13 + $0x13c] ss:$72 sps:$4 sm:$0xff]  }
0x1751   : > { %v5760_v43 = vpop.permute.xlu1 %5759  ;;  %v5756_v44 = vpop.permute.xlu0 %5755 }
0x1752   : > { %v5774_v45 = vsel %vm4700_vm9, %v5352_v32, %v5756_v44  ;;  %v10175_v32 = vld [vmem:[%s13118_s13 + $0x10] ss:$72 sps:$4 sm:$0xff]  }
0x1753   : > { %v5775_v15 = vsel %vm5308_vm1, %v5774_v45, %v5760_v43  ;;  %v10187_v43 = vld [vmem:[%s13118_s13 + $0x130] ss:$72 sps:$4 sm:$0xff]   ;;  %v10195_v45 = vld [vmem:[%s13118_s13 + $0x1c4] ss:$72 sps:$4 sm:$0xff]  }
0x1754   : > { %v10190_v44 = vld [vmem:[%s13118_s13 + $0x138] ss:$72 sps:$4 sm:$0xff]  }
0x1755   : > { %v5764_v47 = vpop.permute.xlu0 %5763  ;;  %v5768_v51 = vpop.permute.xlu1 %5767 }
0x1756   : > { %v5777_v52 = vsel %vm5776_vm2, %v5775_v15, %v5764_v47  ;;  %v10198_v15 = vld [vmem:[%s13118_s13 + $0x1cc] ss:$72 sps:$4 sm:$0xff]   ;;  %v10193_v47 = vld [vmem:[%s13118_s13 + $0x1c0] ss:$72 sps:$4 sm:$0xff]  }
0x1757   : > { %v5779_v2 = vsel %vm5778_vm3, %v5777_v52, %v5768_v51  ;;  %v10196_v51 = vld [vmem:[%s13118_s13 + $0x1c8] ss:$72 sps:$4 sm:$0xff]   ;;  %v10201_v52 = vld [vmem:[%s13118_s13 + $0x254] ss:$72 sps:$4 sm:$0xff]  }
0x1759   : > { %v5772_v54 = vpop.permute.xlu0 %5771 }
0x175a   : > { %v12139_v9 = vsel %vm5780_vm4, %v5779_v2, %v5772_v54  ;;  %v10204_v2 = vld [vmem:[%s13118_s13 + $0x25c] ss:$72 sps:$4 sm:$0xff]   ;;  %v10199_v54 = vld [vmem:[%s13118_s13 + $0x250] ss:$72 sps:$4 sm:$0xff]  }
0x175b   : > { %v5783_v56 = vsel %vm5782_vm5, %v12139_v9, 0.0 }
0x175c   : > { %5784 = vadd.xlane.f32.xlu1 %v5783_v56  ;;  %v10202_v56 = vld [vmem:[%s13118_s13 + $0x258] ss:$72 sps:$4 sm:$0xff]  }
0x17e9   : > { %v5785_v53 = vpop.xlane.xlu1 %5784 }
0x17ea   : > { %v5787_v59 = vmul.f32 0.010416667, %v5785_v53  ;;  %v10213_v53 = vld [vmem:[%s13118_s13 + $0x24] ss:$72 sps:$4 sm:$0xff]  }
0x17ec   : > { %v5788_v60 = vsub.f32 %v12139_v9, %v5787_v59  ;;  %v10216_v59 = vld [vmem:[%s13118_s13 + $0x2c] ss:$72 sps:$4 sm:$0xff]  }
0x17ee   : > { %v5789_v61 = vmul.f32 %v5788_v60, %v5788_v60 }
0x17f0   : > { %v5790_v62 = vsel %vm5782_vm5, %v5789_v61, 0.0  ;;  %v10214_v61 = vld [vmem:[%s13118_s13 + $0x28] ss:$72 sps:$4 sm:$0xff]  }
0x17f1   : > { %5791 = vadd.xlane.f32.xlu0 %v5790_v62  ;;  %v10219_v62 = vld [vmem:[%s13118_s13 + $0xb4] ss:$72 sps:$4 sm:$0xff]  }
0x187e   : > { %v5792_v24 = vpop.xlane.xlu0 %5791 }
0x187f   : > { %v5793_v26 = vmul.f32 0.010416667, %v5792_v24  ;;  %v10250_v24 = vld [vmem:[%s13118_s13 + $0x38] ss:$72 sps:$4 sm:$0xff]  }
0x1881   : > { %v5794_v28 = vadd.f32 1e-05, %v5793_v26  ;;  %v10255_v26 = vld [vmem:[%s13118_s13 + $0xc4] ss:$72 sps:$4 sm:$0xff]  }
0x1883   : > { %10466 = vrsqrt.f32 %v5794_v28  ;;  %v10258_v28 = vld [vmem:[%s13118_s13 + $0xcc] ss:$72 sps:$4 sm:$0xff]  }
0x188d   : > { %v10467_v27 = vpop.eup %10466 }
0x188e   : > { %v5796_v0 = vmul.f32 %v10467_v27, %v5788_v60  ;;  %v10211_v60 = vld [vmem:[%s13118_s13 + $0x20] ss:$72 sps:$4 sm:$0xff]  }
0x188f   : > { %v10256_v27 = vld [vmem:[%s13118_s13 + $0xc8] ss:$72 sps:$4 sm:$0xff]  }
0x1890   : > { %v5797_v30 = vmul.f32 %v5796_v0, %v5353_v49  ;;  %v10253_v49 = vld [vmem:[%s13118_s13 + $0xc0] ss:$72 sps:$4 sm:$0xff]   ;;  %v10264_v0 = vld [vmem:[%s13118_s13 + $0x15c] ss:$72 sps:$4 sm:$0xff]  }
0x1892   : > { %v5801_v31 = vadd.f32 %v5799_v58, %v5797_v30  ;;  %v10261_v58 = vld [vmem:[%s13118_s13 + $0x154] ss:$72 sps:$4 sm:$0xff]   ;;  %v10259_v30 = vld [vmem:[%s13118_s13 + $0x150] ss:$72 sps:$4 sm:$0xff]  }
0x1894   : > { %v12234_v35 = vpack.c.bf16 %v5801_v31, %v5801_v31  ;;  %v10262_v31 = vld [vmem:[%s13118_s13 + $0x158] ss:$72 sps:$4 sm:$0xff]  }
0x1896   : > { %8846 = vmatmul.mubr.msk.bf16.vlgmr.msra.gmra.mrb[20].mxu1 %vm6436_vm6, %v12234_v35  ;;  %8847 = vmatmul.mubr.msk.bf16.vlgmr.msra.gmra.mrb[24].mxu0 %vm6436_vm6, %v12234_v35 }
0x1897   : > { %6523 = vmatpush1.bf16.msra.mxu1 %v10175_v32  ;;  %6564 = vmatpush1.bf16.msra.mxu0 %v10178_v34  ;;  %v10267_v32 = vld [vmem:[%s13118_s13 + $0x1e4] ss:$72 sps:$4 sm:$0xff]  }
0x1898   : > { %6524 = vmatprep.subr.bf16.mxu1 %v10183_v18  ;;  %6565 = vmatprep.subr.bf16.mxu0 %v10186_v36  ;;  %v10270_v34 = vld [vmem:[%s13118_s13 + $0x1ec] ss:$72 sps:$4 sm:$0xff]   ;;  %v10265_v18 = vld [vmem:[%s13118_s13 + $0x1e0] ss:$72 sps:$4 sm:$0xff]  }
0x1899   : > { %6554 = vmatprep.mubr.bf16.mxu1 %v10633_v37  ;;  %6595 = vmatprep.mubr.bf16.mxu0 %v10633_v37  ;;  %v10268_v36 = vld [vmem:[%s13118_s13 + $0x1e8] ss:$72 sps:$4 sm:$0xff]  }
0x189b   : > { %6525 = vmatpush1.bf16.msra.mxu1 %v10181_v38  ;;  %6566 = vmatpush1.bf16.msra.mxu0 %v10184_v41  ;;  %v10273_v38 = vld [vmem:[%s13118_s13 + $0x274] ss:$72 sps:$4 sm:$0xff]  }
0x189c   : > { %6526 = vmatprep.subr.bf16.mxu1 %v10189_v14  ;;  %6567 = vmatprep.subr.bf16.mxu0 %v10192_v42  ;;  %v10276_v41 = vld [vmem:[%s13118_s13 + $0x27c] ss:$72 sps:$4 sm:$0xff]   ;;  %v10271_v14 = vld [vmem:[%s13118_s13 + $0x270] ss:$72 sps:$4 sm:$0xff]  }
0x189d   : > { %v10274_v42 = vld [vmem:[%s13118_s13 + $0x278] ss:$72 sps:$4 sm:$0xff]  }
0x189f   : > { %6527 = vmatpush1.bf16.msra.mxu1 %v10187_v43  ;;  %6568 = vmatpush1.bf16.msra.mxu0 %v10190_v44  ;;  %v10279_v43 = vld [vmem:[%s13118_s13 + $0x304] ss:$72 sps:$4 sm:$0xff]  }
0x18a0   : > { %6528 = vmatprep.subr.bf16.mxu1 %v10195_v45  ;;  %6569 = vmatprep.subr.bf16.mxu0 %v10198_v15  ;;  %v10282_v44 = vld [vmem:[%s13118_s13 + $0x30c] ss:$72 sps:$4 sm:$0xff]   ;;  %v10277_v45 = vld [vmem:[%s13118_s13 + $0x300] ss:$72 sps:$4 sm:$0xff]  }
0x18a1   : > { %v10280_v15 = vld [vmem:[%s13118_s13 + $0x308] ss:$72 sps:$4 sm:$0xff]  }
0x18a3   : > { %6529 = vmatpush1.bf16.msra.mxu1 %v10193_v47  ;;  %6570 = vmatpush1.bf16.msra.mxu0 %v10196_v51  ;;  %v10285_v47 = vld [vmem:[%s13118_s13 + $0x44] ss:$72 sps:$4 sm:$0xff]  }
0x18a4   : > { %6530 = vmatprep.subr.bf16.mxu1 %v10201_v52  ;;  %6571 = vmatprep.subr.bf16.mxu0 %v10204_v2  ;;  %v10301_v51 = vld [vmem:[%s13176_s23 + $0x40] sm:$0xff]   ;;  %v10288_v2 = vld [vmem:[%s13118_s13 + $0xd4] ss:$72 sps:$4 sm:$0xff]  }
0x18a5   : > { %v10283_v52 = vld [vmem:[%s13118_s13 + $0x40] ss:$72 sps:$4 sm:$0xff]  }
0x18a7   : > { %6531 = vmatpush1.bf16.msra.mxu1 %v10199_v54  ;;  %6572 = vmatpush1.bf16.msra.mxu0 %v10202_v56  ;;  %v10303_v54 = vld [vmem:[%s13176_s23] sm:$0xff]   ;;  %v10305_v56 = vld [vmem:[%s13176_s23 + $0x48] sm:$0xff]  }
0x18a8   : > { %6532 = vmatprep.subr.bf16.mxu1 %v10207_v57  ;;  %6573 = vmatprep.subr.bf16.mxu0 %v10210_v5  ;;  %v10286_v57 = vld [vmem:[%s13118_s13 + $0xd0] ss:$72 sps:$4 sm:$0xff]   ;;  %v10291_v5 = vld [vmem:[%s13118_s13 + $0x164] ss:$72 sps:$4 sm:$0xff]  }
0x18ab   : > { %6533 = vmatpush1.bf16.msra.mxu1 %v10205_v39  ;;  %6574 = vmatpush1.bf16.msra.mxu0 %v10208_v55  ;;  %v10307_v39 = vld [vmem:[%s13176_s23 + $0x8] sm:$0xff]   ;;  %v10309_v55 = vld [vmem:[%s13176_s23 + $0x50] sm:$0xff]  }
0x18ac   : > { %6604 = vmatprep.subr.bf16.mxu1 %v10213_v53  ;;  %6645 = vmatprep.subr.bf16.mxu0 %v10216_v59  ;;  %v10294_v53 = vld [vmem:[%s13118_s13 + $0x1f4] ss:$72 sps:$4 sm:$0xff]   ;;  %v10292_v59 = vld [vmem:[%s13118_s13 + $0x1f0] ss:$72 sps:$4 sm:$0xff]  }
0x18ae   : > { %8848 = vmatmul.mubr.msk.bf16.vlgmr.msra.gmra.mrb[24].mxu1 %vm6436_vm6, %v12234_v35  ;;  %8849 = vmatmul.mubr.msk.bf16.vlgmr.msra.gmra.mrb[28].mxu0 %vm6436_vm6, %v12234_v35 }
0x18af   : > { %6605 = vmatpush1.bf16.msra.mxu1 %v10211_v60  ;;  %6646 = vmatpush1.bf16.msra.mxu0 %v10214_v61  ;;  %v10297_v60 = vld [vmem:[%s13118_s13 + $0x284] ss:$72 sps:$4 sm:$0xff]   ;;  %v10311_v61 = vld [vmem:[%s13176_s23 + $0x10] sm:$0xff]  }
0x18b0   : > { %6606 = vmatprep.subr.bf16.mxu1 %v10219_v62  ;;  %6647 = vmatprep.subr.bf16.mxu0 %v10222_v10  ;;  %v10295_v62 = vld [vmem:[%s13118_s13 + $0x280] ss:$72 sps:$4 sm:$0xff]   ;;  %v10300_v10 = vld [vmem:[%s13118_s13 + $0x314] ss:$72 sps:$4 sm:$0xff]  }
0x18b1   : > { %6636 = vmatprep.mubr.bf16.mxu1 %v10633_v37  ;;  %6677 = vmatprep.mubr.bf16.mxu0 %v10633_v37 }
0x18b3   : > { %6607 = vmatpush1.bf16.msra.mxu1 %v10217_v50  ;;  %6648 = vmatpush1.bf16.msra.mxu0 %v10220_v4  ;;  %v10313_v50 = vld [vmem:[%s13176_s23 + $0x58] sm:$0xff]  }
0x18b4   : > { %6608 = vmatprep.subr.bf16.mxu1 %v10225_v63  ;;  %6649 = vmatprep.subr.bf16.mxu0 %v10228_v1  ;;  %v10315_v4 = vld [vmem:[%s13176_s23 + $0x18] sm:$0xff]   ;;  %v10302_v1 = vld [vmem:[%s13176_s23 + $0xc0] sm:$0xff]  }
0x18b5   : > { %v10298_v63 = vld [vmem:[%s13118_s13 + $0x310] ss:$72 sps:$4 sm:$0xff]  }
0x18b7   : > { %6609 = vmatpush1.bf16.msra.mxu1 %v10223_v6  ;;  %6650 = vmatpush1.bf16.msra.mxu0 %v10226_v3  ;;  %v10317_v6 = vld [vmem:[%s13176_s23 + $0x60] sm:$0xff]  }
0x18b8   : > { %6610 = vmatprep.subr.bf16.mxu1 %v10231_v7  ;;  %6651 = vmatprep.subr.bf16.mxu0 %v10234_v8  ;;  %v10319_v3 = vld [vmem:[%s13176_s23 + $0x20] sm:$0xff]   ;;  %v10306_v8 = vld [vmem:[%s13176_s23 + $0xc8] sm:$0xff]  }
0x18b9   : > { %v10304_v7 = vld [vmem:[%s13176_s23 + $0x80] sm:$0xff]  }
0x18bb   : > { %6611 = vmatpush1.bf16.msra.mxu1 %v10229_v16  ;;  %6652 = vmatpush1.bf16.msra.mxu0 %v10232_v17  ;;  %v10321_v16 = vld [vmem:[%s13176_s23 + $0x68] sm:$0xff]  }
0x18bc   : > { %6612 = vmatprep.subr.bf16.mxu1 %v10237_v46  ;;  %6653 = vmatprep.subr.bf16.mxu0 %v10240_v11  ;;  %v10323_v17 = vld [vmem:[%s13176_s23 + $0x28] sm:$0xff]   ;;  %v10310_v11 = vld [vmem:[%s13176_s23 + $0xd0] sm:$0xff]  }
0x18bd   : > { %v10308_v46 = vld [vmem:[%s13176_s23 + $0x88] sm:$0xff]  }
0x18bf   : > { %6613 = vmatpush1.bf16.msra.mxu1 %v10235_v29  ;;  %6654 = vmatpush1.bf16.msra.mxu0 %v10238_v12  ;;  %v10325_v29 = vld [vmem:[%s13176_s23 + $0x70] sm:$0xff]  }
0x18c0   : > { %6614 = vmatprep.subr.bf16.mxu1 %v10243_v13  ;;  %6655 = vmatprep.subr.bf16.mxu0 %v10246_v25  ;;  %v10312_v12 = vld [vmem:[%s13176_s23 + $0x90] sm:$0xff]   ;;  %v10314_v13 = vld [vmem:[%s13176_s23 + $0xd8] sm:$0xff]  }
0x18c1   : > { %v10329_v25 = vld [vmem:[%s13176_s23 + $0x78] sm:$0xff]  }
0x18c3   : > { %6615 = vmatpush1.bf16.msra.mxu1 %v10241_v19  ;;  %6656 = vmatpush1.bf16.msra.mxu0 %v10244_v21  ;;  %v10331_v19 = vld [vmem:[%s13176_s23 + $0x38] sm:$0xff]  }
0x18c4   : > { %6686 = vmatprep.subr.bf16.mxu1 %v10249_v22  ;;  %6727 = vmatprep.subr.bf16.mxu0 %v10252_v20  ;;  %v10316_v21 = vld [vmem:[%s13176_s23 + $0x98] sm:$0xff]   ;;  %v10318_v22 = vld [vmem:[%s13176_s23 + $0xe0] sm:$0xff]  }
0x18c5   : > { %v10333_v20 = vld [vmem:[%s13176_s23 + $0x140] sm:$0xff]  }
0x18c6   : > { %8850 = vmatmul.mubr.msk.bf16.vlgmr.msra.gmra.mrb[28].mxu1 %vm6436_vm6, %v12234_v35  ;;  %8851 = vmatmul.mubr.msk.bf16.vlgmr.msra.gmra.mrb[32].mxu0 %vm6436_vm6, %v12234_v35 }
0x18c7   : > { %6687 = vmatpush1.bf16.msra.mxu1 %v10247_v23  ;;  %6728 = vmatpush1.bf16.msra.mxu0 %v10250_v24  ;;  %v10320_v23 = vld [vmem:[%s13176_s23 + $0xa0] sm:$0xff]   ;;  %v10322_v24 = vld [vmem:[%s13176_s23 + $0xe8] sm:$0xff]  }
0x18c8   : > { %6688 = vmatprep.subr.bf16.mxu1 %v10255_v26  ;;  %6729 = vmatprep.subr.bf16.mxu0 %v10258_v28  ;;  %v10324_v26 = vld [vmem:[%s13176_s23 + $0xa8] sm:$0xff]   ;;  %v10326_v28 = vld [vmem:[%s13176_s23 + $0xf0] sm:$0xff]  }
0x18c9   : > { %6718 = vmatprep.mubr.bf16.mxu1 %v10633_v37  ;;  %6759 = vmatprep.mubr.bf16.mxu0 %v10633_v37 }
0x18cb   : > { %6689 = vmatpush1.bf16.msra.mxu1 %v10253_v49  ;;  %6730 = vmatpush1.bf16.msra.mxu0 %v10256_v27  ;;  %v10328_v49 = vld [vmem:[%s13176_s23 + $0xb0] sm:$0xff]   ;;  %v10330_v27 = vld [vmem:[%s13176_s23 + $0xf8] sm:$0xff]  }
0x18cc   : > { %6690 = vmatprep.subr.bf16.mxu1 %v10261_v58  ;;  %6731 = vmatprep.subr.bf16.mxu0 %v10264_v0  ;;  %v10332_v58 = vld [vmem:[%s13176_s23 + $0xb8] sm:$0xff]   ;;  %v10334_v0 = vld [vmem:[%s13176_s23 + $0x1c0] sm:$0xff]  }
0x18cf   : > { %6691 = vmatpush1.bf16.msra.mxu1 %v10259_v30  ;;  %6732 = vmatpush1.bf16.msra.mxu0 %v10262_v31  ;;  %v6356_v30 = vsub.s32 2, %v12046_v48  ;;  %v5462_v31 = vld [vmem:[%s13177_s19] sm:$0xff] }
0x18d0   : > { %6692 = vmatprep.subr.bf16.mxu1 %v10267_v32  ;;  %6733 = vmatprep.subr.bf16.mxu0 %v10270_v34  ;;  %v12608_v32 = vsub.s32 1, %v12046_v48  ;;  %v6360_v34 = vsub.s32 3, %v12046_v48 }
0x18d3   : > { %6693 = vmatpush1.bf16.msra.mxu1 %v10265_v18  ;;  %6734 = vmatpush1.bf16.msra.mxu0 %v10268_v36  ;;  %v6349_v18 = vrot.slane %v5462_v31, %v12049_v33  ;;  %v6357_v36 = vrot.slane %v5462_v31, %v6356_v30 }
0x18d4   : > { %6694 = vmatprep.subr.bf16.mxu1 %v10273_v38  ;;  %6735 = vmatprep.subr.bf16.mxu0 %v10276_v41  ;;  %v6353_v38 = vrot.slane %v5462_v31, %v12608_v32  ;;  %v6361_v41 = vrot.slane %v5462_v31, %v6360_v34 }
0x18d7   : > { %6695 = vmatpush1.bf16.msra.mxu1 %v10271_v14  ;;  %6736 = vmatpush1.bf16.msra.mxu0 %v10274_v42 }
0x18d8   : > { %6696 = vmatprep.subr.bf16.mxu1 %v10279_v43  ;;  %6737 = vmatprep.subr.bf16.mxu0 %v10282_v44 }
0x18db   : > { %6697 = vmatpush1.bf16.msra.mxu1 %v10277_v45  ;;  %6738 = vmatpush1.bf16.msra.mxu0 %v10280_v15 }
0x18dc   : > { %6768 = vmatprep.subr.bf16.mxu1 %v10285_v47  ;;  %9258 = vmatprep.subr.bf16.mxu0 %v10301_v51 }
0x18de   : > { %8852 = vmatmul.mubr.msk.bf16.vlgmr.msra.gmra.mrb[32].mxu1 %vm6436_vm6, %v12234_v35  ;;  %8853 = vmatmul.mubr.msk.bf16.vlgmr.msra.gmra.mrb[36].mxu0 %vm6436_vm6, %v12234_v35 }
0x18df   : > { %6769 = vmatpush1.bf16.msra.mxu1 %v10283_v52  ;;  %6800 = vmatprep.mubr.bf16.mxu1 %v10633_v37  ;;  %v10289_v37 = vld [vmem:[%s13118_s13 + $0x160] ss:$72 sps:$4 sm:$0xff]  }
0x18e0   : > { %6770 = vmatprep.subr.bf16.mxu1 %v10288_v2  ;;  %9259 = vmatpush3.bf16.msra.mxu0 %v10303_v54 }
0x18e1   : > { %9260 = vmatprep.subr.bf16.mxu0 %v10305_v56 }
0x18e3   : > { %6771 = vmatpush1.bf16.msra.mxu1 %v10286_v57 }
0x18e4   : > { %6772 = vmatprep.subr.bf16.mxu1 %v10291_v5  ;;  %9261 = vmatpush3.bf16.msra.mxu0 %v10307_v39 }
0x18e5   : > { %9262 = vmatprep.subr.bf16.mxu0 %v10309_v55 }
0x18e7   : > { %6773 = vmatpush1.bf16.msra.mxu1 %v10289_v37 }
0x18e8   : > { %6774 = vmatprep.subr.bf16.mxu1 %v10294_v53  ;;  %9263 = vmatpush3.bf16.msra.mxu0 %v10311_v61 }
0x18e9   : > { %9264 = vmatprep.subr.bf16.mxu0 %v10313_v50  ;;  %v6368_v50 = vsub.s32 5, %v12046_v48 }
0x18eb   : > { %6775 = vmatpush1.bf16.msra.mxu1 %v10292_v59 }
0x18ec   : > { %6776 = vmatprep.subr.bf16.mxu1 %v10297_v60  ;;  %9265 = vmatpush3.bf16.msra.mxu0 %v10315_v4 }
0x18ed   : > { %9266 = vmatprep.subr.bf16.mxu0 %v10317_v6 }
0x18ef   : > { %6777 = vmatpush1.bf16.msra.mxu1 %v10295_v62 }
0x18f0   : > { %6778 = vmatprep.subr.bf16.mxu1 %v10300_v10  ;;  %9267 = vmatpush3.bf16.msra.mxu0 %v10319_v3  ;;  %v6364_v10 = vsub.s32 4, %v12046_v48  ;;  %v6376_v3 = vsub.s32 7, %v12046_v48 }
0x18f1   : > { %9268 = vmatprep.subr.bf16.mxu0 %v10321_v16 }
0x18f3   : > { %6779 = vmatpush1.bf16.msra.mxu1 %v10298_v63 }
0x18f4   : > { %9280 = vmatprep.subr.bf16.mxu1 %v10302_v1  ;;  %9269 = vmatpush3.bf16.msra.mxu0 %v10323_v17  ;;  %v6372_v17 = vsub.s32 6, %v12046_v48 }
0x18f5   : > { %9270 = vmatprep.subr.bf16.mxu0 %v10325_v29 }
0x18f6   : > { %8854 = vmatmul.mubr.msk.bf16.vlgmr.msra.gmra.mrb[36].mxu1 %vm6436_vm6, %v12234_v35  ;;  %v10327_v35 = vld [vmem:[%s13176_s23 + $0x30] sm:$0xff]  }
0x18f7   : > { %9281 = vmatpush3.bf16.msra.mxu1 %v10304_v7 }
0x18f8   : > { %9282 = vmatprep.subr.bf16.mxu1 %v10306_v8  ;;  %9271 = vmatpush3.bf16.msra.mxu0 %v10327_v35  ;;  %v6365_v35 = vrot.slane %v5462_v31, %v6364_v10 }
0x18f9   : > { %9272 = vmatprep.subr.bf16.mxu0 %v10329_v25  ;;  %v6377_v25 = vrot.slane %v5462_v31, %v6376_v3 }
0x18fb   : > { %9283 = vmatpush3.bf16.msra.mxu1 %v10308_v46 }
0x18fc   : > { %9284 = vmatprep.subr.bf16.mxu1 %v10310_v11  ;;  %9273 = vmatpush3.bf16.msra.mxu0 %v10331_v19  ;;  %v10335_v19 = vld [vmem:[%s13176_s23 + $0x100] sm:$0xff]  }
0x18fd   : > { %9302 = vmatprep.subr.bf16.mxu0 %v10333_v20 }
0x18ff   : > { %9285 = vmatpush3.bf16.msra.mxu1 %v10312_v12 }
0x1900   : > { %9286 = vmatprep.subr.bf16.mxu1 %v10314_v13  ;;  %v6369_v13 = vrot.slane %v5462_v31, %v6368_v50 }
0x1903   : > { %9287 = vmatpush3.bf16.msra.mxu1 %v10316_v21 }
0x1904   : > { %9288 = vmatprep.subr.bf16.mxu1 %v10318_v22  ;;  %v6373_v22 = vrot.slane %v5462_v31, %v6372_v17 }
0x1907   : > { %9289 = vmatpush3.bf16.msra.mxu1 %v10320_v23  ;;  %v10336_v23 = vld [vmem:[%s13176_s23 + $0x180] sm:$0xff]  }
0x1908   : > { %9290 = vmatprep.subr.bf16.mxu1 %v10322_v24  ;;  %v10337_v24 = vld [vmem:[%s13176_s23 + $0x148] sm:$0xff]  }
0x190b   : > { %9291 = vmatpush3.bf16.msra.mxu1 %v10324_v26 }
0x190c   : > { %9292 = vmatprep.subr.bf16.mxu1 %v10326_v28 }
0x190f   : > { %9293 = vmatpush3.bf16.msra.mxu1 %v10328_v49 }
0x1910   : > { %9294 = vmatprep.subr.bf16.mxu1 %v10330_v27  ;;  %v10338_v27 = vld [vmem:[%s13176_s23 + $0x1c8] sm:$0xff]  }
0x1913   : > { %9295 = vmatpush3.bf16.msra.mxu1 %v10332_v58 }
0x1914   : > { %9324 = vmatprep.subr.bf16.mxu1 %v10334_v0 }
0x1969   : > { %v6474_v14 = vpop.f32.mrb[20].mxu1  ;;  %v6515_v42 = vpop.f32.mrb[24].mxu0 }
0x196a   : > { %v6475_v43 = vadd.f32 %v6474_v14, %v6349_v18  ;;  %v6516_v44 = vadd.f32 %v6515_v42, %v6357_v36  ;;  %v6476_v45 = vpop.f32.mrb[21].mxu1  ;;  %v6517_v15 = vpop.f32.mrb[25].mxu0  ;;  %v10339_v14 = vld [vmem:[%s13176_s23 + $0x108] sm:$0xff]  }
0x196b   : > { %v6477_v47 = vadd.f32 %v6476_v45, %v6353_v38  ;;  %v6518_v51 = vadd.f32 %v6517_v15, %v6361_v41  ;;  %v6478_v52 = vpop.f32.mrb[22].mxu1  ;;  %v6519_v2 = vpop.f32.mrb[26].mxu0 }
0x196c   : > { %v6827_v54 = vmul.f32 0.70710677, %v6475_v43  ;;  %v6829_v56 = vmul.f32 0.70710677, %v6516_v44  ;;  %v6479_v39 = vpop.f32.mrb[23].mxu1  ;;  %v6520_v55 = vpop.f32.mrb[27].mxu0 }
0x196d   : > { %v6828_v57 = vmul.f32 0.70710677, %v6477_v47  ;;  %v6830_v5 = vmul.f32 0.70710677, %v6518_v51  ;;  %v6809_v61 = vmul.f32 0.5, %v6475_v43  ;;  %v6811_v63 = vmul.f32 0.5, %v6516_v44 }
0x196e   : > { %10468 = verf.f32 %v6827_v54  ;;  %v6810_v1 = vmul.f32 0.5, %v6477_v47  ;;  %v6812_v8 = vmul.f32 0.5, %v6518_v51  ;;  %v10340_v43 = vld [vmem:[%s13176_s23 + $0x188] sm:$0xff]   ;;  %v10341_v44 = vld [vmem:[%s13176_s23 + $0x150] sm:$0xff]   ;;  %v10346_v39 = vld [vmem:[%s13176_s23 + $0x1d8] sm:$0xff]  }
0x196f   : > { %10470 = verf.f32 %v6829_v56  ;;  %v10342_v47 = vld [vmem:[%s13176_s23 + $0x1d0] sm:$0xff]   ;;  %v10347_v55 = vld [vmem:[%s13176_s23 + $0x118] sm:$0xff]  }
0x1970   : > { %10472 = verf.f32 %v6828_v57  ;;  %v10343_v54 = vld [vmem:[%s13176_s23 + $0x110] sm:$0xff]  }
0x1971   : > { %10474 = verf.f32 %v6830_v5  ;;  %v10344_v57 = vld [vmem:[%s13176_s23 + $0x190] sm:$0xff]   ;;  %v10345_v5 = vld [vmem:[%s13176_s23 + $0x158] sm:$0xff]  }
0x1978   : > { %v10469_v37 = vpop.eup %10468 }
0x1979   : > { %v10471_v53 = vpop.eup %10470  ;;  %v6863_v59 = vadd.f32 1.0, %v10469_v37  ;;  %v10348_v37 = vld [vmem:[%s13176_s23 + $0x198] sm:$0xff]  }
0x197a   : > { %v10473_v60 = vpop.eup %10472  ;;  %v6865_v62 = vadd.f32 1.0, %v10471_v53  ;;  %v10349_v53 = vld [vmem:[%s13176_s23 + $0x160] sm:$0xff]  }
0x197b   : > { %v10475_v4 = vpop.eup %10474  ;;  %v6864_v6 = vadd.f32 1.0, %v10473_v60  ;;  %v6881_v7 = vmul.f32 %v6863_v59, %v6809_v61  ;;  %v10350_v59 = vld [vmem:[%s13176_s23 + $0x1e0] sm:$0xff]  }
0x197c   : > { %v6866_v16 = vadd.f32 1.0, %v10475_v4  ;;  %v6883_v46 = vmul.f32 %v6865_v62, %v6811_v63  ;;  %v10351_v60 = vld [vmem:[%s13176_s23 + $0x120] sm:$0xff]   ;;  %v10353_v62 = vld [vmem:[%s13176_s23 + $0x168] sm:$0xff]  }
0x197d   : > { %v6882_v11 = vmul.f32 %v6864_v6, %v6810_v1  ;;  %v6899_v21 = vpack.c.bf16 %v6881_v7, %v6881_v7  ;;  %v10352_v61 = vld [vmem:[%s13176_s23 + $0x1a0] sm:$0xff]   ;;  %v10354_v4 = vld [vmem:[%s13176_s23 + $0x1e8] sm:$0xff]  }
0x197e   : > { %v6884_v29 = vmul.f32 %v6866_v16, %v6812_v8  ;;  %v6901_v26 = vpack.c.bf16 %v6883_v46, %v6883_v46  ;;  %v10355_v8 = vld [vmem:[%s13176_s23 + $0x128] sm:$0xff]  }
0x197f   : > { %v6900_v12 = vpack.c.bf16 %v6882_v11, %v6882_v11  ;;  %v12701_v16 = vld [vmem:[%s13177_s19 + $0x8] sm:$0xff] }
0x1980   : > { %v6902_v20 = vpack.c.bf16 %v6884_v29, %v6884_v29  ;;  %v10356_v29 = vld [vmem:[%s13176_s23 + $0x1a8] sm:$0xff]  }
0x1981   : > { %v6556_v28 = vpop.f32.mrb[24].mxu1  ;;  %v6597_v49 = vpop.f32.mrb[28].mxu0  ;;  %7815 = vmatprep.mubr.bf16.mxu0 %v6900_v12 }
0x1982   : > { %7855 = vmatprep.mubr.bf16.mxu1 %v6902_v20  ;;  %v6558_v58 = vpop.f32.mrb[25].mxu1  ;;  %v6599_v0 = vpop.f32.mrb[29].mxu0  ;;  %7816 = vmatmul.mubr.bf16.vlgmr.msra.gmra.mrb[40].mxu0 %v6899_v21  ;;  %v12641_v31 = vadd.f32 %v6556_v28, %v6365_v35  ;;  %v12646_v42 = vadd.f32 %v6597_v49, %v6373_v22  ;;  %v10357_v35 = vld [vmem:[%s13176_s23 + $0x170] sm:$0xff]   ;;  %v6389_v22 = vrot.slane %v12701_v16, %v6356_v30 }
0x1983   : > { %v6559_v18 = vadd.f32 %v6558_v58, %v6369_v13  ;;  %v6600_v36 = vadd.f32 %v6599_v0, %v6377_v25  ;;  %7856 = vmatmul.mubr.bf16.vlgmr.msra.gmra.mrb[40].mxu1 %v6901_v26  ;;  %9303 = vmatpush3.bf16.msra.mxu0 %v10335_v19  ;;  %v6560_v38 = vpop.f32.mrb[26].mxu1  ;;  %v6601_v41 = vpop.f32.mrb[30].mxu0  ;;  %v10358_v25 = vld [vmem:[%s13176_s23 + $0x1f0] sm:$0xff]  }
0x1984   : > { %9325 = vmatpush3.bf16.msra.mxu1 %v10336_v23  ;;  %9304 = vmatprep.subr.bf16.mxu0 %v10337_v24  ;;  %v6561_v51 = vpop.f32.mrb[27].mxu1  ;;  %v6602_v52 = vpop.f32.mrb[31].mxu0  ;;  %v6831_v2 = vmul.f32 0.70710677, %v12641_v31  ;;  %v6833_v56 = vmul.f32 0.70710677, %v12646_v42  ;;  %v6385_v23 = vrot.slane %v12701_v16, %v12608_v32  ;;  %v6393_v24 = vrot.slane %v12701_v16, %v6360_v34 }
0x1985   : > { %v6832_v45 = vmul.f32 0.70710677, %v6559_v18  ;;  %v6834_v15 = vmul.f32 0.70710677, %v6600_v36  ;;  %9326 = vmatprep.subr.bf16.mxu1 %v10338_v27  ;;  %v6814_v6 = vmul.f32 0.5, %v6559_v18  ;;  %v6816_v46 = vmul.f32 0.5, %v6600_v36 }
0x1986   : > { %v10359_v26 = vld [vmem:[%s13176_s23 + $0x130] sm:$0xff]   ;;  %v10361_v27 = vld [vmem:[%s13176_s23 + $0x178] sm:$0xff]   ;;  %v6813_v36 = vmul.f32 0.5, %v12641_v31 }
0x1987   : > { %9305 = vmatpush3.bf16.msra.mxu0 %v10339_v14  ;;  %10476 = verf.f32 %v6832_v45  ;;  %v10360_v30 = vld [vmem:[%s13176_s23 + $0x1b0] sm:$0xff]   ;;  %v10362_v18 = vld [vmem:[%s13176_s23 + $0x1f8] sm:$0xff]  }
0x1988   : > { %9327 = vmatpush3.bf16.msra.mxu1 %v10340_v43  ;;  %9306 = vmatprep.subr.bf16.mxu0 %v10341_v44  ;;  %10478 = verf.f32 %v6834_v15  ;;  %v6815_v43 = vmul.f32 0.5, %v12646_v42  ;;  %v10363_v51 = vld [vmem:[%s13176_s23 + $0x138] sm:$0xff]   ;;  %v10365_v42 = vld [vmem:[%s13176_s23 + $0x240] sm:$0xff]  }
0x1989   : > { %9328 = vmatprep.subr.bf16.mxu1 %v10342_v47  ;;  %10480 = verf.f32 %v6831_v2  ;;  %v10364_v31 = vld [vmem:[%s13176_s23 + $0x1b8] sm:$0xff]  }
0x198a   : > { %10482 = verf.f32 %v6833_v56 }
0x198b   : > { %9307 = vmatpush3.bf16.msra.mxu0 %v10343_v54 }
0x198c   : > { %9329 = vmatpush3.bf16.msra.mxu1 %v10344_v57  ;;  %9308 = vmatprep.subr.bf16.mxu0 %v10345_v5  ;;  %v10366_v57 = vld [vmem:[%s13176_s23 + $0x2c0] sm:$0xff]  }
0x198d   : > { %9330 = vmatprep.subr.bf16.mxu1 %v10346_v39 }
0x198f   : > { %9309 = vmatpush3.bf16.msra.mxu0 %v10347_v55  ;;  %v6381_v55 = vrot.slane %v12701_v16, %v12049_v33 }
0x1990   : > { %9331 = vmatpush3.bf16.msra.mxu1 %v10348_v37  ;;  %9310 = vmatprep.subr.bf16.mxu0 %v10349_v53  ;;  %v10367_v37 = vld [vmem:[%s13176_s23 + $0x200] sm:$0xff]  }
0x1991   : > { %9332 = vmatprep.subr.bf16.mxu1 %v10350_v59  ;;  %v10477_v63 = vpop.eup %10476  ;;  %v10368_v59 = vld [vmem:[%s13176_s23 + $0x280] sm:$0xff]  }
0x1992   : > { %v10479_v1 = vpop.eup %10478  ;;  %v6868_v7 = vadd.f32 1.0, %v10477_v63  ;;  %v10371_v63 = vld [vmem:[%s13176_s23 + $0x208] sm:$0xff]  }
0x1993   : > { %9311 = vmatpush3.bf16.msra.mxu0 %v10351_v60  ;;  %v6870_v11 = vadd.f32 1.0, %v10479_v1  ;;  %v10481_v12 = vpop.eup %10480  ;;  %v10369_v60 = vld [vmem:[%s13176_s23 + $0x248] sm:$0xff]  }
0x1994   : > { %9333 = vmatpush3.bf16.msra.mxu1 %v10352_v61  ;;  %9312 = vmatprep.subr.bf16.mxu0 %v10353_v62  ;;  %v6886_v13 = vmul.f32 %v6868_v7, %v6814_v6  ;;  %v10483_v19 = vpop.eup %10482  ;;  %v6867_v28 = vadd.f32 1.0, %v10481_v12  ;;  %v10370_v62 = vld [vmem:[%s13176_s23 + $0x2c8] sm:$0xff]   ;;  %v10373_v6 = vld [vmem:[%s13176_s23 + $0x250] sm:$0xff]   ;;  %v10378_v12 = vld [vmem:[%s13176_s23 + $0x2d8] sm:$0xff]  }
0x1995   : > { %9334 = vmatprep.subr.bf16.mxu1 %v10354_v4  ;;  %v6888_v21 = vmul.f32 %v6870_v11, %v6816_v46  ;;  %v6869_v58 = vadd.f32 1.0, %v10483_v19  ;;  %v10372_v1 = vld [vmem:[%s13176_s23 + $0x288] sm:$0xff]   ;;  %v10374_v7 = vld [vmem:[%s13176_s23 + $0x2d0] sm:$0xff]  }
0x1996   : > { %v6904_v20 = vpack.c.bf16 %v6886_v13, %v6886_v13  ;;  %v6885_v52 = vmul.f32 %v6867_v28, %v6813_v36  ;;  %v10375_v46 = vld [vmem:[%s13176_s23 + $0x210] sm:$0xff]   ;;  %v10383_v36 = vld [vmem:[%s13176_s23 + $0x220] sm:$0xff]  }
0x1997   : > { %9313 = vmatpush3.bf16.msra.mxu0 %v10355_v8  ;;  %v6906_v49 = vpack.c.bf16 %v6888_v21, %v6888_v21  ;;  %v6887_v2 = vmul.f32 %v6869_v58, %v6815_v43  ;;  %v6405_v58 = vrot.slane %v12701_v16, %v6372_v17  ;;  %v10384_v17 = vld [vmem:[%s13176_s23 + $0x2a0] sm:$0xff]  }
0x1998   : > { %9335 = vmatpush3.bf16.msra.mxu1 %v10356_v29  ;;  %9314 = vmatprep.subr.bf16.mxu0 %v10357_v35  ;;  %v6903_v53 = vpack.c.bf16 %v6885_v52, %v6885_v52  ;;  %v10376_v29 = vld [vmem:[%s13176_s23 + $0x290] sm:$0xff]   ;;  %v10377_v35 = vld [vmem:[%s13176_s23 + $0x258] sm:$0xff]   ;;  %v10387_v52 = vld [vmem:[%s13176_s23 + $0x228] sm:$0xff]  }
0x1999   : > { %7895 = vmatprep.mubr.bf16.mxu0 %v6904_v20  ;;  %v6638_v0 = vpop.f32.mrb[28].mxu1  ;;  %v6679_v34 = vpop.f32.mrb[32].mxu0  ;;  %9336 = vmatprep.subr.bf16.mxu1 %v10358_v25  ;;  %v6905_v61 = vpack.c.bf16 %v6887_v2, %v6887_v2 }
0x199a   : > { %7935 = vmatprep.mubr.bf16.mxu1 %v6906_v49  ;;  %v12733_v38 = vadd.f32 %v6679_v34, %v6389_v22  ;;  %v6640_v41 = vpop.f32.mrb[29].mxu1  ;;  %v6681_v14 = vpop.f32.mrb[33].mxu0  ;;  %v12762_v4 = vadd.f32 %v6638_v0, %v6381_v55  ;;  %v10379_v22 = vld [vmem:[%s13176_s23 + $0x218] sm:$0xff]   ;;  %v10382_v49 = vld [vmem:[%s13176_s23 + $0x2e0] sm:$0xff]   ;;  %v6401_v34 = vrot.slane %v12701_v16, %v6368_v50 }
0x199b   : > { %v6641_v44 = vadd.f32 %v6640_v41, %v6385_v23  ;;  %v6682_v45 = vadd.f32 %v6681_v14, %v6393_v24  ;;  %9315 = vmatpush3.bf16.msra.mxu0 %v10359_v26  ;;  %v6642_v15 = vpop.f32.mrb[30].mxu1  ;;  %v6683_v47 = vpop.f32.mrb[34].mxu0  ;;  %v10380_v24 = vld [vmem:[%s13176_s23 + $0x298] sm:$0xff]   ;;  %v10381_v26 = vld [vmem:[%s13176_s23 + $0x260] sm:$0xff]   ;;  %v10385_v41 = vld [vmem:[%s13176_s23 + $0x268] sm:$0xff]  }
0x199c   : > { %9337 = vmatpush3.bf16.msra.mxu1 %v10360_v30  ;;  %9316 = vmatprep.subr.bf16.mxu0 %v10361_v27  ;;  %v6643_v5 = vpop.f32.mrb[31].mxu1  ;;  %v6684_v39 = vpop.f32.mrb[35].mxu0  ;;  %v6835_v8 = vmul.f32 0.70710677, %v12762_v4  ;;  %v6837_v11 = vmul.f32 0.70710677, %v12733_v38  ;;  %v6397_v27 = vrot.slane %v12701_v16, %v6364_v10 }
0x199d   : > { %v6836_v54 = vmul.f32 0.70710677, %v6641_v44  ;;  %v6838_v56 = vmul.f32 0.70710677, %v6682_v45  ;;  %9338 = vmatprep.subr.bf16.mxu1 %v10362_v18  ;;  %v6818_v19 = vmul.f32 0.5, %v6641_v44  ;;  %v6820_v20 = vmul.f32 0.5, %v6682_v45 }
0x199e   : > { %v6409_v18 = vrot.slane %v12701_v16, %v6376_v3  ;;  %v10386_v3 = vld [vmem:[%s13176_s23 + $0x2e8] sm:$0xff]  }
0x199f   : > { %9317 = vmatpush3.bf16.msra.mxu0 %v10363_v51  ;;  %10484 = verf.f32 %v6836_v54 }
0x19a0   : > { %9339 = vmatpush3.bf16.msra.mxu1 %v10364_v31  ;;  %9346 = vmatprep.subr.bf16.mxu0 %v10365_v42  ;;  %10486 = verf.f32 %v6838_v56  ;;  %v10388_v31 = vld [vmem:[%s13176_s23 + $0x2a8] sm:$0xff]   ;;  %v10389_v42 = vld [vmem:[%s13176_s23 + $0x270] sm:$0xff]  }
0x19a1   : > { %9368 = vmatprep.subr.bf16.mxu1 %v10366_v57  ;;  %10488 = verf.f32 %v6835_v8  ;;  %v10390_v57 = vld [vmem:[%s13176_s23 + $0x2f0] sm:$0xff]   ;;  %v10396_v8 = vld [vmem:[%s13176_s23 + $0x2b8] sm:$0xff]  }
0x19a2   : > { %7896 = vmatmul.mubr.bf16.vlgmr.msra.gmra.mrb[44].mxu0 %v6903_v53  ;;  %10490 = verf.f32 %v6837_v11 }
0x19a3   : > { %7936 = vmatmul.mubr.bf16.vlgmr.msra.gmra.mrb[44].mxu1 %v6905_v61  ;;  %9347 = vmatpush3.bf16.msra.mxu0 %v10367_v37  ;;  %v10391_v37 = vld [vmem:[%s13176_s23 + $0x230] sm:$0xff]  }
0x19a4   : > { %9369 = vmatpush3.bf16.msra.mxu1 %v10368_v59  ;;  %9348 = vmatprep.subr.bf16.mxu0 %v10369_v60  ;;  %v10392_v59 = vld [vmem:[%s13176_s23 + $0x2b0] sm:$0xff]   ;;  %v10393_v60 = vld [vmem:[%s13176_s23 + $0x278] sm:$0xff]  }
0x19a5   : > { %9370 = vmatprep.subr.bf16.mxu1 %v10370_v62  ;;  %v10394_v62 = vld [vmem:[%s13176_s23 + $0x2f8] sm:$0xff]  }
0x19a7   : > { %9349 = vmatpush3.bf16.msra.mxu0 %v10371_v63  ;;  %v6817_v63 = vmul.f32 0.5, %v12762_v4  ;;  %v10399_v4 = vld [vmem:[%s13176_s23 + $0x300] sm:$0xff]  }
0x19a8   : > { %9371 = vmatpush3.bf16.msra.mxu1 %v10372_v1  ;;  %9350 = vmatprep.subr.bf16.mxu0 %v10373_v6  ;;  %v6819_v1 = vmul.f32 0.5, %v12733_v38  ;;  %v10395_v6 = vld [vmem:[%s13176_s23 + $0x238] sm:$0xff]   ;;  %v10398_v38 = vld [vmem:[%s13176_s23 + $0x3c0] sm:$0xff]  }
0x19a9   : > { %9372 = vmatprep.subr.bf16.mxu1 %v10374_v7  ;;  %v10485_v13 = vpop.eup %10484 }
0x19aa   : > { %v10487_v25 = vpop.eup %10486  ;;  %v6872_v21 = vadd.f32 1.0, %v10485_v13 }
0x19ab   : > { %9351 = vmatpush3.bf16.msra.mxu0 %v10375_v46  ;;  %v6874_v23 = vadd.f32 1.0, %v10487_v25  ;;  %v10489_v2 = vpop.eup %10488  ;;  %v10397_v46 = vld [vmem:[%s13176_s23 + $0x340] sm:$0xff]   ;;  %v10402_v25 = vld [vmem:[%s13176_s23 + $0x3c8] sm:$0xff]  }
0x19ac   : > { %9373 = vmatpush3.bf16.msra.mxu1 %v10376_v29  ;;  %9352 = vmatprep.subr.bf16.mxu0 %v10377_v35  ;;  %v6890_v28 = vmul.f32 %v6872_v21, %v6818_v19  ;;  %v10491_v5 = vpop.eup %10490  ;;  %v6871_v53 = vadd.f32 1.0, %v10489_v2  ;;  %v10400_v35 = vld [vmem:[%s13176_s23 + $0x380] sm:$0xff]  }
0x19ad   : > { %9374 = vmatprep.subr.bf16.mxu1 %v10378_v12  ;;  %v6892_v30 = vmul.f32 %v6874_v23, %v6820_v20  ;;  %v6873_v61 = vadd.f32 1.0, %v10491_v5  ;;  %v10401_v12 = vld [vmem:[%s13176_s23 + $0x348] sm:$0xff]   ;;  %v10415_v2 = vld [vmem:[%s13176_s23 + $0x320] sm:$0xff]  }
0x19ae   : > { %v6908_v0 = vpack.c.bf16 %v6890_v28, %v6890_v28  ;;  %v6889_v7 = vmul.f32 %v6871_v53, %v6817_v63  ;;  %v10403_v23 = vld [vmem:[%s13176_s23 + $0x308] sm:$0xff]   ;;  %v10422_v53 = vld [vmem:[%s13176_s23 + $0x3f0] sm:$0xff]   ;;  %v10425_v63 = vld [vmem:[%s13176_s23 + $0x378] sm:$0xff]  }
0x19af   : > { %9353 = vmatpush3.bf16.msra.mxu0 %v10379_v22  ;;  %v6910_v10 = vpack.c.bf16 %v6892_v30, %v6892_v30  ;;  %v6891_v11 = vmul.f32 %v6873_v61, %v6819_v1  ;;  %v10404_v28 = vld [vmem:[%s13176_s23 + $0x388] sm:$0xff]   ;;  %v10405_v30 = vld [vmem:[%s13176_s23 + $0x350] sm:$0xff]  }
0x19b0   : > { %9375 = vmatpush3.bf16.msra.mxu1 %v10380_v24  ;;  %9354 = vmatprep.subr.bf16.mxu0 %v10381_v26  ;;  %v6907_v29 = vpack.c.bf16 %v6889_v7, %v6889_v7  ;;  %v10419_v5 = vld [vmem:[%s13176_s23 + $0x328] sm:$0xff]   ;;  %v10426_v7 = vld [vmem:[%s13176_s23 + $0x3f8] sm:$0xff]  }
0x19b1   : > { %7975 = vmatprep.mubr.bf16.mxu0 %v6908_v0  ;;  %v6720_v50 = vpop.f32.mrb[32].mxu1  ;;  %v6761_v48 = vpop.f32.mrb[36].mxu0  ;;  %9376 = vmatprep.subr.bf16.mxu1 %v10382_v49  ;;  %v6909_v13 = vpack.c.bf16 %v6891_v11, %v6891_v11  ;;  %v12889_v49 = vld [vmem:[%s13177_s19 + $0x10] sm:$0x3] }
0x19b2   : > { %8015 = vmatprep.mubr.bf16.mxu1 %v6910_v10  ;;  %v12826_v16 = vadd.f32 %v6720_v50, %v6397_v27  ;;  %v12828_v14 = vadd.f32 %v6761_v48, %v6405_v58  ;;  %v6722_v43 = vpop.f32.mrb[33].mxu1  ;;  %v6763_v44 = vpop.f32.mrb[37].mxu0  ;;  %v10406_v58 = vld [vmem:[%s13176_s23 + $0x3d0] sm:$0xff]   ;;  %v10409_v48 = vld [vmem:[%s13176_s23 + $0x358] sm:$0xff]  }
0x19b3   : > { %v6723_v45 = vadd.f32 %v6722_v43, %v6401_v34  ;;  %v6764_v15 = vadd.f32 %v6763_v44, %v6409_v18  ;;  %9355 = vmatpush3.bf16.msra.mxu0 %v10383_v36  ;;  %v6724_v47 = vpop.f32.mrb[34].mxu1  ;;  %v6765_v51 = vpop.f32.mrb[38].mxu0  ;;  %v6417_v36 = vrot.slane %v12889_v49, %v12608_v32  ;;  %v10407_v10 = vld [vmem:[%s13176_s23 + $0x310] sm:$0xff]   ;;  %v10410_v32 = vld [vmem:[%s13176_s23 + $0x3d8] sm:$0xff]  }
0x19b4   : > { %9377 = vmatpush3.bf16.msra.mxu1 %v10384_v17  ;;  %9356 = vmatprep.subr.bf16.mxu0 %v10385_v41  ;;  %v6725_v39 = vpop.f32.mrb[35].mxu1  ;;  %v6766_v55 = vpop.f32.mrb[39].mxu0  ;;  %v6839_v34 = vmul.f32 0.70710677, %v12826_v16  ;;  %v6841_v17 = vmul.f32 0.70710677, %v12828_v14 }
0x19b5   : > { %v6840_v54 = vmul.f32 0.70710677, %v6723_v45  ;;  %v6842_v56 = vmul.f32 0.70710677, %v6764_v15  ;;  %9378 = vmatprep.subr.bf16.mxu1 %v10386_v3  ;;  %v6822_v22 = vmul.f32 0.5, %v6723_v45  ;;  %v6824_v24 = vmul.f32 0.5, %v6764_v15 }
0x19b6   : > { %v10408_v50 = vld [vmem:[%s13176_s23 + $0x390] sm:$0xff]   ;;  %v10411_v15 = vld [vmem:[%s13176_s23 + $0x318] sm:$0xff]   ;;  %v10420_v39 = vld [vmem:[%s13176_s23 + $0x3a8] sm:$0xff]   ;;  %v6823_v11 = vmul.f32 0.5, %v12828_v14 }
0x19b7   : > { %9357 = vmatpush3.bf16.msra.mxu0 %v10387_v52  ;;  %10492 = verf.f32 %v6840_v54  ;;  %v10412_v51 = vld [vmem:[%s13176_s23 + $0x398] sm:$0xff]   ;;  %v10413_v52 = vld [vmem:[%s13176_s23 + $0x360] sm:$0xff]   ;;  %v10421_v55 = vld [vmem:[%s13176_s23 + $0x370] sm:$0xff]  }
0x19b8   : > { %9379 = vmatpush3.bf16.msra.mxu1 %v10388_v31  ;;  %9358 = vmatprep.subr.bf16.mxu0 %v10389_v42  ;;  %10494 = verf.f32 %v6842_v56  ;;  %v10414_v42 = vld [vmem:[%s13176_s23 + $0x3e0] sm:$0xff]   ;;  %v10417_v56 = vld [vmem:[%s13176_s23 + $0x368] sm:$0xff]  }
0x19b9   : > { %9380 = vmatprep.subr.bf16.mxu1 %v10390_v57  ;;  %10496 = verf.f32 %v6839_v34  ;;  %v10416_v54 = vld [vmem:[%s13176_s23 + $0x3a0] sm:$0xff]   ;;  %v10418_v57 = vld [vmem:[%s13176_s23 + $0x3e8] sm:$0xff]   ;;  %v10441_v34 = vld [vmem:[%s13176_s23 + $0x470] sm:$0xff]  }
0x19ba   : > { %10498 = verf.f32 %v6841_v17  ;;  %v10443_v17 = vld [vmem:[%s13176_s23 + $0x478] sm:$0xff]  }
0x19bb   : > { %9359 = vmatpush3.bf16.msra.mxu0 %v10391_v37 }
0x19bc   : > { %9381 = vmatpush3.bf16.msra.mxu1 %v10392_v59  ;;  %9360 = vmatprep.subr.bf16.mxu0 %v10393_v60  ;;  %v10423_v60 = vld [vmem:[%s13176_s23 + $0x330] sm:$0xff]  }
0x19bd   : > { %9382 = vmatprep.subr.bf16.mxu1 %v10394_v62  ;;  %v10424_v62 = vld [vmem:[%s13176_s23 + $0x3b0] sm:$0xff]  }
0x19bf   : > { %9361 = vmatpush3.bf16.msra.mxu0 %v10395_v6 }
0x19c0   : > { %9383 = vmatpush3.bf16.msra.mxu1 %v10396_v8  ;;  %9390 = vmatprep.subr.bf16.mxu0 %v10397_v46  ;;  %v6821_v8 = vmul.f32 0.5, %v12826_v16  ;;  %v10429_v16 = vld [vmem:[%s13176_s23 + $0x440] sm:$0xff]  }
0x19c1   : > { %9412 = vmatprep.subr.bf16.mxu1 %v10398_v38  ;;  %v10493_v19 = vpop.eup %10492  ;;  %v10427_v38 = vld [vmem:[%s13176_s23 + $0x338] sm:$0xff]  }
0x19c2   : > { %7976 = vmatmul.mubr.bf16.vlgmr.msra.gmra.mrb[48].mxu0 %v6907_v29  ;;  %v10495_v21 = vpop.eup %10494  ;;  %v6876_v20 = vadd.f32 1.0, %v10493_v19 }
0x19c3   : > { %8016 = vmatmul.mubr.bf16.vlgmr.msra.gmra.mrb[48].mxu1 %v6909_v13  ;;  %9391 = vmatpush3.bf16.msra.mxu0 %v10399_v4  ;;  %v6878_v26 = vadd.f32 1.0, %v10495_v21  ;;  %v10497_v37 = vpop.eup %10496  ;;  %v6413_v13 = vrot.slane %v12889_v49, %v12049_v33  ;;  %v10431_v21 = vld [vmem:[%s13176_s23 + $0x448] sm:$0xff]   ;;  %v10435_v49 = vld [vmem:[%s13176_s23 + $0x458] sm:$0xff]  }
0x19c4   : > { %9413 = vmatpush3.bf16.msra.mxu1 %v10400_v35  ;;  %9392 = vmatprep.subr.bf16.mxu0 %v10401_v12  ;;  %v6894_v27 = vmul.f32 %v6876_v20, %v6822_v22  ;;  %v10499_v59 = vpop.eup %10498  ;;  %v6875_v61 = vadd.f32 1.0, %v10497_v37  ;;  %v10428_v35 = vld [vmem:[%s13176_s23 + $0x3b8] sm:$0xff]   ;;  %v10432_v33 = vld [vmem:[%s13176_s23 + $0x408] sm:$0xff]  }
0x19c5   : > { %9414 = vmatprep.subr.bf16.mxu1 %v10402_v25  ;;  %v6896_v0 = vmul.f32 %v6878_v26, %v6824_v24  ;;  %v6877_v6 = vadd.f32 1.0, %v10499_v59  ;;  %v10430_v25 = vld [vmem:[%s13176_s23 + $0x400] sm:$0xff]   ;;  %v10433_v24 = vld [vmem:[%s13176_s23 + $0x450] sm:$0xff]  }
0x19c6   : > { %v6912_v18 = vpack.c.bf16 %v6894_v27, %v6894_v27  ;;  %v6893_v4 = vmul.f32 %v6875_v61, %v6821_v8  ;;  %v10438_v27 = vld [vmem:[%s13176_s23 + $0x420] sm:$0xff]  }
0x19c7   : > { %9393 = vmatpush3.bf16.msra.mxu0 %v10403_v23  ;;  %v6914_v41 = vpack.c.bf16 %v6896_v0, %v6896_v0  ;;  %v6895_v12 = vmul.f32 %v6877_v6, %v6823_v11  ;;  %v10440_v0 = vld [vmem:[%s13176_s23 + $0x428] sm:$0xff]  }
0x19c8   : > { %9415 = vmatpush3.bf16.msra.mxu1 %v10404_v28  ;;  %9394 = vmatprep.subr.bf16.mxu0 %v10405_v30  ;;  %v6911_v19 = vpack.c.bf16 %v6893_v4, %v6893_v4  ;;  %v10434_v28 = vld [vmem:[%s13176_s23 + $0x410] sm:$0xff]   ;;  %v10436_v30 = vld [vmem:[%s13176_s23 + $0x418] sm:$0xff]  }
0x19c9   : > { %8055 = vmatprep.mubr.bf16.mxu0 %v6912_v18  ;;  %v12910_v3 = vpop.f32.mrb[36].mxu1  ;;  %9416 = vmatprep.subr.bf16.mxu1 %v10406_v58  ;;  %v6913_v22 = vpack.c.bf16 %v6895_v12, %v6895_v12  ;;  %v10439_v58 = vld [vmem:[%s13176_s23 + $0x468] sm:$0xff]  }
0x19ca   : > { %8095 = vmatprep.mubr.bf16.mxu1 %v6914_v41  ;;  %v6804_v43 = vpop.f32.mrb[37].mxu1  ;;  %v6803_v23 = vadd.f32 %v12910_v3, %v6413_v13 }
0x19cb   : > { %v6805_v44 = vadd.f32 %v6804_v43, %v6417_v36  ;;  %9395 = vmatpush3.bf16.msra.mxu0 %v10407_v10  ;;  %v6806_v45 = vpop.f32.mrb[38].mxu1  ;;  %v10442_v36 = vld [vmem:[%s13176_s23 + $0x430] sm:$0xff]   ;;  %v10507_v43 = vld [vmem:[%s13117_s12] sm:$0x7] }
0x19cc   : > { %9417 = vmatpush3.bf16.msra.mxu1 %v10408_v50  ;;  %v6807_v47 = vpop.f32.mrb[39].mxu1  ;;  %9396 = vmatprep.subr.bf16.mxu0 %v10409_v48  ;;  %v6843_v26 = vmul.f32 0.70710677, %v6803_v23  ;;  %v6825_v41 = vmul.f32 0.5, %v6803_v23  ;;  %v10444_v50 = vld [vmem:[%s13176_s23 + $0x438] sm:$0xff]  }
0x19cd   : > { %v6844_v31 = vmul.f32 0.70710677, %v6805_v44  ;;  %9418 = vmatprep.subr.bf16.mxu1 %v10410_v32  ;;  %v6826_v29 = vmul.f32 0.5, %v6805_v44  ;;  %v7781_v44 = vrot.slane %v10507_v43, 2 }
0x19cf   : > { %10500 = verf.f32 %v6844_v31  ;;  %9397 = vmatpush3.bf16.msra.mxu0 %v10411_v15 }
0x19d0   : > { %9419 = vmatpush3.bf16.msra.mxu1 %v10412_v51  ;;  %9398 = vmatprep.subr.bf16.mxu0 %v10413_v52  ;;  %10502 = verf.f32 %v6843_v26 }
0x19d1   : > { %9420 = vmatprep.subr.bf16.mxu1 %v10414_v42 }
0x19d3   : > { %9399 = vmatpush3.bf16.msra.mxu0 %v10415_v2 }
0x19d4   : > { %9421 = vmatpush3.bf16.msra.mxu1 %v10416_v54  ;;  %9400 = vmatprep.subr.bf16.mxu0 %v10417_v56 }
0x19d5   : > { %9422 = vmatprep.subr.bf16.mxu1 %v10418_v57 }
0x19d7   : > { %9401 = vmatpush3.bf16.msra.mxu0 %v10419_v5 }
0x19d8   : > { %9423 = vmatpush3.bf16.msra.mxu1 %v10420_v39  ;;  %9402 = vmatprep.subr.bf16.mxu0 %v10421_v55 }
0x19d9   : > { %v10501_v1 = vpop.eup %10500  ;;  %9424 = vmatprep.subr.bf16.mxu1 %v10422_v53 }
0x19da   : > { %v6880_v46 = vadd.f32 1.0, %v10501_v1  ;;  %v10503_v18 = vpop.eup %10502 }
0x19db   : > { %9403 = vmatpush3.bf16.msra.mxu0 %v10423_v60  ;;  %v6879_v10 = vadd.f32 1.0, %v10503_v18 }
0x19dc   : > { %9425 = vmatpush3.bf16.msra.mxu1 %v10424_v62  ;;  %9404 = vmatprep.subr.bf16.mxu0 %v10425_v63  ;;  %v6898_v14 = vmul.f32 %v6880_v46, %v6826_v29 }
0x19dd   : > { %9426 = vmatprep.subr.bf16.mxu1 %v10426_v7  ;;  %v6897_v48 = vmul.f32 %v6879_v10, %v6825_v41 }
0x19de   : > { %v6916_v20 = vpack.c.bf16 %v6898_v14, %v6898_v14 }
0x19df   : > { %9405 = vmatpush3.bf16.msra.mxu0 %v10427_v38  ;;  %v6915_v3 = vpack.c.bf16 %v6897_v48, %v6897_v48 }
0x19e0   : > { %9427 = vmatpush3.bf16.msra.mxu1 %v10428_v35  ;;  %9434 = vmatprep.subr.bf16.mxu0 %v10429_v16 }
0x19e1   : > { %9606 = vmatprep.subr.bf16.mxu1 %v10621_v40 }
0x19e2   : > { %8056 = vmatmul.mubr.bf16.vlgmr.msra.gmra.mrb[52].mxu0 %v6911_v19 }
0x19e3   : > { %8096 = vmatmul.mubr.bf16.vlgmr.msra.gmra.mrb[52].mxu1 %v6913_v22  ;;  %9435 = vmatpush3.bf16.msra.mxu0 %v10430_v25 }
0x19e4   : > { %8135 = vmatprep.mubr.bf16.mxu0 %v6916_v20  ;;  %9436 = vmatprep.subr.bf16.mxu0 %v10431_v21 }
0x19e5   : > { %9608 = vmatprep.mubr.msk.bf16.mxu1 %vm10622_vm11, %v10621_v40  ;;  %v10437_v40 = vld [vmem:[%s13176_s23 + $0x460] sm:$0xff]   ;;  %vm8171_vm11 = vcmask 1043456   ;;  %s13179_s23 = sld [smem:[#allocation24_spill]] }
0x19e7   : > { %9437 = vmatpush3.bf16.msra.mxu0 %v10432_v33 }
0x19e8   : > { %9438 = vmatprep.subr.bf16.mxu0 %v10433_v24 }
0x19eb   : > { %9439 = vmatpush3.bf16.msra.mxu0 %v10434_v28  ;;  %s13180_s25 = smov %s13179_s23 }
0x19ec   : > { %9440 = vmatprep.subr.bf16.mxu0 %v10435_v49 }
0x19ef   : > { %9441 = vmatpush3.bf16.msra.mxu0 %v10436_v30 }
0x19f0   : > { %9442 = vmatprep.subr.bf16.mxu0 %v10437_v40 }
0x19f3   : > { %9443 = vmatpush3.bf16.msra.mxu0 %v10438_v27 }
0x19f4   : > { %9444 = vmatprep.subr.bf16.mxu0 %v10439_v58 }
0x19f7   : > { %9445 = vmatpush3.bf16.msra.mxu0 %v10440_v0 }
0x19f8   : > { %9446 = vmatprep.subr.bf16.mxu0 %v10441_v34 }
0x19fb   : > { %9447 = vmatpush3.bf16.msra.mxu0 %v10442_v36 }
0x19fc   : > { %9448 = vmatprep.subr.bf16.mxu0 %v10443_v17 }
0x19ff   : > { %9449 = vmatpush3.bf16.msra.mxu0 %v10444_v50 }
0x1a02   : > { %8136 = vmatmul.mubr.bf16.vlgmr.msra.gmra.mrb[56].mxu0 %v6915_v3 }
0x1a55   : > { %v9274_v32 = vpop.f32.mrb[40].mxu0 }
0x1a56   : > { %v9296_v45 = vpop.f32.mrb[40].mxu1  ;;  %v9275_v15 = vpop.f32.mrb[41].mxu0 }
0x1a57   : > { %v9276_v47 = vadd.f32 %v9275_v15, %v9274_v32  ;;  %v9297_v51 = vpop.f32.mrb[41].mxu1  ;;  %v9277_v52 = vpop.f32.mrb[42].mxu0 }
0x1a58   : > { %v9298_v31 = vadd.f32 %v9297_v51, %v9296_v45  ;;  %v9299_v42 = vpop.f32.mrb[42].mxu1  ;;  %v9278_v2 = vpop.f32.mrb[43].mxu0 }
0x1a59   : > { %v7818_v54 = vadd.f32 %v9276_v47, %v7781_v44  ;;  %v9300_v56 = vpop.f32.mrb[43].mxu1 }
0x1a5b   : > { %v7858_v57 = vadd.f32 %v9298_v31, %v7818_v54 }
0x1a75   : > { %v9318_v5 = vpop.f32.mrb[44].mxu0 }
0x1a76   : > { %v9340_v39 = vpop.f32.mrb[44].mxu1  ;;  %v9319_v55 = vpop.f32.mrb[45].mxu0 }
0x1a77   : > { %v9320_v37 = vadd.f32 %v9319_v55, %v9318_v5  ;;  %v9341_v53 = vpop.f32.mrb[45].mxu1  ;;  %v9321_v59 = vpop.f32.mrb[46].mxu0 }
0x1a78   : > { %v9342_v60 = vadd.f32 %v9341_v53, %v9340_v39  ;;  %v9343_v61 = vpop.f32.mrb[46].mxu1  ;;  %v9322_v62 = vpop.f32.mrb[47].mxu0 }
0x1a79   : > { %v7898_v63 = vadd.f32 %v9320_v37, %v7858_v57  ;;  %v9344_v1 = vpop.f32.mrb[47].mxu1 }
0x1a7b   : > { %v7938_v6 = vadd.f32 %v9342_v60, %v7898_v63 }
0x1a95   : > { %v9362_v7 = vpop.f32.mrb[48].mxu0 }
0x1a96   : > { %v9384_v8 = vpop.f32.mrb[48].mxu1  ;;  %v9363_v46 = vpop.f32.mrb[49].mxu0 }
0x1a97   : > { %v9364_v11 = vadd.f32 %v9363_v46, %v9362_v7  ;;  %v9385_v38 = vpop.f32.mrb[49].mxu1  ;;  %v9365_v4 = vpop.f32.mrb[50].mxu0 }
0x1a98   : > { %v9386_v29 = vadd.f32 %v9385_v38, %v9384_v8  ;;  %v9387_v35 = vpop.f32.mrb[50].mxu1  ;;  %v9366_v16 = vpop.f32.mrb[51].mxu0  ;;  %v8184_v8 = vld [vmem:[%s13179_s23] sm:$0x1] }
0x1a99   : > { %v7978_v12 = vadd.f32 %v9364_v11, %v7938_v6  ;;  %v9388_v14 = vpop.f32.mrb[51].mxu1  ;;  %v8185_v11 = vld [vmem:[%s13180_s25 + $0x1] sm:$0x1]  ;;  %v8204_v35 = vld [vmem:[%s13181_s16] sm:$0x1] }
0x1a9b   : > { %v8018_v13 = vadd.f32 %v9386_v29, %v7978_v12 }
0x1ab5   : > { %v9406_v25 = vpop.f32.mrb[52].mxu0 }
0x1ab6   : > { %v9428_v19 = vpop.f32.mrb[52].mxu1  ;;  %v9407_v21 = vpop.f32.mrb[53].mxu0 }
0x1ab7   : > { %v9408_v22 = vadd.f32 %v9407_v21, %v9406_v25  ;;  %v9429_v20 = vpop.f32.mrb[53].mxu1  ;;  %v9409_v23 = vpop.f32.mrb[54].mxu0 }
0x1ab8   : > { %v9430_v33 = vadd.f32 %v9429_v20, %v9428_v19  ;;  %v9431_v24 = vpop.f32.mrb[54].mxu1  ;;  %v9410_v26 = vpop.f32.mrb[55].mxu0 }
0x1ab9   : > { %v8058_v28 = vadd.f32 %v9408_v22, %v8018_v13  ;;  %v9432_v49 = vpop.f32.mrb[55].mxu1 }
0x1abb   : > { %v8098_v30 = vadd.f32 %v9430_v33, %v8058_v28 }
0x1ad5   : > { %v9450_v40 = vpop.f32.mrb[56].mxu0 }
0x1ad6   : > { %v9451_v27 = vpop.f32.mrb[57].mxu0 }
0x1ad7   : > { %v9452_v58 = vadd.f32 %v9451_v27, %v9450_v40  ;;  %v9453_v0 = vpop.f32.mrb[58].mxu0 }
0x1ad8   : > { %v9454_v34 = vpop.f32.mrb[59].mxu0 }
0x1ad9   : > { %v8138_v18 = vadd.f32 %v9452_v58, %v8098_v30 }
0x1adb   : > { %v8143_v36 = vadd.f32 %v8138_v18, %v12139_v9 }
0x1add   : > { %v8149_v10 = vrot.slane %v8143_v36, 6  ;;  %v8145_v17 = vrot.slane %v8143_v36, 7  ;;  %v8153_v41 = vrot.slane %v8143_v36, 5  ;;  %v8157_v50 = vrot.slane %v8143_v36, 4 }
0x1ade   : > { %v8161_v48 = vrot.slane %v8143_v36, 3 }
0x1adf   : > { %8150 = vrot.lane.b32.xlu1 %v8149_v10, %s10620_s18  ;;  %8146 = vrot.lane.b32.xlu0 %v8145_v17, %s10625_s17 }
0x1ae3   : > { %8154 = vrot.lane.b32.xlu1 %v8153_v41, %s10632_s26  ;;  %8158 = vrot.lane.b32.xlu0 %v8157_v50, %s10630_s6  ;;  %s13178_s6 = sld [smem:[#allocation25_spill]] }
0x1ae7   : > { %8162 = vrot.lane.b32.xlu1 %v8161_v48, %s10631_s3 }
0x1ae9   : > { %v10445_v62 = vld [vmem:[%s13178_s6] sm:$0xff]  }
0x1aea   : > { %9607 = vmatpush3.bf16.msra.mxu1 %v10445_v62 }
0x1b51   : > { %v8151_v3 = vpop.permute.xlu1 %8150  ;;  %v8147_v32 = vpop.permute.xlu0 %8146 }
0x1b52   : > { %v8166_v43 = vsel %vm8165_vm7, %v8143_v36, %v8147_v32 }
0x1b53   : > { %v8168_v44 = vsel %vm8167_vm8, %v8166_v43, %v8151_v3 }
0x1b55   : > { %v8155_v9 = vpop.permute.xlu1 %8154  ;;  %v8159_v15 = vpop.permute.xlu0 %8158 }
0x1b56   : > { %v8170_v45 = vsel %vm8169_vm10, %v8168_v44, %v8155_v9 }
0x1b57   : > { %v8172_v47 = vsel %vm8171_vm11, %v8170_v45, %v8159_v15 }
0x1b59   : > { %v8163_v51 = vpop.permute.xlu1 %8162 }
0x1b5a   : > { %v8173_v52 = vsel %vm5091_vm14, %v8172_v47, %v8163_v51 }
0x1b5b   : > { %v8175_v31 = vsel %vm8174_vm12, %v8173_v52, 0.0 }
0x1b5c   : > { %v8176_v42 = vrot.slane %v8175_v31, 4 }
0x1b5e   : > { %v8177_v2 = vadd.f32 %v8176_v42, %v8175_v31 }
0x1b60   : > { %v8178_v54 = vrot.slane %v8177_v2, 2 }
0x1b62   : > { %v8179_v56 = vadd.f32 %v8178_v54, %v8177_v2 }
0x1b64   : > { %v8180_v57 = vrot.slane %v8179_v56, 1 }
0x1b66   : > { %v8181_v5 = vadd.f32 %v8180_v57, %v8179_v56 }
0x1b68   : > { %v8183_v39 = vmul.f32 0.16666667, %v8181_v5 }
0x1b6a   : > { %v8186_v55 = vsel %vm4700_vm9, %v8183_v39, 0.0 }
0x1b6b   : > { %8187 = vadd.xlane.f32.xlu0 %v8186_v55 }
0x1bf8   : > { %v8188_v37 = vpop.xlane.xlu0 %8187 }
0x1bf9   : > { %v8189_v53 = vmul.f32 0.0625, %v8188_v37 }
0x1bfb   : > { %v8190_v59 = vsub.f32 %v8183_v39, %v8189_v53 }
0x1bfd   : > { %v8191_v60 = vmul.f32 %v8190_v59, %v8190_v59 }
0x1bff   : > { %v8192_v61 = vsel %vm4700_vm9, %v8191_v60, 0.0 }
0x1c00   : > { %8193 = vadd.xlane.f32.xlu1 %v8192_v61 }
0x1c8d   : > { %v8194_v63 = vpop.xlane.xlu1 %8193 }
0x1c8e   : > { %v8195_v1 = vmul.f32 0.0625, %v8194_v63 }
0x1c90   : > { %v8196_v6 = vadd.f32 1e-05, %v8195_v1 }
0x1c92   : > { %10504 = vrsqrt.f32 %v8196_v6 }
0x1c9c   : > { %v10505_v7 = vpop.eup %10504 }
0x1c9d   : > { %v8198_v46 = vmul.f32 %v10505_v7, %v8190_v59 }
0x1c9f   : > { %v8199_v38 = vmul.f32 %v8198_v46, %v8184_v8 }
0x1ca1   : > { %v8200_v4 = vadd.f32 %v8199_v38, %v8185_v11 }
0x1ca3   : > { %v8201_v29 = vpack.c.bf16 %v8200_v4, %v8200_v4 }
0x1ca5   : > { %9609 = vmatmul.mubr.msk.bf16.vlgmr.msra.gmra.mrb[56].mxu1 %vm4700_vm9, %v8201_v29 }
0x1d78   : > { %v8248_v16 = vpop.f32.mrb[56].mxu1 }
0x1d79   : > { %v8249_v12 = vadd.f32 %v8248_v16, %v8204_v35  ;;  %v9610_v14 = vpop.f32.mrb[57].mxu1 }
0x1d7a   : > { %v8251_v13 = vpop.f32.mrb[58].mxu1 }
0x1d7b   : > { %8254 = vst [vmem:[%s10851_s27] sm:$0x1] %v8249_v12  ;;  %v9611_v25 = vpop.f32.mrb[59].mxu1 }
0x1d7c PF: > { %s13182_s19 = sld [smem:[#allocation8_spill]]  ;;  %s8268_s17 = sshll.u32 %s10851_s27, 4  ;;  %s8269_s17 = int_to_ptr.vmem [resolvable:$true] %s8268_s17 }
0x1d7d   : > { %s13184_s14 = sld [smem:[#allocation27_spill]]  ;;  %s13185_s6 = sand.u32 1, %s10578_s30  }
0x1d7e   : > { %s8256_s3 = scalar_lea.sflag [#allocation4], %s13185_s6  ;;  %s10508_s26 = scalar_lea.vmem %s8269_s17, 16 }
0x1d7f   : > { %p10509_p4 = scmp.ne.s32.totalorder %s8269_s17, %s10508_s26  ;;  %s10634_s23 = smov [#allocation3]  }
0x1d80   : > { %s10512_s2 = sshll.u32 %s10634_s23, 4  ;;  %s10513_s2 = int_to_ptr.vmem [resolvable:$false] %s10512_s2 }
0x1d81   : > { %p10510_p5 = pnand %p10509_p4, %p10784_p3  ;;  %s10514_s22 = scalar_lea.vmem %s10513_s2, 32 }
0x1d82   : > { %s9001_s24 = sshll.u32 %s13182_s19, 4  ;;  %p10515_p7 = scmp.lt.s32.totalorder %s8269_s17, %s10513_s2 }
0x1d83   : > { %s13055_s18 = scalar_lea.hbm %s13184_s14, %s9001_s24  ;;  %p10511_p6 = pneg %p10510_p5 }
0x1d84   : > { %p10516_p8 = scmp.lt.s32.totalorder %s10514_s22, %s10508_s26 }
0x1d86   : > { %p10517_p10 = por %p10516_p8, %p10515_p7 }
0x1d88   : > { %p10518_p11 = pnand %p10517_p10, %p10511_p6 }
0x1d8a   : > { %10521 = shalt.err (!%p10518_p11)
}
0x1d8b   : > { %s10522_s27 = scalar_lea.hbm %s13055_s18, 16  ;;  %s10526_s16 = scalar_lea.hbm %s13184_s14, 32 }
0x1d8c   : > { %p10523_p12 = scmp.ne.s32.totalorder %s13055_s18, %s10522_s27  ;;  %p10527_p1 = scmp.lt.u32.totalorder %s13055_s18, %s13184_s14 }
0x1d8d   : > { %p10528_p2 = scmp.lt.u32.totalorder %s10526_s16, %s10522_s27  ;;  %p10530_p5 = scmp.lt.u32.totalorder %s10522_s27, %s13055_s18 }
0x1d8e   : > { %p10524_p13 = pnand %p10523_p12, %p10784_p3 }
0x1d8f   : > { %p10529_p4 = por %p10528_p2, %p10527_p1 }
0x1d90   : > { %p10525_p0 = pneg %p10524_p13 }
0x1d91   : > { %p10531_p6 = por %p10530_p5, %p10529_p4 }
0x1d93   : > { %p10532_p7 = pnand %p10531_p6, %p10525_p0 }
0x1d95   : > { %10535 = shalt.err (!%p10532_p7)
}
0x1d96   : > { %9612 = dma.vmem_to_hbm [thread:$0]  (%p10784_p3), %s8269_s17, 16, %s13055_s18, %s8256_s3  }
0x1d97 PF: > { %s13186_s0 = sld [smem:[#allocation11_spill]]  ;;  %s13187_s21 = sld [smem:[#allocation6_spill]] }
0x1d9d   : > { %p9618_p8 = scmp.ge.s32.totalorder %s13186_s0, 2  ;;  %s8280_s26 = sand.u32 1, %s13187_s21  }
0x1d9e   : > { %s8281_s23 = scalar_lea.sflag [#allocation4], %s8280_s26 }
0x1d9f   : > { %p9615_p10 = pnand %p9618_p8, %p10794_p9 }
0x1da1   : > { %10569 = dma.done.wait (!%p9615_p10), %s8281_s23, 16  }
0x1da2   : > { %10571 = vsyncadd (!%p9615_p10), %s8281_s23, 4294967280  ;;  %s32_s23 = sadd.s32 1, %s13186_s0   ;;  %s13189_s2 = sld [smem:[#allocation7_spill]] }
0x1da3   : > { %p29_p11 = scmp.ge.s32.totalorder %s32_s23, 6   ;;  %s13190_s20 = sld [smem:[#allocation16_spill]] }
0x1da4   : > { %s13191_s21 = sld [smem:[#allocation9_spill]]  ;;  %s13192_s1 = sld [smem:[#allocation10_spill]] }
0x1da5   : > { %s13193_s22 = sld [smem:[#allocation12_spill]]  ;;  %s13194_s18 = sld [smem:[#allocation14_spill]] }
0x1da6   : > { %s13195_s0 = smov %s10578_s30  ;;  %31 = sbr.rel (!%p29_p11) target bundleno = 17 (0x11), region = 162 }
0x1da8   : > { %s13196_s30 = smov %s13189_s2 }
0x1dab   : > { %s13197_s2 = smov %s13194_s18 }
0x1dad   :  { %8285 = vsyncpa [#allocation4], 1 }
0x1dae   :  { %8287 = vsyncpa [#allocation4 + $0x1], 1 }

</bundles_post_ra>
